<compile_context>
chip_gen: v5e
topology: v5e:2x2
jax: 0.10.0
libtpu: 0.0.40
codegen_flags: <defaults>
</compile_context>

<pallas_src>
import jax
import jax.numpy as jnp
from jax.experimental import pallas as pl
from jax.experimental.pallas import tpu as pltpu


# ---------------------------------------------------------------------------
# Kernel body
# ---------------------------------------------------------------------------
def _mish_kernel(x_ref, o_ref):
    xf = x_ref[...].astype(jnp.float32)
    # Single-exp form: tanh(softplus(x)) = n / (n + 2), n = e^x * (e^x + 2).
    # Clamp the exp argument at 20 (torch softplus threshold); above that
    # mish(x) == x to f32 precision, selected by the where().
    e = jnp.exp(jnp.minimum(xf, 20.0))
    n = e * (e + 2.0)
    y = jnp.where(xf > 20.0, xf, xf * n / (n + 2.0))
    o_ref[...] = y.astype(o_ref.dtype)


def _mish_jnp(x):
    """Plain-JAX Mish (stable softplus form) for tiny-tensor bypass."""
    xf = x.astype(jnp.float32)
    sp = jnp.where(xf > 20.0, xf, jnp.log1p(jnp.exp(jnp.minimum(xf, 20.0))))
    return (xf * jnp.tanh(sp)).astype(x.dtype)


# ---------------------------------------------------------------------------
# Block-size / VMEM policy
# ---------------------------------------------------------------------------
_SMALL_BYPASS_ELEMS = 1 << 16  # 64K elements: below this, jnp fuses & wins.


def _pick_target_block_bytes(default=4 * 1024 * 1024):
    """Per-generation block-size target; falls back to 4 MiB if unknown."""
    try:
        info = pltpu.get_tpu_info()
    except Exception:
        return default
    name = ""
    for attr in ("chip_version", "version", "chip_name", "name"):
        v = getattr(info, attr, None)
        if v is not None:
            name = str(v).lower()
            break
    try:
        if "7" in name:           # v7x: ~3.2 TB/s HBM -> bigger blocks
            return 8 * 1024 * 1024
        if "v5" in name or "5e" in name or "_5" in name:
            return 3 * 1024 * 1024
    except Exception:
        pass
    return default


# ---------------------------------------------------------------------------
# Wrapper
# ---------------------------------------------------------------------------
def mish(x, *, target_block_bytes=None):
    """Apply Mish elementwise via a Pallas TPU kernel (any shape/dtype)."""
    orig_shape = x.shape
    dtype = x.dtype
    n_elem = x.size
    if n_elem == 0:
        return x

    # Small-tensor bypass: launch overhead dominates, let XLA fuse instead.
    if n_elem < _SMALL_BYPASS_ELEMS:
        return _mish_jnp(x)

    if target_block_bytes is None:
        target_block_bytes = _pick_target_block_bytes()

    itemsize = jnp.dtype(dtype).itemsize
    # sub-32-bit dtypes pack along sublanes: keep block_rows a multiple of
    # the packed sublane tile.
    sub = {1: 32, 2: 16}.get(itemsize, 8)

    # Widest lane dim (multiple of 128) that divides the flat length.
    lane = None
    for cand in (8192, 4096, 2048, 1024, 512, 256, 128):
        if n_elem % cand == 0:
            lane = cand
            break

    if lane is None:
        # Flat length not a multiple of 128: pad to a 1024-multiple, run one
        # kernel, slice back.
        # TODO(synk): masked final block (scalar-prefetch true length) to keep
        # HBM traffic at exactly 1 read + 1 write for ragged sizes.
        pad_to = 1024
        padded = ((n_elem + pad_to - 1) // pad_to) * pad_to
        x_flat = x.reshape(-1)
        x_pad = jnp.pad(x_flat, (0, padded - n_elem))
        y_pad = mish(x_pad, target_block_bytes=target_block_bytes)
        return y_pad[:n_elem].reshape(orig_shape)

    rows = n_elem // lane
    x2d = x.reshape(rows, lane)

    total_bytes = n_elem * itemsize
    row_bytes = lane * itemsize

    if rows <= sub:
        # Can't split into sublane-aligned blocks; one block covering the
        # whole array (block_shape == array dims is always legal).
        block_rows = rows
    else:
        # Aim for blocks near target_block_bytes, but always >= 2 blocks
        # (even count when possible) so both v7x TensorCores get work.
        n_blocks = max(2, -(-total_bytes // target_block_bytes))
        if n_blocks % 2:
            n_blocks += 1
        block_rows = -(-rows // n_blocks)           # ceil(rows / n_blocks)
        block_rows = -(-block_rows // sub) * sub    # round up to sublane tile
        block_rows = min(block_rows, rows)

    grid = (pl.cdiv(rows, block_rows),)

    # 2 in + 2 out double-buffers + headroom for internal scratch; stays under
    # the 64 MiB physical VMEM per TC on v7x.
    block_bytes = block_rows * row_bytes
    vmem_limit = min(56 * 1024 * 1024,
                     max(16 * 1024 * 1024, 4 * block_bytes + 4 * 1024 * 1024))

    cost = pl.CostEstimate(
        flops=6 * n_elem,
        transcendentals=n_elem,
        bytes_accessed=2 * n_elem * itemsize,
    )

    out2d = pl.pallas_call(
        _mish_kernel,
        out_shape=jax.ShapeDtypeStruct((rows, lane), dtype),
        grid_spec=pltpu.PrefetchScalarGridSpec(
            num_scalar_prefetch=0,
            grid=grid,
            in_specs=[pl.BlockSpec((block_rows, lane), lambda i: (i, 0))],
            out_specs=pl.BlockSpec((block_rows, lane), lambda i: (i, 0)),
        ),
        compiler_params=pltpu.CompilerParams(
            dimension_semantics=("parallel",),
            vmem_limit_bytes=vmem_limit,
        ),
        cost_estimate=cost,
    )(x2d)

    return out2d.reshape(orig_shape)


# ---------------------------------------------------------------------------
# Reference + tests
# ---------------------------------------------------------------------------
def _mish_ref(x):
    """Reference matching torch: x * tanh(softplus(x)), threshold=20."""
    xf = x.astype(jnp.float32)
    sp = jnp.where(xf > 20.0, xf, jnp.log1p(jnp.exp(jnp.minimum(xf, 20.0))))
    return (xf * jnp.tanh(sp)).astype(x.dtype)


if __name__ == "__main__":
    key = jax.random.PRNGKey(0)

    # 1) NCHW like a small YOLO feature map: batch=2, channels=4, 16x16.
    #    (Below the 64K-element threshold -> plain-jnp bypass path.)
    x_small = jax.random.normal(key, (2, 4, 16, 16), dtype=jnp.float32) * 3.0
    y_small = mish(x_small)
    jax.block_until_ready(y_small)
    assert y_small.shape == x_small.shape and y_small.dtype == x_small.dtype
    assert jnp.allclose(y_small, _mish_ref(x_small), atol=1e-5, rtol=1e-5)

    # 2) Mid-size feature map that exercises the Pallas kernel path with a
    #    multi-block grid (2*32*64*64 = 262144 elements, 1 MiB f32).
    x_big = jax.random.normal(jax.random.PRNGKey(1),
                              (2, 32, 64, 64), dtype=jnp.float32) * 3.0
    y_big = mish(x_big)
    jax.block_until_ready(y_big)
    assert y_big.shape == x_big.shape and y_big.dtype == x_big.dtype
    assert jnp.allclose(y_big, _mish_ref(x_big), atol=1e-5, rtol=1e-5)

    # 3) Large-ish size NOT divisible by 128 -> pad + kernel + slice path.
    x_odd = jax.random.normal(jax.random.PRNGKey(2),
                              (70001,), dtype=jnp.float32) * 3.0
    y_odd = mish(x_odd)
    jax.block_until_ready(y_odd)
    assert y_odd.shape == x_odd.shape and y_odd.dtype == x_odd.dtype
    assert jnp.allclose(y_odd, _mish_ref(x_odd), atol=1e-5, rtol=1e-5)

    print("KERNEL_OK")
</pallas_src>

<mosaic_0001>
module attributes {stable_mosaic.version = 11 : i64} {
  func.func @_mish_kernel(%arg0: i32, %arg1: memref<16x8192xf32, #tpu.memory_space<vmem>>, %arg2: memref<16x8192xf32, #tpu.memory_space<vmem>>) attributes {dimension_semantics = [#tpu.dimension_semantics<parallel>], iteration_bounds = array<i64: 2>, scalar_prefetch = 0 : i64, scratch_operands = 0 : i64, tpu.core_type = #tpu.core_type<tc>, window_params = [{transform_indices = @transform_0, window_bounds = array<i64: 16, 8192>}, {transform_indices = @transform_1, window_bounds = array<i64: 16, 8192>}]} {
    %c0 = arith.constant 0 : index
    %c0_0 = arith.constant 0 : index
    %0 = vector.load %arg1[%c0, %c0_0] : memref<16x8192xf32, #tpu.memory_space<vmem>>, vector<16x8192xf32>
    %cst = arith.constant 2.000000e+01 : f32
    %1 = vector.broadcast %cst : f32 to vector<16x8192xf32>
    %2 = arith.minimumf %0, %1 : vector<16x8192xf32>
    %3 = math.exp %2 : vector<16x8192xf32>
    %cst_1 = arith.constant 2.000000e+00 : f32
    %4 = vector.broadcast %cst_1 : f32 to vector<16x8192xf32>
    %5 = arith.addf %3, %4 : vector<16x8192xf32>
    %6 = arith.mulf %3, %5 : vector<16x8192xf32>
    %cst_2 = arith.constant 2.000000e+01 : f32
    %7 = vector.broadcast %cst_2 : f32 to vector<16x8192xf32>
    %8 = arith.cmpf ogt, %0, %7 : vector<16x8192xf32>
    %9 = arith.mulf %0, %6 : vector<16x8192xf32>
    %cst_3 = arith.constant 2.000000e+00 : f32
    %10 = vector.broadcast %cst_3 : f32 to vector<16x8192xf32>
    %11 = arith.addf %6, %10 : vector<16x8192xf32>
    %12 = arith.divf %9, %11 : vector<16x8192xf32>
    %13 = arith.select %8, %0, %12 : vector<16x8192xi1>, vector<16x8192xf32>
    %c0_4 = arith.constant 0 : index
    %c0_5 = arith.constant 0 : index
    %14 = vector.load %arg2[%c0_4, %c0_5] : memref<16x8192xf32, #tpu.memory_space<vmem>>, vector<16x8192xf32>
    tpu.vector_store %arg2[%c0_4, %c0_5], %13 {strides = array<i32>} : memref<16x8192xf32, #tpu.memory_space<vmem>>, vector<16x8192xf32>,
    return
  }
  func.func @transform_0(%arg0: i32) -> (i32, i32) {
    %c0_i32 = arith.constant 0 : i32
    %c0_i32_0 = arith.constant 0 : i32
    return %arg0, %c0_i32 : i32, i32
  }
  func.func @transform_1(%arg0: i32) -> (i32, i32) {
    %c0_i32 = arith.constant 0 : i32
    %c0_i32_0 = arith.constant 0 : i32
    return %arg0, %c0_i32 : i32, i32
  }
}

</mosaic_0001>

<bundles_post_ra>
// kernel: tpu_custom_call.1
= control target key start
LH: loop header
LB: loop body
LE: loop exit
PB: predicated region body
PF: predicated region fallthrough
CT: control target
= control target key end

     0   :  { %6 = vsyncpa [#allocation3], 0  ;;  %s8464_s0 = inlined_call_operand.hbm [shape: f32[32,8192], index: 0, kind: input, shape index: {}]   ;;  %s8465_s1 = inlined_call_operand.hbm [shape: f32[32,8192], index: 1, kind: output, shape index: {}]  }
   0x1   :  { %8 = vsyncpa [#allocation3 + $0x1], 0 }
   0x2   :  { %9 = vsyncpa [#allocation4], 0 }
   0x3   :  { %11 = vsyncpa [#allocation4 + $0x1], 0  ;;  %s4252_s6 = smov 0   ;;  %s4254_s7 = smov 0  }
   0x4   :  { %s4256_s8 = smov 0   ;;  %s4258_s9 = smov 0  }
   0x5 LB: > { %s4273_s10 = sadd.s32 4294967295, %s4236_s9   ;;  %s3558_s11 = sadd.s32 4294967294, %s4236_s9   ;;  %s4236_s9 = sphi %s4258_s9, %s8928_s9   ;;  %s4232_s8 = sphi %s4256_s8, %s8927_s8   ;;  %s4228_s7 = sphi %s4254_s7, %s8926_s7   ;;  %s4224_s6 = sphi %s4252_s6, %s8925_s6  }
   0x6   : > { %s4277_s12 = sadd.s32 1, %s4236_s9   ;;  %s24_s13 = sadd.s32 1, %s4232_s8 }
   0x7   : > { %s21_s14 = ssub.s32 %s4236_s9, %s4277_s12  ;;  %p31_p0 = scmp.ne.s32.totalorder %s4232_s8, %s4228_s7 }
   0x8   : > { %p22_p1 = scmp.eq.s32.totalorder %s21_s14, 0  ;;  %p32_p2 = scmp.eq.s32.totalorder %s4236_s9, 0 }
   0x9   : > { %p37_p3 = scmp.ne.s32.totalorder %s4228_s7, %s4224_s6  ;;  %p38_p4 = scmp.eq.s32.totalorder %s4273_s10, 0 }
   0xa   : > { %s4289_s15 = scalar_select %p22_p1, %s4232_s8, %s24_s13  }
   0xb   : > { %p4291_p5 = por %p32_p2, %p31_p0  ;;  %p4295_p6 = por %p38_p4, %p37_p3 }
   0xc   : > { %p61_p7 = scmp.eq.s32.totalorder %s4273_s10, 1  ;;  %p67_p8 = scmp.eq.s32.totalorder %s3558_s11, 1 }
   0xd   : > { %p3590_p10 = scmp.lt.s32.totalorder %s4236_s9, 2  ;;  %s87_s20 = sand.u32 1, %s4232_s8  }
   0xe   : > { %p4302_p11 = por %p61_p7, %p31_p0  ;;  %p4306_p12 = por %p67_p8, %p37_p3 }
   0xf   : > { %s3575_s21 = sshll.u32 %s4236_s9, 10  ;;  %s3561_s22 = sshll.u32 %s87_s20, 10 }
  0x10   : > { %s97_s25 = scalar_lea.hbm %s8464_s0, %s3575_s21  ;;  %s91_s27 = scalar_lea.vmem [#allocation2], %s3561_s22 }
  0x11   : > { %s98_s26 = sshll.u32 %s97_s25, 4  ;;  %s100_s28 = sshll.u32 %s91_s27, 4  ;;  %s99_s26 = int_to_ptr.hbm [resolvable:$true] %s98_s26  ;;  %s101_s28 = int_to_ptr.vmem [resolvable:$true] %s100_s28 }
  0x12   : > { %p4317_p13 = pnand %p3590_p10, %p4291_p5  ;;  %p3565_p0 = scmp.ge.s32.totalorder %s4236_s9, 1 }
  0x13   : > { %p108_p1 = scmp.lt.s32.totalorder %s4236_s9, 3  ;;  %s88_s30 = scalar_lea.sflag [#allocation3], %s87_s20 }
  0x14   : > { %s4140_s2 = sshra.s32 %s99_s26, 4  ;;  %p4144_p3 = pneg %p4317_p13  ;;  %s4141_s2 = int_to_ptr.hbm [resolvable:$true] %s4140_s2 }
  0x15   : > { %s4142_s3 = scalar_lea.hbm %s4141_s2, 1024  ;;  %s4147_s11 = scalar_lea.hbm %s8464_s0, 2048 }
  0x16   : > { %p4143_p2 = scmp.ne.s32.totalorder %s4141_s2, %s4142_s3  ;;  %p4148_p5 = scmp.lt.s32.totalorder %s4141_s2, %s8464_s0 }
  0x17   : > { %p4149_p8 = scmp.lt.s32.totalorder %s4147_s11, %s4142_s3 }
  0x18   : > { %p4145_p4 = pnand %p4144_p3, %p4143_p2 }
  0x19   : > { %p4150_p10 = por %p4149_p8, %p4148_p5 }
  0x1a   : > { %p4146_p7 = pneg %p4145_p4 }
  0x1c   : > { %p4151_p9 = pnand %p4150_p10, %p4146_p7 }
  0x1e   : > { %4154 = shalt.err (!%p4151_p9)
}
  0x1f   : > { %s4238_s16 = smov 8192   ;;  %s4239_s20 = smov 512  }
  0x20   : > { %3585 = dma.hbm_to_vmem [thread:$0]  (!%p4317_p13), %s99_s26, 16384, %s101_s28, %s88_s30, %s4238_s16, %s4238_s16, %s4239_s20  }
  0x21   : > { %p109_p2 = pnand %p3565_p0, %p108_p1 }
  0x22   : > { %s4338_s21 = sand.u32 (!%p109_p2), 1, %s4228_s7  }
  0x23   : > { %112 = sbr.rel (%p109_p2) target bundleno = 801 (0x321), region = 24  ;;  %s3566_s22 = sshll.u32 (!%p109_p2), %s4338_s21, 10 }
  0x24   : > { %s115_s23 = scalar_lea.sflag (!%p109_p2), [#allocation3], %s4338_s21  ;;  %s4344_s24 = scalar_lea.vmem (!%p109_p2), [#allocation2], %s3566_s22 }
  0x28   : > { %4215 = dma.done.wait (%p4295_p6), %s115_s23, 16384  }
  0x29   : > { %4217 = vsyncadd (%p4295_p6), %s115_s23, 4294950912  ;;  %v4351_v0 = vld [vmem:[%s4344_s24] sm:$0xff]  ;;  %v4354_v1 = vld [vmem:[%s4344_s24 + $0x8] sm:$0xff]  ;;  %s4528_s17 = scalar_lea.vmem [#allocation5], %s3566_s22  ;;  %s3577_s25 = sshll.u32 %s4273_s10, 10 }
  0x2a   : > { %v4357_v2 = vld [vmem:[%s4344_s24 + $0x10] sm:$0xff]  ;;  %v268_v3 = vmin.f32 %v4351_v0, 20.0  ;;  %v269_v4 = vmin.f32 %v4354_v1, 20.0  ;;  %v4363_v6 = vld [vmem:[%s4344_s24 + $0x18] sm:$0xff]  ;;  %v4366_v7 = vld [vmem:[%s4344_s24 + $0x20] sm:$0xff]  ;;  %vm908_vm4 = vcmp.gt.f32.partialorder %v4351_v0, 20.0  ;;  %s3481_s28 = scalar_lea.hbm %s8465_s1, %s3577_s25 }
  0x2b   : > { %v270_v5 = vmin.f32 %v4357_v2, 20.0  ;;  %v271_v8 = vmin.f32 %v4363_v6, 20.0  ;;  %v272_v9 = vmin.f32 %v4366_v7, 20.0  ;;  %v4371_v10 = vld [vmem:[%s4344_s24 + $0x28] sm:$0xff]  ;;  %v4374_v11 = vld [vmem:[%s4344_s24 + $0x30] sm:$0xff]  ;;  %v4377_v12 = vld [vmem:[%s4344_s24 + $0x38] sm:$0xff] }
  0x2c   : > { %v396_v13 = vmul.f32 1.442695, %v268_v3  ;;  %v398_v14 = vmul.f32 1.442695, %v269_v4  ;;  %v273_v17 = vmin.f32 %v4371_v10, 20.0  ;;  %v274_v18 = vmin.f32 %v4374_v11, 20.0 }
  0x2d   : > { %v400_v15 = vmul.f32 1.442695, %v270_v5  ;;  %v402_v16 = vmul.f32 1.442695, %v271_v8  ;;  %v4382_v19 = vld [vmem:[%s4344_s24 + $0x40] sm:$0xff]  ;;  %v4385_v20 = vld [vmem:[%s4344_s24 + $0x48] sm:$0xff] }
  0x2e   : > { %3628 = vpow2.f32 %v396_v13  ;;  %v404_v21 = vmul.f32 1.442695, %v272_v9  ;;  %v275_v22 = vmin.f32 %v4377_v12, 20.0  ;;  %v4389_v23 = vld [vmem:[%s4344_s24 + $0x50] sm:$0xff]  ;;  %v406_v24 = vmul.f32 1.442695, %v273_v17 }
  0x2f   : > { %3630 = vpow2.f32 %v398_v14  ;;  %v276_v25 = vmin.f32 %v4382_v19, 20.0  ;;  %v277_v26 = vmin.f32 %v4385_v20, 20.0  ;;  %v408_v27 = vmul.f32 1.442695, %v274_v18  ;;  %s3482_s29 = sshll.u32 %s4528_s17, 4  ;;  %s3484_s10 = sshll.u32 %s3481_s28, 4  ;;  %s3483_s29 = int_to_ptr.vmem [resolvable:$true] %s3482_s29  ;;  %s3485_s10 = int_to_ptr.hbm [resolvable:$true] %s3484_s10 }
  0x30   : > { %3632 = vpow2.f32 %v400_v15  ;;  %v278_v28 = vmin.f32 %v4389_v23, 20.0  ;;  %v410_v29 = vmul.f32 1.442695, %v275_v22  ;;  %vm909_vm8 = vcmp.gt.f32.partialorder %v4354_v1, 20.0  ;;  %s3469_s30 = scalar_lea.sflag [#allocation4], %s4338_s21  ;;  %s4184_s2 = sshra.s32 %s3485_s10, 4  ;;  %s4185_s2 = int_to_ptr.hbm [resolvable:$true] %s4184_s2 }
  0x31   : > { %3634 = vpow2.f32 %v402_v16  ;;  %v412_v31 = vmul.f32 1.442695, %v276_v25  ;;  %v414_v34 = vmul.f32 1.442695, %v277_v26  ;;  %s4186_s3 = scalar_lea.hbm %s4185_s2, 1024  ;;  %s4190_s11 = scalar_lea.hbm %s8465_s1, 2048 }
  0x32   : > { %3636 = vpow2.f32 %v404_v21  ;;  %v416_v37 = vmul.f32 1.442695, %v278_v28  ;;  %p4187_p6 = scmp.ne.s32.totalorder %s4185_s2, %s4186_s3  ;;  %p4191_p0 = scmp.lt.s32.totalorder %s4185_s2, %s8465_s1 }
  0x33   : > { %3638 = vpow2.f32 %v406_v24  ;;  %p4192_p1 = scmp.lt.s32.totalorder %s4190_s11, %s4186_s3 }
  0x34   : > { %v3629_v30 = vpop.eup %3628  ;;  %3640 = vpow2.f32 %v408_v27  ;;  %p4188_p9 = pnand %p4187_p6, %p4302_p11 }
  0x35   : > { %v3631_v32 = vpop.eup %3630  ;;  %v652_v33 = vadd.f32 2.0, %v3629_v30  ;;  %3642 = vpow2.f32 %v410_v29  ;;  %v4647_v29 = vld [vmem:[%s4344_s24 + $0x60] sm:$0xff]  ;;  %p4193_p3 = por %p4192_p1, %p4191_p0 }
  0x36   : > { %v3633_v35 = vpop.eup %3632  ;;  %v653_v36 = vadd.f32 2.0, %v3631_v32  ;;  %3644 = vpow2.f32 %v412_v31  ;;  %p4189_p13 = pneg %p4188_p9 }
  0x37   : > { %v3635_v38 = vpop.eup %3634  ;;  %v780_v39 = vmul.f32 %v3629_v30, %v652_v33  ;;  %v654_v40 = vadd.f32 2.0, %v3633_v35  ;;  %3646 = vpow2.f32 %v414_v34 }
  0x38   : > { %v781_v41 = vmul.f32 %v3631_v32, %v653_v36  ;;  %v655_v42 = vadd.f32 2.0, %v3635_v38  ;;  %v3637_v43 = vpop.eup %3636  ;;  %3648 = vpow2.f32 %v416_v37  ;;  %p4194_p4 = pnand %p4193_p3, %p4189_p13 }
  0x39   : > { %v4394_v44 = vadd.f32 2.0, %v780_v39  ;;  %v782_v45 = vmul.f32 %v3633_v35, %v654_v40  ;;  %v3639_v46 = vpop.eup %3638  ;;  %v656_v55 = vadd.f32 2.0, %v3637_v43  ;;  %v4412_v58 = vmul.f32 %v780_v39, %v4351_v0  ;;  %v4561_v40 = vld [vmem:[%s4344_s24 + $0x58] sm:$0xff] }
  0x3a   : > { %v4396_v47 = vadd.f32 2.0, %v781_v41  ;;  %v783_v48 = vmul.f32 %v3635_v38, %v655_v42  ;;  %v4400_v50 = vpop.eup %3640  ;;  %v657_v56 = vadd.f32 2.0, %v3639_v46  ;;  %v4415_v59 = vmul.f32 %v781_v41, %v4354_v1 }
  0x3b   : > { %3650 = vrcp.f32 %v4394_v44  ;;  %v1303_v49 = vand.u32 2147483648, %v4394_v44  ;;  %v1301_v51 = vand.u32 2147483647, %v4394_v44  ;;  %v4404_v52 = vpop.eup %3642  ;;  %v4407_v54 = vadd.f32 2.0, %v782_v45 }
  0x3c   : > { %3652 = vrcp.f32 %v4396_v47  ;;  %v1316_v53 = vand.u32 2147483647, %v4396_v47  ;;  %v4409_v57 = vpop.eup %3644  ;;  %v1318_v60 = vand.u32 2147483648, %v4396_v47  ;;  %v4418_v61 = vadd.f32 2.0, %v783_v48 }
  0x3d   : > { %v4420_v62 = vpop.eup %3646  ;;  %vm1297_vm0 = vweird.f32 %v4394_v44  ;;  %v1304_v63 = vor.u32 1.1754944e-38, %v1303_v49  ;;  %vm1312_vm1 = vweird.f32 %v4396_v47  ;;  %3654 = vrcp.f32 %v4407_v54 }
  0x3e   : > { %v4425_v3 = vpop.eup %3648  ;;  %vm4427_vm2 = vcmp.eq.f32.partialorder %v1301_v51, 8.507059e+37  ;;  %v4432_v5 = vmul.f32 %v782_v45, %v4357_v2  ;;  %v1331_v8 = vand.u32 2147483647, %v4407_v54  ;;  %v1333_v9 = vand.u32 2147483648, %v4407_v54 }
  0x3f   : > { %3656 = vrcp.f32 %v4418_v61  ;;  %vm4437_vm3 = vcmp.eq.f32.partialorder %v1316_v53, 8.507059e+37  ;;  %v1346_v15 = vand.u32 2147483647, %v4418_v61  ;;  %v784_v16 = vmul.f32 %v3637_v43, %v656_v55 }
  0x40   : > { %v4442_v17 = vmul.f32 %v3639_v46, %v657_v56  ;;  %v1319_v22 = vor.u32 1.1754944e-38, %v1318_v60  ;;  %v4446_v24 = vmul.f32 %v783_v48, %v4363_v6  ;;  %v1348_v25 = vand.u32 2147483648, %v4418_v61 }
  0x41   : > { %v3651_v13 = vpop.eup %3650  ;;  %vm1327_vm5 = vweird.f32 %v4407_v54  ;;  %vm1342_vm6 = vweird.f32 %v4418_v61  ;;  %v4453_v27 = vadd.f32 2.0, %v784_v16  ;;  %vm4456_vm9 = vcmp.eq.f32.partialorder %v1331_v8, 8.507059e+37 }
  0x42   : > { %v3653_v18 = vpop.eup %3652  ;;  %v1293_v21 = vmul.f32 %v3651_v13, %v4394_v44  ;;  %vm1298_vm7 = vweird.f32 %v3651_v13  ;;  %v1334_v30 = vor.u32 1.1754944e-38, %v1333_v9  ;;  %v4461_v31 = vadd.f32 2.0, %v4442_v17 }
  0x43   : > { %v1308_v26 = vmul.f32 %v3653_v18, %v4396_v47  ;;  %v3655_v32 = vpop.eup %3654  ;;  %vm1313_vm10 = vweird.f32 %v3653_v18  ;;  %vm4463_vm11 = vcmp.eq.f32.partialorder %v1346_v15, 8.507059e+37  ;;  %3658 = vrcp.f32 %v4453_v27  ;;  %vm4473_vm12 = vmor %vm1297_vm0, %vm1298_vm7 }
  0x44   : > { %v1294_v28 = vsub.f32 1.0, %v1293_v21  ;;  %v1323_v37 = vmul.f32 %v3655_v32, %v4407_v54  ;;  %v1349_v38 = vor.u32 1.1754944e-38, %v1348_v25  ;;  %v1363_v39 = vand.u32 2147483648, %v4453_v27  ;;  %vm4486_vm14 = vmor %vm1312_vm1, %vm1313_vm10 }
  0x45   : > { %v1309_v33 = vsub.f32 1.0, %v1308_v26  ;;  %v3657_v35 = vpop.eup %3656  ;;  %v4480_v43 = vmul.f32 %v784_v16, %v4366_v7  ;;  %v658_v45 = vadd.f32 2.0, %v4400_v50  ;;  %vm1328_vm15 = vweird.f32 %v3655_v32 }
  0x46   : > { %v1295_v36 = vmul.f32 %v3651_v13, %v1294_v28  ;;  %v1338_v42 = vmul.f32 %v3657_v35, %v4418_v61  ;;  %v1324_v48 = vsub.f32 1.0, %v1323_v37  ;;  %vm911_vm0 = vcmp.gt.f32.partialorder %v4363_v6, 20.0  ;;  %vm4502_vm1 = vmor %vm1327_vm5, %vm1328_vm15 }
  0x47   : > { %v1310_v41 = vmul.f32 %v3653_v18, %v1309_v33  ;;  %3660 = vrcp.f32 %v4461_v31  ;;  %vm1343_vm7 = vweird.f32 %v3657_v35  ;;  %vm1357_vm13 = vweird.f32 %v4453_v27 }
  0x48   : > { %v1296_v46 = vadd.f32 %v3651_v13, %v1295_v36  ;;  %v1339_v51 = vsub.f32 1.0, %v1338_v42  ;;  %v1325_v55 = vmul.f32 %v3655_v32, %v1324_v48  ;;  %v1361_v47 = vand.u32 2147483647, %v4453_v27 }
  0x49   : > { %v1311_v49 = vadd.f32 %v3653_v18, %v1310_v41  ;;  %v1364_v56 = vor.u32 1.1754944e-38, %v1363_v39  ;;  %v3659_v60 = vpop.eup %3658  ;;  %vm1372_vm10 = vweird.f32 %v4461_v31  ;;  %v1376_v26 = vand.u32 2147483647, %v4461_v31 }
  0x4a   : > { %v1300_v53 = vsel %vm4473_vm12, %v3651_v13, %v1296_v46  ;;  %v1340_v16 = vmul.f32 %v3657_v35, %v1339_v51  ;;  %v1326_v4 = vadd.f32 %v3655_v32, %v1325_v55  ;;  %v1353_v54 = vmul.f32 %v3659_v60, %v4453_v27 }
  0x4b   : > { %v1305_v8 = vsel %vm4427_vm2, %v1304_v63, %v1300_v53  ;;  %v1315_v9 = vsel %vm4486_vm14, %v3653_v18, %v1311_v49  ;;  %vm4513_vm2 = vmor %vm1342_vm6, %vm1343_vm7  ;;  %v1378_v39 = vand.u32 2147483648, %v4461_v31  ;;  %vm8489_vm6 = vcmp.gt.f32.partialorder %v4357_v2, 20.0 }
  0x4c   : > { %v1306_v13 = vmul.f32 %v1305_v8, %v4412_v58  ;;  %v1320_v21 = vsel %vm4437_vm3, %v1319_v22, %v1315_v9  ;;  %v1341_v25 = vadd.f32 %v3657_v35, %v1340_v16  ;;  %v786_v58 = vmul.f32 %v4400_v50, %v658_v45 }
  0x4d   : > { %v1321_v18 = vmul.f32 %v1320_v21, %v4415_v59  ;;  %v3661_v28 = vpop.eup %3660  ;;  %v1330_v61 = vsel %vm4502_vm1, %v3655_v32, %v1326_v4  ;;  %v1354_v22 = vsub.f32 1.0, %v1353_v54  ;;  %vm1358_vm3 = vweird.f32 %v3659_v60 }
  0x4e   : > { %v3212_v14 = vsel %vm908_vm4, %v4351_v0, %v1306_v13  ;;  %v1335_v59 = vsel %vm4456_vm9, %v1334_v30, %v1330_v61  ;;  %v1345_v0 = vsel %vm4513_vm2, %v3657_v35, %v1341_v25  ;;  %v1368_v32 = vmul.f32 %v3661_v28, %v4461_v31  ;;  %vm4547_vm4 = vmor %vm1357_vm13, %vm1358_vm3 }
  0x4f   : > { %3340 = vst [vmem:[%s4528_s17] sm:$0xff] %v3212_v14  ;;  %v3213_v50 = vsel %vm909_vm8, %v4354_v1, %v1321_v18  ;;  %v1336_v33 = vmul.f32 %v1335_v59, %v4432_v5  ;;  %v1350_v36 = vsel %vm4463_vm11, %v1349_v38, %v1345_v0  ;;  %v1355_v37 = vmul.f32 %v3659_v60, %v1354_v22 }
  0x50   : > { %3341 = vst [vmem:[%s4528_s17 + $0x8] sm:$0xff] %v3213_v50  ;;  %v1351_v1 = vmul.f32 %v1350_v36, %v4446_v24  ;;  %v1369_v30 = vsub.f32 1.0, %v1368_v32  ;;  %vm1373_vm5 = vweird.f32 %v3661_v28  ;;  %v1170_v35 = vadd.f32 2.0, %v786_v58 }
  0x51   : > { %v3214_v5 = vsel %vm8489_vm6, %v4357_v2, %v1336_v33  ;;  %v1356_v34 = vadd.f32 %v3659_v60, %v1355_v37  ;;  %vm1362_vm8 = vcmp.eq.f32.partialorder %v1361_v47, 8.507059e+37  ;;  %v659_v38 = vadd.f32 2.0, %v4404_v52  ;;  %vm4571_vm11 = vmor %vm1372_vm10, %vm1373_vm5 }
  0x52   : > { %3342 = vst [vmem:[%s4528_s17 + $0x10] sm:$0xff] %v3214_v5  ;;  %v3215_v24 = vsel %vm911_vm0, %v4363_v6, %v1351_v1  ;;  %vm912_vm9 = vcmp.gt.f32.partialorder %v4366_v7, 20.0  ;;  %v1370_v27 = vmul.f32 %v3661_v28, %v1369_v30  ;;  %3662 = vrcp.f32 %v1170_v35 }
  0x53   : > { %3343 = vst [vmem:[%s4528_s17 + $0x18] sm:$0xff] %v3215_v24  ;;  %v1360_v41 = vsel %vm4547_vm4, %v3659_v60, %v1356_v34  ;;  %v1041_v2 = vmul.f32 %v4442_v17, %v4371_v10  ;;  %v1379_v6 = vor.u32 1.1754944e-38, %v1378_v39  ;;  %v787_v45 = vmul.f32 %v4404_v52, %v659_v38 }
  0x54   : > { %v1365_v46 = vsel %vm1362_vm8, %v1364_v56, %v1360_v41  ;;  %v1371_v44 = vadd.f32 %v3661_v28, %v1370_v27  ;;  %vm1377_vm12 = vcmp.eq.f32.partialorder %v1376_v26, 8.507059e+37  ;;  %v660_v48 = vadd.f32 2.0, %v4409_v57 }
  0x55   : > { %v1366_v49 = vmul.f32 %v1365_v46, %v4480_v43  ;;  %v1391_v51 = vand.u32 2147483647, %v1170_v35  ;;  %v279_v17 = vmin.f32 %v4561_v40, 20.0  ;;  %v4581_v53 = vadd.f32 2.0, %v787_v45 }
  0x56   : > { %v1375_v31 = vsel %vm4571_vm11, %v3661_v28, %v1371_v44  ;;  %v788_v55 = vmul.f32 %v4409_v57, %v660_v48  ;;  %v661_v52 = vadd.f32 2.0, %v4420_v62  ;;  %vm913_vm13 = vcmp.gt.f32.partialorder %v4371_v10, 20.0 }
  0x57   : > { %v3216_v47 = vsel %vm912_vm9, %v4366_v7, %v1366_v49  ;;  %v1380_v56 = vsel %vm1377_vm12, %v1379_v6, %v1375_v31  ;;  %v662_v43 = vadd.f32 2.0, %v4425_v3  ;;  %v1393_v9 = vand.u32 2147483648, %v1170_v35 }
  0x58   : > { %v3663_v60 = vpop.eup %3662  ;;  %3344 = vst [vmem:[%s4528_s17 + $0x20] sm:$0xff] %v3216_v47  ;;  %v1381_v8 = vmul.f32 %v1380_v56, %v1041_v2  ;;  %3664 = vrcp.f32 %v4581_v53  ;;  %v1042_v57 = vmul.f32 %v786_v58, %v4374_v11  ;;  %vm1387_vm14 = vweird.f32 %v1170_v35 }
  0x59   : > { %v1383_v15 = vmul.f32 %v3663_v60, %v1170_v35  ;;  %v418_v16 = vmul.f32 1.442695, %v279_v17  ;;  %vm914_vm15 = vcmp.gt.f32.partialorder %v4374_v11, 20.0  ;;  %vm4595_vm0 = vcmp.eq.f32.partialorder %v1391_v51, 8.507059e+37 }
  0x5a   : > { %v3217_v13 = vsel %vm913_vm13, %v4371_v10, %v1381_v8  ;;  %v4599_v21 = vadd.f32 2.0, %v788_v55  ;;  %v789_v4 = vmul.f32 %v4420_v62, %v661_v52  ;;  %vm1388_vm7 = vweird.f32 %v3663_v60  ;;  %v4672_v52 = vld [vmem:[%s4344_s24 + $0x68] sm:$0xff] }
  0x5b   : > { %3345 = vst [vmem:[%s4528_s17 + $0x28] sm:$0xff] %v3217_v13  ;;  %v1384_v63 = vsub.f32 1.0, %v1383_v15  ;;  %v1406_v54 = vand.u32 2147483647, %v4581_v53  ;;  %v4605_v18 = vmul.f32 %v4425_v3, %v662_v43  ;;  %v1394_v25 = vor.u32 1.1754944e-38, %v1393_v9  ;;  %vm4617_vm10 = vmor %vm1387_vm14, %vm1388_vm7 }
  0x5c   : > { %v4608_v10 = vmul.f32 %v787_v45, %v4377_v12  ;;  %v1408_v26 = vand.u32 2147483648, %v4581_v53  ;;  %3666 = vrcp.f32 %v4599_v21  ;;  %vm1402_vm1 = vweird.f32 %v4581_v53 }
  0x5d   : > { %v1385_v58 = vmul.f32 %v3663_v60, %v1384_v63  ;;  %v1421_v62 = vand.u32 2147483647, %v4599_v21  ;;  %v4614_v28 = vadd.f32 2.0, %v789_v4  ;;  %v4622_v61 = vmul.f32 %v788_v55, %v4382_v19 }
  0x5e   : > { %v3665_v14 = vpop.eup %3664  ;;  %v1423_v22 = vand.u32 2147483648, %v4599_v21  ;;  %v4626_v50 = vadd.f32 2.0, %v4605_v18  ;;  %3668 = vpow2.f32 %v418_v16  ;;  %vm4629_vm2 = vcmp.eq.f32.partialorder %v1406_v54, 8.507059e+37 }
  0x5f   : > { %v1386_v59 = vadd.f32 %v3663_v60, %v1385_v58  ;;  %v1398_v0 = vmul.f32 %v3665_v14, %v4581_v53  ;;  %3670 = vrcp.f32 %v4614_v28  ;;  %vm915_vm3 = vcmp.gt.f32.partialorder %v4377_v12, 20.0 }
  0x60   : > { %v1409_v33 = vor.u32 1.1754944e-38, %v1408_v26  ;;  %vm1417_vm4 = vweird.f32 %v4599_v21  ;;  %v4637_v36 = vmul.f32 %v789_v4, %v4385_v20  ;;  %3672 = vrcp.f32 %v4626_v50 }
  0x61   : > { %v1390_v37 = vsel %vm4617_vm10, %v3663_v60, %v1386_v59  ;;  %v1399_v39 = vsub.f32 1.0, %v1398_v0  ;;  %vm1403_vm5 = vweird.f32 %v3665_v14  ;;  %vm4642_vm6 = vcmp.eq.f32.partialorder %v1421_v62, 8.507059e+37  ;;  %v4710_v62 = vld [vmem:[%s4344_s24 + $0x70] sm:$0xff] }
  0x62   : > { %v3667_v30 = vpop.eup %3666  ;;  %v1395_v35 = vsel %vm4595_vm0, %v1394_v25, %v1390_v37  ;;  %v1424_v5 = vor.u32 1.1754944e-38, %v1423_v22  ;;  %vm1432_vm8 = vweird.f32 %v4614_v28  ;;  %v1436_v34 = vand.u32 2147483647, %v4614_v28  ;;  %vm4657_vm9 = vmor %vm1402_vm1, %vm1403_vm5 }
  0x63   : > { %v1396_v38 = vmul.f32 %v1395_v35, %v1042_v57  ;;  %v1400_v24 = vmul.f32 %v3665_v14, %v1399_v39  ;;  %v1413_v27 = vmul.f32 %v3667_v30, %v4599_v21  ;;  %v1438_v41 = vand.u32 2147483648, %v4614_v28  ;;  %v4745_v35 = vld [vmem:[%s4344_s24 + $0x88] sm:$0xff] }
  0x64   : > { %v3669_v2 = vpop.eup %3668  ;;  %vm916_vm11 = vcmp.gt.f32.partialorder %v4382_v19, 20.0  ;;  %vm1418_vm12 = vweird.f32 %v3667_v30  ;;  %vm1447_vm13 = vweird.f32 %v4626_v50  ;;  %v1451_v6 = vand.u32 2147483647, %v4626_v50 }
  0x65   : > { %v280_v45 = vmin.f32 %v4647_v29, 20.0  ;;  %v3671_v46 = vpop.eup %3670  ;;  %v3218_v44 = vsel %vm914_vm15, %v4374_v11, %v1396_v38  ;;  %v1401_v48 = vadd.f32 %v3665_v14, %v1400_v24  ;;  %v1414_v49 = vsub.f32 1.0, %v1413_v27  ;;  %vm4682_vm0 = vmor %vm1417_vm4, %vm1418_vm12 }
  0x66   : > { %v663_v51 = vadd.f32 2.0, %v3669_v2  ;;  %v3673_v17 = vpop.eup %3672  ;;  %3346 = vst [vmem:[%s4528_s17 + $0x30] sm:$0xff] %v3218_v44  ;;  %v1428_v31 = vmul.f32 %v3671_v46, %v4614_v28  ;;  %vm1433_vm14 = vweird.f32 %v3671_v46  ;;  %v1453_v53 = vand.u32 2147483648, %v4626_v50 }
  0x67   : > { %v420_v55 = vmul.f32 1.442695, %v280_v45  ;;  %v1405_v47 = vsel %vm4657_vm9, %v3665_v14, %v1401_v48  ;;  %v1415_v56 = vmul.f32 %v3667_v30, %v1414_v49  ;;  %v1443_v43 = vmul.f32 %v3673_v17, %v4626_v50  ;;  %vm4705_vm1 = vmor %vm1432_vm8, %vm1433_vm14  ;;  %v4713_v14 = vld [vmem:[%s4344_s24 + $0x78] sm:$0xff] }
  0x68   : > { %vm1448_vm15 = vweird.f32 %v3673_v17  ;;  %v1410_v11 = vsel %vm4629_vm2, %v1409_v33, %v1405_v47  ;;  %v1429_v8 = vsub.f32 1.0, %v1428_v31  ;;  %v4686_v9 = vmul.f32 %v3669_v2, %v663_v51 }
  0x69   : > { %3674 = vpow2.f32 %v420_v55  ;;  %v1411_v57 = vmul.f32 %v1410_v11, %v4608_v10  ;;  %v1416_v15 = vadd.f32 %v3667_v30, %v1415_v56  ;;  %v1444_v16 = vsub.f32 1.0, %v1443_v43  ;;  %vm4721_vm10 = vmor %vm1447_vm13, %vm1448_vm15 }
  0x6a   : > { %v281_v13 = vmin.f32 %v4672_v52, 20.0  ;;  %v1430_v7 = vmul.f32 %v3671_v46, %v1429_v8  ;;  %vm4690_vm7 = vcmp.eq.f32.partialorder %v1436_v34, 8.507059e+37  ;;  %v1439_v4 = vor.u32 1.1754944e-38, %v1438_v41 }
  0x6b   : > { %v4695_v63 = vadd.f32 2.0, %v4686_v9  ;;  %v3219_v54 = vsel %vm915_vm3, %v4377_v12, %v1411_v57  ;;  %v1420_v25 = vsel %vm4682_vm0, %v3667_v30, %v1416_v15  ;;  %v1445_v26 = vmul.f32 %v3673_v17, %v1444_v16  ;;  %v4742_v30 = vld [vmem:[%s4344_s24 + $0x80] sm:$0xff]  ;;  %v4771_v16 = vld [vmem:[%s4344_s24 + $0x90] sm:$0xff] }
  0x6c   : > { %v422_v58 = vmul.f32 1.442695, %v281_v13  ;;  %3347 = vst [vmem:[%s4528_s17 + $0x38] sm:$0xff] %v3219_v54  ;;  %v1425_v12 = vsel %vm4642_vm6, %v1424_v5, %v1420_v25  ;;  %v1431_v3 = vadd.f32 %v3671_v46, %v1430_v7  ;;  %v1454_v22 = vor.u32 1.1754944e-38, %v1453_v53 }
  0x6d   : > { %3676 = vrcp.f32 %v4695_v63  ;;  %v1426_v59 = vmul.f32 %v1425_v12, %v4622_v61  ;;  %v1046_v0 = vmul.f32 %v4605_v18, %v4389_v23  ;;  %v1446_v32 = vadd.f32 %v3673_v17, %v1445_v26 }
  0x6e   : > { %vm1452_vm2 = vcmp.eq.f32.partialorder %v1451_v6, 8.507059e+37  ;;  %v1435_v50 = vsel %vm4705_vm1, %v3671_v46, %v1431_v3  ;;  %3678 = vpow2.f32 %v422_v58  ;;  %v282_v37 = vmin.f32 %v4710_v62, 20.0 }
  0x6f   : > { %v3675_v33 = vpop.eup %3674  ;;  %v283_v39 = vmin.f32 %v4713_v14, 20.0  ;;  %v3220_v1 = vsel %vm916_vm11, %v4382_v19, %v1426_v59  ;;  %vm917_vm3 = vcmp.gt.f32.partialorder %v4385_v20, 20.0  ;;  %v1440_v18 = vsel %vm4690_vm7, %v1439_v4, %v1435_v50  ;;  %v4776_v4 = vld [vmem:[%s4344_s24 + $0x98] sm:$0xff] }
  0x70   : > { %v1450_v61 = vsel %vm4721_vm10, %v3673_v17, %v1446_v32  ;;  %3348 = vst [vmem:[%s4528_s17 + $0x40] sm:$0xff] %v3220_v1  ;;  %v1441_v5 = vmul.f32 %v1440_v18, %v4637_v36  ;;  %vm918_vm4 = vcmp.gt.f32.partialorder %v4389_v23, 20.0  ;;  %v664_v19 = vadd.f32 2.0, %v3675_v33  ;;  %v4791_v32 = vld [vmem:[%s4344_s24 + $0xa0] sm:$0xff] }
  0x71   : > { %v1455_v34 = vsel %vm1452_vm2, %v1454_v22, %v1450_v61  ;;  %vm1462_vm5 = vweird.f32 %v4695_v63  ;;  %v424_v24 = vmul.f32 1.442695, %v282_v37  ;;  %v426_v27 = vmul.f32 1.442695, %v283_v39 }
  0x72   : > { %v1456_v38 = vmul.f32 %v1455_v34, %v1046_v0  ;;  %v3221_v2 = vsel %vm917_vm3, %v4385_v20, %v1441_v5  ;;  %v792_v42 = vmul.f32 %v3675_v33, %v664_v19  ;;  %v284_v6 = vmin.f32 %v4742_v30, 20.0 }
  0x73   : > { %v3677_v41 = vpop.eup %3676  ;;  %v285_v45 = vmin.f32 %v4745_v35, 20.0  ;;  %3349 = vst [vmem:[%s4528_s17 + $0x48] sm:$0xff] %v3221_v2  ;;  %v1466_v44 = vand.u32 2147483647, %v4695_v63  ;;  %3680 = vpow2.f32 %v424_v24  ;;  %v1468_v49 = vand.u32 2147483648, %v4695_v63 }
  0x74   : > { %v3222_v36 = vsel %vm918_vm4, %v4389_v23, %v1456_v38  ;;  %v1458_v46 = vmul.f32 %v3677_v41, %v4695_v63  ;;  %v3679_v48 = vpop.eup %3678  ;;  %vm1463_vm6 = vweird.f32 %v3677_v41  ;;  %v1176_v51 = vadd.f32 2.0, %v792_v42 }
  0x75   : > { %3350 = vst [vmem:[%s4528_s17 + $0x50] sm:$0xff] %v3222_v36  ;;  %3682 = vpow2.f32 %v426_v27  ;;  %v665_v17 = vadd.f32 2.0, %v3679_v48  ;;  %v428_v31 = vmul.f32 1.442695, %v284_v6  ;;  %v430_v53 = vmul.f32 1.442695, %v285_v45  ;;  %vm4762_vm8 = vmor %vm1462_vm5, %vm1463_vm6 }
  0x76   : > { %v1459_v20 = vsub.f32 1.0, %v1458_v46  ;;  %3684 = vrcp.f32 %v1176_v51  ;;  %v1481_v55 = vand.u32 2147483647, %v1176_v51  ;;  %v1483_v47 = vand.u32 2147483648, %v1176_v51 }
  0x77   : > { %v793_v56 = vmul.f32 %v3679_v48, %v665_v17  ;;  %3686 = vpow2.f32 %v428_v31  ;;  %v1469_v11 = vor.u32 1.1754944e-38, %v1468_v49  ;;  %v1047_v8 = vmul.f32 %v4686_v9, %v4561_v40 }
  0x78   : > { %v1460_v23 = vmul.f32 %v3677_v41, %v1459_v20  ;;  %3688 = vpow2.f32 %v430_v53  ;;  %vm1467_vm9 = vcmp.eq.f32.partialorder %v1466_v44, 8.507059e+37  ;;  %vm919_vm11 = vcmp.gt.f32.partialorder %v4561_v40, 20.0 }
  0x79   : > { %v3681_v60 = vpop.eup %3680  ;;  %v4768_v15 = vadd.f32 2.0, %v793_v56  ;;  %v1048_v7 = vmul.f32 %v792_v42, %v4647_v29  ;;  %vm1477_vm12 = vweird.f32 %v1176_v51  ;;  %vm4780_vm13 = vcmp.eq.f32.partialorder %v1481_v55, 8.507059e+37 }
  0x7a   : > { %v1461_v57 = vadd.f32 %v3677_v41, %v1460_v23  ;;  %v666_v21 = vadd.f32 2.0, %v3681_v60  ;;  %v1484_v54 = vor.u32 1.1754944e-38, %v1483_v47  ;;  %v286_v12 = vmin.f32 %v4771_v16, 20.0  ;;  %v4931_v47 = vld [vmem:[%s4344_s24 + $0xa8] sm:$0xff] }
  0x7b   : > { %v3683_v13 = vpop.eup %3682  ;;  %3690 = vrcp.f32 %v4768_v15  ;;  %v4787_v59 = vmul.f32 %v793_v56, %v4672_v52  ;;  %v287_v0 = vmin.f32 %v4776_v4, 20.0  ;;  %vm920_vm14 = vcmp.gt.f32.partialorder %v4647_v29, 20.0 }
  0x7c   : > { %v1465_v63 = vsel %vm4762_vm8, %v3677_v41, %v1461_v57  ;;  %v3685_v25 = vpop.eup %3684  ;;  %v794_v26 = vmul.f32 %v3681_v60, %v666_v21  ;;  %v667_v58 = vadd.f32 2.0, %v3683_v13  ;;  %v1496_v50 = vand.u32 2147483647, %v4768_v15 }
  0x7d   : > { %v1470_v10 = vsel %vm1467_vm9, %v1469_v11, %v1465_v63  ;;  %v3687_v3 = vpop.eup %3686  ;;  %v1473_v22 = vmul.f32 %v3685_v25, %v1176_v51  ;;  %v1498_v37 = vand.u32 2147483648, %v4768_v15  ;;  %vm1478_vm15 = vweird.f32 %v3685_v25 }
  0x7e   : > { %v1471_v28 = vmul.f32 %v1470_v10, %v1047_v8  ;;  %v3689_v33 = vpop.eup %3688  ;;  %v4796_v39 = vadd.f32 2.0, %v794_v26  ;;  %v795_v1 = vmul.f32 %v3683_v13, %v667_v58  ;;  %v668_v5 = vadd.f32 2.0, %v3687_v3  ;;  %vm4808_vm7 = vmor %vm1477_vm12, %vm1478_vm15 }
  0x7f   : > { %v1474_v61 = vsub.f32 1.0, %v1473_v22  ;;  %vm1492_vm0 = vweird.f32 %v4768_v15  ;;  %v432_v34 = vmul.f32 1.442695, %v286_v12  ;;  %v288_v19 = vmin.f32 %v4791_v32, 20.0 }
  0x80   : > { %v3223_v18 = vsel %vm919_vm11, %v4561_v40, %v1471_v28  ;;  %3692 = vrcp.f32 %v4796_v39  ;;  %v4805_v27 = vadd.f32 2.0, %v795_v1  ;;  %v796_v41 = vmul.f32 %v3687_v3, %v668_v5 }
  0x81   : > { %3351 = vst [vmem:[%s4528_s17 + $0x58] sm:$0xff] %v3223_v18  ;;  %v3691_v38 = vpop.eup %3690  ;;  %v1475_v24 = vmul.f32 %v3685_v25, %v1474_v61  ;;  %v669_v2 = vadd.f32 2.0, %v3689_v33  ;;  %vm4813_vm1 = vcmp.eq.f32.partialorder %v1496_v50, 8.507059e+37  ;;  %v1499_v45 = vor.u32 1.1754944e-38, %v1498_v37 }
  0x82   : > { %v1488_v42 = vmul.f32 %v3691_v38, %v4768_v15  ;;  %v1511_v36 = vand.u32 2147483647, %v4796_v39  ;;  %vm921_vm10 = vcmp.gt.f32.partialorder %v4672_v52, 20.0  ;;  %v4820_v44 = vmul.f32 %v794_v26, %v4710_v62 }
  0x83   : > { %v1476_v46 = vadd.f32 %v3685_v25, %v1475_v24  ;;  %v1513_v48 = vand.u32 2147483648, %v4796_v39  ;;  %3694 = vrcp.f32 %v4805_v27  ;;  %vm1493_vm2 = vweird.f32 %v3691_v38 }
  0x84   : > { %v1489_v49 = vsub.f32 1.0, %v1488_v42  ;;  %vm1507_vm3 = vweird.f32 %v4796_v39  ;;  %v4825_v51 = vadd.f32 2.0, %v796_v41  ;;  %v4830_v17 = vmul.f32 %v795_v1, %v4713_v14  ;;  %vm4843_vm5 = vmor %vm1492_vm0, %vm1493_vm2 }
  0x85   : > { %v1480_v20 = vsel %vm4808_vm7, %v3685_v25, %v1476_v46  ;;  %v4832_v31 = vmul.f32 %v3689_v33, %v669_v2  ;;  %3696 = vpow2.f32 %v432_v34  ;;  %vm4836_vm4 = vcmp.eq.f32.partialorder %v1511_v36, 8.507059e+37 }
  0x86   : > { %v3693_v53 = vpop.eup %3692  ;;  %v1485_v55 = vsel %vm4780_vm13, %v1484_v54, %v1480_v20  ;;  %v1490_v23 = vmul.f32 %v3691_v38, %v1489_v49  ;;  %3698 = vrcp.f32 %v4825_v51  ;;  %v1514_v60 = vor.u32 1.1754944e-38, %v1513_v48 }
  0x87   : > { %v1486_v56 = vmul.f32 %v1485_v55, %v1048_v7  ;;  %v1503_v11 = vmul.f32 %v3693_v53, %v4796_v39  ;;  %v1526_v8 = vand.u32 2147483647, %v4805_v27  ;;  %vm922_vm6 = vcmp.gt.f32.partialorder %v4710_v62, 20.0 }
  0x88   : > { %v1491_v57 = vadd.f32 %v3691_v38, %v1490_v23  ;;  %vm1508_vm8 = vweird.f32 %v3693_v53  ;;  %vm1522_vm9 = vweird.f32 %v4805_v27  ;;  %v1528_v13 = vand.u32 2147483648, %v4805_v27 }
  0x89   : > { %v3695_v7 = vpop.eup %3694  ;;  %v3224_v15 = vsel %vm920_vm14, %v4647_v29, %v1486_v56  ;;  %v1504_v21 = vsub.f32 1.0, %v1503_v11  ;;  %v1541_v63 = vand.u32 2147483647, %v4825_v51  ;;  %v4857_v9 = vadd.f32 2.0, %v4832_v31  ;;  %vm4877_vm13 = vmor %vm1507_vm3, %vm1508_vm8  ;;  %v4937_v56 = vld [vmem:[%s4344_s24 + $0xb0] sm:$0xff] }
  0x8a   : > { %3352 = vst [vmem:[%s4528_s17 + $0x60] sm:$0xff] %v3224_v15  ;;  %v1495_v54 = vsel %vm4843_vm5, %v3691_v38, %v1491_v57  ;;  %v1518_v25 = vmul.f32 %v3695_v7, %v4805_v27  ;;  %v1052_v10 = vmul.f32 %v796_v41, %v4742_v30  ;;  %v1543_v26 = vand.u32 2147483648, %v4825_v51 }
  0x8b   : > { %v3697_v58 = vpop.eup %3696  ;;  %v1500_v29 = vsel %vm4813_vm1, %v1499_v45, %v1495_v54  ;;  %v1505_v12 = vmul.f32 %v3693_v53, %v1504_v21  ;;  %vm923_vm11 = vcmp.gt.f32.partialorder %v4713_v14, 20.0  ;;  %vm4868_vm12 = vcmp.eq.f32.partialorder %v1526_v8, 8.507059e+37 }
  0x8c   : > { %3700 = vrcp.f32 %v4857_v9  ;;  %v3699_v28 = vpop.eup %3698  ;;  %v1501_v22 = vmul.f32 %v1500_v29, %v4787_v59  ;;  %v1519_v50 = vsub.f32 1.0, %v1518_v25  ;;  %vm1523_vm14 = vweird.f32 %v3695_v7 }
  0x8d   : > { %v1529_v37 = vor.u32 1.1754944e-38, %v1528_v13  ;;  %v1506_v1 = vadd.f32 %v3693_v53, %v1505_v12  ;;  %v1533_v18 = vmul.f32 %v3699_v28, %v4825_v51  ;;  %vm1537_vm15 = vweird.f32 %v4825_v51  ;;  %vm4895_vm7 = vmor %vm1522_vm9, %vm1523_vm14  ;;  %v4968_v12 = vld [vmem:[%s4344_s24 + $0xc0] sm:$0xff] }
  0x8e   : > { %vm4883_vm0 = vcmp.eq.f32.partialorder %v1541_v63, 8.507059e+37  ;;  %v3225_v59 = vsel %vm921_vm10, %v4672_v52, %v1501_v22  ;;  %v1520_v39 = vmul.f32 %v3695_v7, %v1519_v50  ;;  %v1544_v5 = vor.u32 1.1754944e-38, %v1543_v26 }
  0x8f   : > { %v670_v34 = vadd.f32 2.0, %v3697_v58  ;;  %3353 = vst [vmem:[%s4528_s17 + $0x68] sm:$0xff] %v3225_v59  ;;  %v1510_v38 = vsel %vm4877_vm13, %v3693_v53, %v1506_v1  ;;  %v1534_v41 = vsub.f32 1.0, %v1533_v18  ;;  %vm1538_vm1 = vweird.f32 %v3699_v28  ;;  %v4974_v18 = vld [vmem:[%s4344_s24 + $0xc8] sm:$0xff] }
  0x90   : > { %v434_v2 = vmul.f32 1.442695, %v287_v0  ;;  %v1515_v52 = vsel %vm4836_vm4, %v1514_v60, %v1510_v38  ;;  %v1521_v40 = vadd.f32 %v3695_v7, %v1520_v39  ;;  %vm1552_vm10 = vweird.f32 %v4857_v9  ;;  %vm4913_vm2 = vmor %vm1537_vm15, %vm1538_vm1  ;;  %v4946_v60 = vld [vmem:[%s4344_s24 + $0xb8] sm:$0xff] }
  0x91   : > { %v4904_v42 = vmul.f32 %v3697_v58, %v670_v34  ;;  %v1516_v27 = vmul.f32 %v1515_v52, %v4820_v44  ;;  %v1535_v45 = vmul.f32 %v3699_v28, %v1534_v41  ;;  %v436_v36 = vmul.f32 1.442695, %v288_v19 }
  0x92   : > { %v3701_v6 = vpop.eup %3700  ;;  %3702 = vpow2.f32 %v434_v2  ;;  %v1525_v0 = vsel %vm4895_vm7, %v3695_v7, %v1521_v40  ;;  %v1556_v44 = vand.u32 2147483647, %v4857_v9  ;;  %v1558_v49 = vand.u32 2147483648, %v4857_v9 }
  0x93   : > { %v1548_v48 = vmul.f32 %v3701_v6, %v4857_v9  ;;  %v3226_v19 = vsel %vm922_vm6, %v4710_v62, %v1516_v27  ;;  %v1530_v20 = vsel %vm4868_vm12, %v1529_v37, %v1525_v0  ;;  %v1536_v51 = vadd.f32 %v3699_v28, %v1535_v45  ;;  %v4995_v45 = vld [vmem:[%s4344_s24 + $0xd0] sm:$0xff] }
  0x94   : > { %v4926_v53 = vadd.f32 2.0, %v4904_v42  ;;  %3354 = vst [vmem:[%s4528_s17 + $0x70] sm:$0xff] %v3226_v19  ;;  %v1531_v55 = vmul.f32 %v1530_v20, %v4830_v17  ;;  %vm1553_vm3 = vweird.f32 %v3701_v6  ;;  %3704 = vpow2.f32 %v436_v36 }
  0x95   : > { %v1549_v23 = vsub.f32 1.0, %v1548_v48  ;;  %v1540_v62 = vsel %vm4913_vm2, %v3699_v28, %v1536_v51  ;;  %vm924_vm4 = vcmp.gt.f32.partialorder %v4742_v30, 20.0  ;;  %v1053_v13 = vmul.f32 %v4832_v31, %v4745_v35  ;;  %vm4954_vm5 = vmor %vm1552_vm10, %vm1553_vm3 }
  0x96   : > { %3706 = vrcp.f32 %v4926_v53  ;;  %v3227_v43 = vsel %vm923_vm11, %v4713_v14, %v1531_v55  ;;  %v1545_v17 = vsel %vm4883_vm0, %v1544_v5, %v1540_v62  ;;  %v1559_v7 = vor.u32 1.1754944e-38, %v1558_v49 }
  0x97   : > { %v1550_v11 = vmul.f32 %v3701_v6, %v1549_v23  ;;  %3355 = vst [vmem:[%s4528_s17 + $0x78] sm:$0xff] %v3227_v43  ;;  %v1546_v57 = vmul.f32 %v1545_v17, %v1052_v10  ;;  %v289_v15 = vmin.f32 %v4931_v47, 20.0  ;;  %vm1557_vm6 = vcmp.eq.f32.partialorder %v1556_v44, 8.507059e+37 }
  0x98   : > { %v3703_v8 = vpop.eup %3702  ;;  %v290_v54 = vmin.f32 %v4937_v56, 20.0  ;;  %vm925_vm8 = vcmp.gt.f32.partialorder %v4745_v35, 20.0  ;;  %v291_v9 = vmin.f32 %v4946_v60, 20.0  ;;  %vm1567_vm9 = vweird.f32 %v4926_v53 }
  0x99   : > { %v1551_v21 = vadd.f32 %v3701_v6, %v1550_v11  ;;  %v671_v63 = vadd.f32 2.0, %v3703_v8  ;;  %v3228_v25 = vsel %vm924_vm4, %v4742_v30, %v1546_v57  ;;  %v438_v31 = vmul.f32 1.442695, %v289_v15 }
  0x9a   : > { %v3705_v10 = vpop.eup %3704  ;;  %3356 = vst [vmem:[%s4528_s17 + $0x80] sm:$0xff] %v3228_v25  ;;  %v440_v29 = vmul.f32 1.442695, %v290_v54  ;;  %v442_v22 = vmul.f32 1.442695, %v291_v9  ;;  %v1573_v1 = vand.u32 2147483648, %v4926_v53  ;;  %v1054_v52 = vmul.f32 %v4904_v42, %v4771_v16 }
  0x9b   : > { %v1555_v26 = vsel %vm4954_vm5, %v3701_v6, %v1551_v21  ;;  %v799_v58 = vmul.f32 %v3703_v8, %v671_v63  ;;  %v672_v30 = vadd.f32 2.0, %v3705_v10  ;;  %3708 = vpow2.f32 %v438_v31 }
  0x9c   : > { %v3707_v3 = vpop.eup %3706  ;;  %v1560_v28 = vsel %vm1557_vm6, %v1559_v7, %v1555_v26  ;;  %v1571_v37 = vand.u32 2147483647, %v4926_v53  ;;  %3710 = vpow2.f32 %v440_v29  ;;  %v292_v39 = vmin.f32 %v4968_v12, 20.0 }
  0x9d   : > { %v1561_v33 = vmul.f32 %v1560_v28, %v1053_v13  ;;  %v1563_v50 = vmul.f32 %v3707_v3, %v4926_v53  ;;  %v1183_v61 = vadd.f32 2.0, %v799_v58  ;;  %v800_v59 = vmul.f32 %v3705_v10, %v672_v30 }
  0x9e   : > { %vm1568_vm11 = vweird.f32 %v3707_v3  ;;  %3712 = vpow2.f32 %v442_v22  ;;  %v293_v38 = vmin.f32 %v4974_v18, 20.0  ;;  %vm926_vm12 = vcmp.gt.f32.partialorder %v4771_v16, 20.0 }
  0x9f   : > { %v3229_v5 = vsel %vm925_vm8, %v4745_v35, %v1561_v33  ;;  %v1564_v34 = vsub.f32 1.0, %v1563_v50  ;;  %3714 = vrcp.f32 %v1183_v61  ;;  %v4982_v41 = vadd.f32 2.0, %v800_v59  ;;  %vm4989_vm13 = vmor %vm1567_vm9, %vm1568_vm11 }
  0xa0   : > { %3357 = vst [vmem:[%s4528_s17 + $0x88] sm:$0xff] %v3229_v5  ;;  %v1574_v40 = vor.u32 1.1754944e-38, %v1573_v1  ;;  %vm1572_vm14 = vcmp.eq.f32.partialorder %v1571_v37, 8.507059e+37  ;;  %v444_v27 = vmul.f32 1.442695, %v292_v39  ;;  %v4998_v0 = vmul.f32 %v799_v58, %v4776_v4 }
  0xa1   : > { %v1565_v24 = vmul.f32 %v3707_v3, %v1564_v34  ;;  %v3709_v2 = vpop.eup %3708  ;;  %3716 = vrcp.f32 %v4982_v41  ;;  %vm1582_vm15 = vweird.f32 %v1183_v61  ;;  %v446_v46 = vmul.f32 1.442695, %v293_v38 }
  0xa2   : > { %v3711_v36 = vpop.eup %3710  ;;  %v673_v42 = vadd.f32 2.0, %v3709_v2  ;;  %v1586_v49 = vand.u32 2147483647, %v1183_v61  ;;  %v1588_v19 = vand.u32 2147483648, %v1183_v61  ;;  %v294_v62 = vmin.f32 %v4995_v45, 20.0 }
  0xa3   : > { %v1566_v6 = vadd.f32 %v3707_v3, %v1565_v24  ;;  %v674_v20 = vadd.f32 2.0, %v3711_v36  ;;  %3718 = vpow2.f32 %v444_v27  ;;  %vm927_vm0 = vcmp.gt.f32.partialorder %v4776_v4, 20.0 }
  0xa4   : > { %v3713_v48 = vpop.eup %3712  ;;  %v801_v55 = vmul.f32 %v3709_v2, %v673_v42  ;;  %v1601_v8 = vand.u32 2147483647, %v4982_v41  ;;  %v1603_v57 = vand.u32 2147483648, %v4982_v41  ;;  %3720 = vpow2.f32 %v446_v46 }
  0xa5   : > { %v1570_v44 = vsel %vm4989_vm13, %v3707_v3, %v1566_v6  ;;  %v3715_v51 = vpop.eup %3714  ;;  %v675_v23 = vadd.f32 2.0, %v3713_v48  ;;  %v802_v11 = vmul.f32 %v3711_v36, %v674_v20  ;;  %v1056_v63 = vmul.f32 %v800_v59, %v4791_v32 }
  0xa6   : > { %v1575_v53 = vsel %vm1572_vm14, %v1574_v40, %v1570_v44  ;;  %v1578_v17 = vmul.f32 %v3715_v51, %v1183_v61  ;;  %v5006_v13 = vadd.f32 2.0, %v801_v55  ;;  %vm1583_vm7 = vweird.f32 %v3715_v51 }
  0xa7   : > { %v1576_v43 = vmul.f32 %v1575_v53, %v1054_v52  ;;  %v3717_v14 = vpop.eup %3716  ;;  %v5011_v21 = vadd.f32 2.0, %v802_v11  ;;  %v5017_v25 = vmul.f32 %v3713_v48, %v675_v23  ;;  %vm5019_vm1 = vcmp.eq.f32.partialorder %v1586_v49, 8.507059e+37  ;;  %vm5026_vm2 = vmor %vm1582_vm15, %vm1583_vm7 }
  0xa8   : > { %v1579_v15 = vsub.f32 1.0, %v1578_v17  ;;  %v1593_v54 = vmul.f32 %v3717_v14, %v4982_v41  ;;  %3722 = vrcp.f32 %v5006_v13  ;;  %v1589_v10 = vor.u32 1.1754944e-38, %v1588_v19 }
  0xa9   : > { %v3230_v7 = vsel %vm926_vm12, %v4771_v16, %v1576_v43  ;;  %vm928_vm10 = vcmp.gt.f32.partialorder %v4791_v32, 20.0  ;;  %3724 = vrcp.f32 %v5011_v21  ;;  %vm1597_vm3 = vweird.f32 %v4982_v41  ;;  %v3719_v29 = vpop.eup %3718 }
  0xaa   : > { %3358 = vst [vmem:[%s4528_s17 + $0x90] sm:$0xff] %v3230_v7  ;;  %v1580_v31 = vmul.f32 %v3715_v51, %v1579_v15  ;;  %v1594_v26 = vsub.f32 1.0, %v1593_v54  ;;  %vm1598_vm4 = vweird.f32 %v3717_v14  ;;  %vm5031_vm5 = vcmp.eq.f32.partialorder %v1601_v8, 8.507059e+37  ;;  %v3721_v33 = vpop.eup %3720 }
  0xab   : > { %v1604_v28 = vor.u32 1.1754944e-38, %v1603_v57  ;;  %v5036_v30 = vmul.f32 %v801_v55, %v4931_v47  ;;  %v448_v22 = vmul.f32 1.442695, %v294_v62  ;;  %v1616_v37 = vand.u32 2147483647, %v5006_v13  ;;  %vm5047_vm6 = vmor %vm1597_vm3, %vm1598_vm4 }
  0xac   : > { %v1581_v3 = vadd.f32 %v3715_v51, %v1580_v31  ;;  %v1595_v50 = vmul.f32 %v3717_v14, %v1594_v26  ;;  %v5040_v1 = vmul.f32 %v802_v11, %v4937_v56  ;;  %v5043_v61 = vadd.f32 2.0, %v5017_v25 }
  0xad   : > { %vm1612_vm8 = vweird.f32 %v5006_v13  ;;  %v1618_v5 = vand.u32 2147483648, %v5006_v13  ;;  %vm1627_vm9 = vweird.f32 %v5011_v21  ;;  %v676_v41 = vadd.f32 2.0, %v3719_v29 }
  0xae   : > { %v1585_v59 = vsel %vm5026_vm2, %v3715_v51, %v1581_v3  ;;  %v3723_v34 = vpop.eup %3722  ;;  %v1596_v24 = vadd.f32 %v3717_v14, %v1595_v50  ;;  %3726 = vrcp.f32 %v5043_v61  ;;  %v1631_v40 = vand.u32 2147483647, %v5011_v21 }
  0xaf   : > { %v1590_v38 = vsel %vm5019_vm1, %v1589_v10, %v1585_v59  ;;  %v3725_v2 = vpop.eup %3724  ;;  %v1608_v35 = vmul.f32 %v3723_v34, %v5006_v13  ;;  %v677_v6 = vadd.f32 2.0, %v3721_v33  ;;  %vm929_vm11 = vcmp.gt.f32.partialorder %v4931_v47, 20.0 }
  0xb0   : > { %v1591_v52 = vmul.f32 %v1590_v38, %v4998_v0  ;;  %v1600_v27 = vsel %vm5047_vm6, %v3717_v14, %v1596_v24  ;;  %vm5063_vm12 = vcmp.eq.f32.partialorder %v1616_v37, 8.507059e+37  ;;  %v1623_v42 = vmul.f32 %v3725_v2, %v5011_v21  ;;  %v5103_v14 = vld [vmem:[%s4344_s24 + $0xd8] sm:$0xff]  ;;  %v5150_v24 = vld [vmem:[%s4344_s24 + $0xe8] sm:$0xff] }
  0xb1   : > { %v1633_v46 = vand.u32 2147483648, %v5011_v21  ;;  %v1605_v48 = vsel %vm5031_vm5, %v1604_v28, %v1600_v27  ;;  %v1609_v44 = vsub.f32 1.0, %v1608_v35  ;;  %vm1613_vm13 = vweird.f32 %v3723_v34 }
  0xb2   : > { %v3231_v0 = vsel %vm927_vm0, %v4776_v4, %v1591_v52  ;;  %vm930_vm14 = vcmp.gt.f32.partialorder %v4937_v56, 20.0  ;;  %v1606_v49 = vmul.f32 %v1605_v48, %v1056_v63  ;;  %v1624_v19 = vsub.f32 1.0, %v1623_v42  ;;  %vm5083_vm0 = vmor %vm1612_vm8, %vm1613_vm13 }
  0xb3   : > { %3359 = vst [vmem:[%s4528_s17 + $0x98] sm:$0xff] %v3231_v0  ;;  %vm1628_vm15 = vweird.f32 %v3725_v2  ;;  %v804_v20 = vmul.f32 %v3719_v29, %v676_v41  ;;  %v1610_v51 = vmul.f32 %v3723_v34, %v1609_v44  ;;  %v1619_v53 = vor.u32 1.1754944e-38, %v1618_v5 }
  0xb4   : > { %v5076_v55 = vmul.f32 %v3721_v33, %v677_v6  ;;  %3728 = vpow2.f32 %v448_v22  ;;  %v3727_v4 = vpop.eup %3726  ;;  %v3232_v23 = vsel %vm928_vm10, %v4791_v32, %v1606_v49  ;;  %v1625_v43 = vmul.f32 %v3725_v2, %v1624_v19  ;;  %vm5096_vm1 = vmor %vm1627_vm9, %vm1628_vm15 }
  0xb5   : > { %vm5087_vm7 = vcmp.eq.f32.partialorder %v1631_v40, 8.507059e+37  ;;  %v5091_v11 = vadd.f32 2.0, %v804_v20  ;;  %3360 = vst [vmem:[%s4528_s17 + $0xa0] sm:$0xff] %v3232_v23  ;;  %v1611_v8 = vadd.f32 %v3723_v34, %v1610_v51  ;;  %v1634_v32 = vor.u32 1.1754944e-38, %v1633_v46 }
  0xb6   : > { %v1638_v13 = vmul.f32 %v3727_v4, %v5043_v61  ;;  %vm1642_vm10 = vweird.f32 %v5043_v61  ;;  %v1626_v7 = vadd.f32 %v3725_v2, %v1625_v43  ;;  %v1646_v15 = vand.u32 2147483647, %v5043_v61 }
  0xb7   : > { %v1648_v63 = vand.u32 2147483648, %v5043_v61  ;;  %3730 = vrcp.f32 %v5091_v11  ;;  %v1615_v21 = vsel %vm5083_vm0, %v3723_v34, %v1611_v8  ;;  %vm1643_vm2 = vweird.f32 %v3727_v4  ;;  %v5141_v61 = vld [vmem:[%s4344_s24 + $0xe0] sm:$0xff] }
  0xb8   : > { %v1639_v54 = vsub.f32 1.0, %v1638_v13  ;;  %v5111_v31 = vadd.f32 2.0, %v5076_v55  ;;  %v1620_v9 = vsel %vm5063_vm12, %v1619_v53, %v1615_v21  ;;  %v1630_v10 = vsel %vm5096_vm1, %v3725_v2, %v1626_v7  ;;  %vm5128_vm4 = vmor %vm1642_vm10, %vm1643_vm2  ;;  %v5180_v53 = vld [vmem:[%s4344_s24 + $0xf8] sm:$0xff] }
  0xb9   : > { %vm931_vm3 = vcmp.gt.f32.partialorder %v4946_v60, 20.0  ;;  %v295_v16 = vmin.f32 %v5103_v14, 20.0  ;;  %v1621_v58 = vmul.f32 %v1620_v9, %v5036_v30  ;;  %v1635_v29 = vsel %vm5087_vm7, %v1634_v32, %v1630_v10 }
  0xba   : > { %v3729_v26 = vpop.eup %3728  ;;  %v1640_v3 = vmul.f32 %v3727_v4, %v1639_v54  ;;  %v1661_v28 = vand.u32 2147483647, %v5091_v11  ;;  %v1636_v22 = vmul.f32 %v1635_v29, %v5040_v1  ;;  %v1059_v33 = vmul.f32 %v5017_v25, %v4946_v60 }
  0xbb   : > { %v1649_v30 = vor.u32 1.1754944e-38, %v1648_v63  ;;  %3732 = vrcp.f32 %v5111_v31  ;;  %v3233_v37 = vsel %vm929_vm11, %v4931_v47, %v1621_v58  ;;  %vm5136_vm5 = vcmp.eq.f32.partialorder %v1646_v15, 8.507059e+37  ;;  %v5199_v63 = vld [vmem:[%s4344_s24 + $0x100] sm:$0xff] }
  0xbc   : > { %v1641_v59 = vadd.f32 %v3727_v4, %v1640_v3  ;;  %v678_v25 = vadd.f32 2.0, %v3729_v26  ;;  %3361 = vst [vmem:[%s4528_s17 + $0xa8] sm:$0xff] %v3233_v37  ;;  %v3234_v5 = vsel %vm930_vm14, %v4937_v56, %v1636_v22  ;;  %v1060_v34 = vmul.f32 %v804_v20, %v4968_v12  ;;  %v5162_v56 = vld [vmem:[%s4344_s24 + $0xf0] sm:$0xff] }
  0xbd   : > { %v3731_v39 = vpop.eup %3730  ;;  %v1663_v38 = vand.u32 2147483648, %v5091_v11  ;;  %v450_v47 = vmul.f32 1.442695, %v295_v16  ;;  %3362 = vst [vmem:[%s4528_s17 + $0xb0] sm:$0xff] %v3234_v5  ;;  %vm1657_vm6 = vweird.f32 %v5091_v11  ;;  %vm5157_vm8 = vcmp.eq.f32.partialorder %v1661_v28, 8.507059e+37 }
  0xbe   : > { %v1645_v41 = vsel %vm5128_vm4, %v3727_v4, %v1641_v59  ;;  %v1653_v2 = vmul.f32 %v3731_v39, %v5091_v11  ;;  %v5166_v40 = vmul.f32 %v3729_v26, %v678_v25  ;;  %v296_v6 = vmin.f32 %v5141_v61, 20.0 }
  0xbf   : > { %v1650_v35 = vsel %vm5136_vm5, %v1649_v30, %v1645_v41  ;;  %3734 = vpow2.f32 %v450_v47  ;;  %vm1658_vm9 = vweird.f32 %v3731_v39  ;;  %v297_v42 = vmin.f32 %v5150_v24, 20.0 }
  0xc0   : > { %v1651_v27 = vmul.f32 %v1650_v35, %v1059_v33  ;;  %v1654_v36 = vsub.f32 1.0, %v1653_v2  ;;  %v1664_v0 = vor.u32 1.1754944e-38, %v1663_v38  ;;  %v5171_v48 = vadd.f32 2.0, %v5166_v40  ;;  %vm5185_vm12 = vmor %vm1657_vm6, %vm1658_vm9  ;;  %v5232_v38 = vld [vmem:[%s4344_s24 + $0x108] sm:$0xff] }
  0xc1   : > { %v3733_v46 = vpop.eup %3732  ;;  %v452_v44 = vmul.f32 1.442695, %v296_v6  ;;  %v298_v49 = vmin.f32 %v5162_v56, 20.0  ;;  %vm1672_vm11 = vweird.f32 %v5111_v31  ;;  %v1676_v23 = vand.u32 2147483647, %v5111_v31 }
  0xc2   : > { %v3235_v19 = vsel %vm931_vm3, %v4946_v60, %v1651_v27  ;;  %v1655_v20 = vmul.f32 %v3731_v39, %v1654_v36  ;;  %v1668_v51 = vmul.f32 %v3733_v46, %v5111_v31  ;;  %vm1673_vm13 = vweird.f32 %v3733_v46 }
  0xc3   : > { %3363 = vst [vmem:[%s4528_s17 + $0xb8] sm:$0xff] %v3235_v19  ;;  %v1678_v60 = vand.u32 2147483648, %v5111_v31  ;;  %3736 = vrcp.f32 %v5171_v48  ;;  %v454_v17 = vmul.f32 1.442695, %v297_v42  ;;  %vm932_vm14 = vcmp.gt.f32.partialorder %v4968_v12, 20.0  ;;  %vm5206_vm15 = vmor %vm1672_vm11, %vm1673_vm13 }
  0xc4   : > { %v1656_v62 = vadd.f32 %v3731_v39, %v1655_v20  ;;  %v1669_v43 = vsub.f32 1.0, %v1668_v51  ;;  %3738 = vpow2.f32 %v452_v44  ;;  %v1061_v11 = vmul.f32 %v5076_v55, %v4974_v18 }
  0xc5   : > { %v3735_v8 = vpop.eup %3734  ;;  %v456_v57 = vmul.f32 1.442695, %v298_v49  ;;  %v299_v32 = vmin.f32 %v5180_v53, 20.0  ;;  %3740 = vpow2.f32 %v454_v17  ;;  %vm5210_vm0 = vcmp.eq.f32.partialorder %v1676_v23, 8.507059e+37  ;;  %v5257_v49 = vld [vmem:[%s4344_s24 + $0x118] sm:$0xff] }
  0xc6   : > { %v1660_v13 = vsel %vm5185_vm12, %v3731_v39, %v1656_v62  ;;  %v1670_v7 = vmul.f32 %v3733_v46, %v1669_v43  ;;  %v679_v15 = vadd.f32 2.0, %v3735_v8  ;;  %v1679_v9 = vor.u32 1.1754944e-38, %v1678_v60 }
  0xc7   : > { %v1665_v21 = vsel %vm5157_vm8, %v1664_v0, %v1660_v13  ;;  %3742 = vpow2.f32 %v456_v57  ;;  %v458_v58 = vmul.f32 1.442695, %v299_v32  ;;  %vm933_vm7 = vcmp.gt.f32.partialorder %v4974_v18, 20.0 }
  0xc8   : > { %v1666_v10 = vmul.f32 %v1665_v21, %v1060_v34  ;;  %v1671_v16 = vadd.f32 %v3733_v46, %v1670_v7  ;;  %v807_v26 = vmul.f32 %v3735_v8, %v679_v15  ;;  %vm1687_vm1 = vweird.f32 %v5171_v48 }
  0xc9   : > { %v3737_v29 = vpop.eup %3736  ;;  %v300_v31 = vmin.f32 %v5199_v63, 20.0  ;;  %v1691_v50 = vand.u32 2147483647, %v5171_v48  ;;  %v1693_v37 = vand.u32 2147483648, %v5171_v48  ;;  %3744 = vpow2.f32 %v458_v58 }
  0xca   : > { %v3739_v3 = vpop.eup %3738  ;;  %v3236_v28 = vsel %vm932_vm14, %v4968_v12, %v1666_v10  ;;  %v1675_v22 = vsel %vm5206_vm15, %v3733_v46, %v1671_v16  ;;  %v1683_v33 = vmul.f32 %v3737_v29, %v5171_v48  ;;  %v5228_v59 = vadd.f32 2.0, %v807_v26 }
  0xcb   : > { %3364 = vst [vmem:[%s4528_s17 + $0xc0] sm:$0xff] %v3236_v28  ;;  %v1680_v30 = vsel %vm5210_vm0, %v1679_v9, %v1675_v22  ;;  %v680_v1 = vadd.f32 2.0, %v3739_v3  ;;  %v3741_v25 = vpop.eup %3740  ;;  %vm1688_vm10 = vweird.f32 %v3737_v29  ;;  %v460_v34 = vmul.f32 1.442695, %v300_v31 }
  0xcc   : > { %v1681_v12 = vmul.f32 %v1680_v30, %v1061_v11  ;;  %v1684_v39 = vsub.f32 1.0, %v1683_v33  ;;  %3746 = vrcp.f32 %v5228_v59  ;;  %v681_v52 = vadd.f32 2.0, %v3741_v25  ;;  %vm5242_vm2 = vmor %vm1687_vm1, %vm1688_vm10 }
  0xcd   : > { %v3743_v5 = vpop.eup %3742  ;;  %v808_v2 = vmul.f32 %v3739_v3, %v680_v1  ;;  %v1062_v35 = vmul.f32 %v5166_v40, %v4995_v45  ;;  %vm5246_vm3 = vcmp.eq.f32.partialorder %v1691_v50, 8.507059e+37  ;;  %v1694_v36 = vor.u32 1.1754944e-38, %v1693_v37 }
  0xce   : > { %v3237_v47 = vsel %vm933_vm7, %v4974_v18, %v1681_v12  ;;  %v1685_v41 = vmul.f32 %v3737_v29, %v1684_v39  ;;  %v682_v42 = vadd.f32 2.0, %v3743_v5  ;;  %v5251_v18 = vld [vmem:[%s4344_s24 + $0x110] sm:$0xff]  ;;  %v809_v44 = vmul.f32 %v3741_v25, %v681_v52 }
  0xcf   : > { %3365 = vst [vmem:[%s4528_s17 + $0xc8] sm:$0xff] %v3237_v47  ;;  %v5253_v0 = vadd.f32 2.0, %v808_v2  ;;  %v301_v40 = vmin.f32 %v5232_v38, 20.0  ;;  %v1706_v48 = vand.u32 2147483647, %v5228_v59  ;;  %v1708_v19 = vand.u32 2147483648, %v5228_v59  ;;  %v3745_v20 = vpop.eup %3744 }
  0xd0   : > { %v1686_v46 = vadd.f32 %v3737_v29, %v1685_v41  ;;  %3748 = vpow2.f32 %v460_v34  ;;  %vm934_vm4 = vcmp.gt.f32.partialorder %v4995_v45, 20.0  ;;  %v302_v4 = vmin.f32 %v5251_v18, 20.0 }
  0xd1   : > { %3750 = vrcp.f32 %v5253_v0  ;;  %v5268_v62 = vadd.f32 2.0, %v809_v44  ;;  %v5270_v43 = vmul.f32 %v3743_v5, %v682_v42  ;;  %v303_v17 = vmin.f32 %v5257_v49, 20.0 }
  0xd2   : > { %v1690_v51 = vsel %vm5242_vm2, %v3737_v29, %v1686_v46  ;;  %v3747_v23 = vpop.eup %3746  ;;  %v1063_v11 = vmul.f32 %v807_v26, %v5103_v14  ;;  %v462_v32 = vmul.f32 1.442695, %v301_v40  ;;  %vm935_vm5 = vcmp.gt.f32.partialorder %v5103_v14, 20.0 }
  0xd3   : > { %v1695_v60 = vsel %vm5246_vm3, %v1694_v36, %v1690_v51  ;;  %v1698_v57 = vmul.f32 %v3747_v23, %v5228_v59  ;;  %vm1702_vm6 = vweird.f32 %v5228_v59  ;;  %vm5277_vm8 = vcmp.eq.f32.partialorder %v1706_v48, 8.507059e+37 }
  0xd4   : > { %v1696_v8 = vmul.f32 %v1695_v60, %v1062_v35  ;;  %v1709_v7 = vor.u32 1.1754944e-38, %v1708_v19  ;;  %3752 = vrcp.f32 %v5268_v62  ;;  %vm1703_vm9 = vweird.f32 %v3747_v23 }
  0xd5   : > { %v1699_v21 = vsub.f32 1.0, %v1698_v57  ;;  %v1721_v54 = vand.u32 2147483647, %v5253_v0  ;;  %v1064_v9 = vmul.f32 %v808_v2, %v5141_v61  ;;  %v5289_v10 = vadd.f32 2.0, %v5270_v43  ;;  %vm5294_vm11 = vmor %vm1702_vm6, %vm1703_vm9 }
  0xd6   : > { %v3238_v15 = vsel %vm934_vm4, %v4995_v45, %v1696_v8  ;;  %v3749_v55 = vpop.eup %3748  ;;  %v683_v16 = vadd.f32 2.0, %v3745_v20  ;;  %v464_v26 = vmul.f32 1.442695, %v302_v4  ;;  %v1723_v31 = vand.u32 2147483648, %v5253_v0 }
  0xd7   : > { %3366 = vst [vmem:[%s4528_s17 + $0xd0] sm:$0xff] %v3238_v15  ;;  %v3751_v58 = vpop.eup %3750  ;;  %v1700_v29 = vmul.f32 %v3747_v23, %v1699_v21  ;;  %v684_v3 = vadd.f32 2.0, %v3749_v55  ;;  %3754 = vpow2.f32 %v462_v32  ;;  %vm1717_vm12 = vweird.f32 %v5253_v0 }
  0xd8   : > { %v1713_v28 = vmul.f32 %v3751_v58, %v5253_v0  ;;  %v1736_v22 = vand.u32 2147483647, %v5268_v62  ;;  %3756 = vrcp.f32 %v5289_v10  ;;  %vm936_vm13 = vcmp.gt.f32.partialorder %v5141_v61, 20.0 }
  0xd9   : > { %v1701_v33 = vadd.f32 %v3747_v23, %v1700_v29  ;;  %vm5303_vm14 = vcmp.eq.f32.partialorder %v1721_v54, 8.507059e+37  ;;  %v1065_v30 = vmul.f32 %v809_v44, %v5150_v24  ;;  %v811_v37 = vmul.f32 %v3745_v20, %v683_v16 }
  0xda   : > { %v3753_v59 = vpop.eup %3752  ;;  %v1714_v1 = vsub.f32 1.0, %v1713_v28  ;;  %vm1718_vm15 = vweird.f32 %v3751_v58  ;;  %v1738_v25 = vand.u32 2147483648, %v5268_v62  ;;  %v812_v12 = vmul.f32 %v3749_v55, %v684_v3 }
  0xdb   : > { %v1705_v39 = vsel %vm5294_vm11, %v3747_v23, %v1701_v33  ;;  %v1724_v5 = vor.u32 1.1754944e-38, %v1723_v31  ;;  %v1728_v34 = vmul.f32 %v3753_v59, %v5268_v62  ;;  %vm1732_vm0 = vweird.f32 %v5268_v62  ;;  %vm5322_vm10 = vmor %vm1717_vm12, %vm1718_vm15 }
  0xdc   : > { %v1710_v47 = vsel %vm5277_vm8, %v1709_v7, %v1705_v39  ;;  %v1715_v41 = vmul.f32 %v3751_v58, %v1714_v1  ;;  %vm937_vm7 = vcmp.gt.f32.partialorder %v5150_v24, 20.0  ;;  %vm5316_vm1 = vcmp.eq.f32.partialorder %v1736_v22, 8.507059e+37  ;;  %v5403_v39 = vld [vmem:[%s4344_s24 + $0x120] sm:$0xff] }
  0xdd   : > { %3758 = vpow2.f32 %v464_v26  ;;  %v3755_v52 = vpop.eup %3754  ;;  %v1711_v35 = vmul.f32 %v1710_v47, %v1063_v11  ;;  %v1729_v27 = vsub.f32 1.0, %v1728_v34  ;;  %vm1733_vm2 = vweird.f32 %v3753_v59 }
  0xde   : > { %v5326_v36 = vadd.f32 2.0, %v811_v37  ;;  %v3757_v42 = vpop.eup %3756  ;;  %v1716_v46 = vadd.f32 %v3751_v58, %v1715_v41  ;;  %v1739_v44 = vor.u32 1.1754944e-38, %v1738_v25  ;;  %v1751_v40 = vand.u32 2147483647, %v5289_v10  ;;  %vm5341_vm3 = vmor %vm1732_vm0, %vm1733_vm2 }
  0xdf   : > { %v5329_v48 = vadd.f32 2.0, %v812_v12  ;;  %v3239_v19 = vsel %vm935_vm5, %v5103_v14, %v1711_v35  ;;  %v1730_v0 = vmul.f32 %v3753_v59, %v1729_v27  ;;  %v1743_v20 = vmul.f32 %v3757_v42, %v5289_v10 }
  0xe0   : > { %v1753_v51 = vand.u32 2147483648, %v5289_v10  ;;  %3367 = vst [vmem:[%s4528_s17 + $0xd8] sm:$0xff] %v3239_v19  ;;  %v1720_v4 = vsel %vm5322_vm10, %v3751_v58, %v1716_v46  ;;  %vm938_vm4 = vcmp.gt.f32.partialorder %v5162_v56, 20.0  ;;  %vm1747_vm6 = vweird.f32 %v5289_v10 }
  0xe1   : > { %3760 = vrcp.f32 %v5326_v36  ;;  %v685_v14 = vadd.f32 2.0, %v3755_v52  ;;  %v1725_v60 = vsel %vm5303_vm14, %v1724_v5, %v1720_v4  ;;  %v1731_v8 = vadd.f32 %v3753_v59, %v1730_v0 }
  0xe2   : > { %v1744_v11 = vsub.f32 1.0, %v1743_v20  ;;  %vm1748_vm5 = vweird.f32 %v3757_v42  ;;  %v1726_v62 = vmul.f32 %v1725_v60, %v1064_v9  ;;  %v1066_v32 = vmul.f32 %v5270_v43, %v5162_v56  ;;  %v5450_v60 = vld [vmem:[%s4344_s24 + $0x130] sm:$0xff] }
  0xe3   : > { %v3759_v57 = vpop.eup %3758  ;;  %vm5352_vm8 = vcmp.eq.f32.partialorder %v1751_v40, 8.507059e+37  ;;  %3762 = vrcp.f32 %v5329_v48  ;;  %v1735_v7 = vsel %vm5341_vm3, %v3753_v59, %v1731_v8  ;;  %v1754_v21 = vor.u32 1.1754944e-38, %v1753_v51  ;;  %vm5367_vm9 = vmor %vm1747_vm6, %vm1748_vm5 }
  0xe4   : > { %v1745_v15 = vmul.f32 %v3757_v42, %v1744_v11  ;;  %v1766_v54 = vand.u32 2147483647, %v5326_v36  ;;  %v3240_v55 = vsel %vm936_vm13, %v5141_v61, %v1726_v62  ;;  %v1740_v43 = vsel %vm5316_vm1, %v1739_v44, %v1735_v7 }
  0xe5   : > { %v5372_v16 = vmul.f32 %v811_v37, %v5180_v53  ;;  %v813_v26 = vmul.f32 %v3755_v52, %v685_v14  ;;  %3368 = vst [vmem:[%s4528_s17 + $0xe0] sm:$0xff] %v3240_v55  ;;  %v1741_v58 = vmul.f32 %v1740_v43, %v1065_v30  ;;  %vm1762_vm11 = vweird.f32 %v5326_v36  ;;  %v5414_v52 = vld [vmem:[%s4344_s24 + $0x128] sm:$0xff] }
  0xe6   : > { %v1746_v29 = vadd.f32 %v3757_v42, %v1745_v15  ;;  %v5377_v61 = vmul.f32 %v812_v12, %v5199_v63  ;;  %v1768_v10 = vand.u32 2147483648, %v5326_v36  ;;  %v686_v45 = vadd.f32 2.0, %v3759_v57 }
  0xe7   : > { %v3761_v31 = vpop.eup %3760  ;;  %v5380_v3 = vadd.f32 2.0, %v813_v26  ;;  %v466_v28 = vmul.f32 1.442695, %v303_v17  ;;  %v3241_v22 = vsel %vm937_vm7, %v5150_v24, %v1741_v58  ;;  %vm5390_vm12 = vcmp.eq.f32.partialorder %v1766_v54, 8.507059e+37 }
  0xe8   : > { %v1750_v33 = vsel %vm5367_vm9, %v3757_v42, %v1746_v29  ;;  %v1758_v50 = vmul.f32 %v3761_v31, %v5326_v36  ;;  %3369 = vst [vmem:[%s4528_s17 + $0xe8] sm:$0xff] %v3241_v22  ;;  %vm939_vm13 = vcmp.gt.f32.partialorder %v5180_v53, 20.0  ;;  %v1781_v17 = vand.u32 2147483647, %v5329_v48 }
  0xe9   : > { %v3763_v37 = vpop.eup %3762  ;;  %v1755_v59 = vsel %vm5352_vm8, %v1754_v21, %v1750_v33  ;;  %v1783_v24 = vand.u32 2147483648, %v5329_v48  ;;  %3764 = vrcp.f32 %v5380_v3  ;;  %vm1763_vm14 = vweird.f32 %v3761_v31  ;;  %v5458_v21 = vld [vmem:[%s4344_s24 + $0x138] sm:$0xff] }
  0xea   : > { %v1756_v1 = vmul.f32 %v1755_v59, %v1066_v32  ;;  %v1759_v25 = vsub.f32 1.0, %v1758_v50  ;;  %v1773_v12 = vmul.f32 %v3763_v37, %v5329_v48  ;;  %vm940_vm15 = vcmp.gt.f32.partialorder %v5199_v63, 20.0  ;;  %vm5419_vm1 = vmor %vm1762_vm11, %vm1763_vm14 }
  0xeb   : > { %vm1777_vm0 = vweird.f32 %v5329_v48  ;;  %v1796_v5 = vand.u32 2147483647, %v5380_v3  ;;  %v5408_v34 = vmul.f32 %v3759_v57, %v686_v45  ;;  %3766 = vpow2.f32 %v466_v28  ;;  %v5478_v45 = vld [vmem:[%s4344_s24 + $0x140] sm:$0xff] }
  0xec   : > { %v3242_v47 = vsel %vm938_vm4, %v5162_v56, %v1756_v1  ;;  %v1760_v41 = vmul.f32 %v3761_v31, %v1759_v25  ;;  %v1774_v2 = vsub.f32 1.0, %v1773_v12  ;;  %vm1778_vm7 = vweird.f32 %v3763_v37 }
  0xed   : > { %3370 = vst [vmem:[%s4528_s17 + $0xf0] sm:$0xff] %v3242_v47  ;;  %v1769_v6 = vor.u32 1.1754944e-38, %v1768_v10  ;;  %v1798_v27 = vand.u32 2147483648, %v5380_v3  ;;  %v5425_v42 = vadd.f32 2.0, %v5408_v34  ;;  %v304_v56 = vmin.f32 %v5403_v39, 20.0  ;;  %vm5434_vm2 = vmor %vm1777_vm0, %vm1778_vm7 }
  0xee   : > { %v1761_v46 = vadd.f32 %v3761_v31, %v1760_v41  ;;  %v1775_v44 = vmul.f32 %v3763_v37, %v1774_v2  ;;  %vm5428_vm10 = vcmp.eq.f32.partialorder %v1781_v17, 8.507059e+37  ;;  %v1784_v36 = vor.u32 1.1754944e-38, %v1783_v24 }
  0xef   : > { %v3765_v19 = vpop.eup %3764  ;;  %v1069_v20 = vmul.f32 %v813_v26, %v5232_v38  ;;  %vm1792_vm3 = vweird.f32 %v5380_v3  ;;  %3768 = vrcp.f32 %v5425_v42  ;;  %v305_v51 = vmin.f32 %v5414_v52, 20.0 }
  0xf0   : > { %v1765_v4 = vsel %vm5419_vm1, %v3761_v31, %v1761_v46  ;;  %v1776_v23 = vadd.f32 %v3763_v37, %v1775_v44  ;;  %v1788_v14 = vmul.f32 %v3765_v19, %v5380_v3  ;;  %vm5445_vm4 = vcmp.eq.f32.partialorder %v1796_v5, 8.507059e+37  ;;  %v5497_v5 = vld [vmem:[%s4344_s24 + $0x148] sm:$0xff] }
  0xf1   : > { %v3767_v8 = vpop.eup %3766  ;;  %v1770_v11 = vsel %vm5390_vm12, %v1769_v6, %v1765_v4  ;;  %vm1793_vm6 = vweird.f32 %v3765_v19  ;;  %v1799_v57 = vor.u32 1.1754944e-38, %v1798_v27  ;;  %v468_v62 = vmul.f32 1.442695, %v304_v56 }
  0xf2   : > { %v1771_v32 = vmul.f32 %v1770_v11, %v5372_v16  ;;  %v1780_v13 = vsel %vm5434_vm2, %v3763_v37, %v1776_v23  ;;  %v1789_v7 = vsub.f32 1.0, %v1788_v14  ;;  %v687_v15 = vadd.f32 2.0, %v3767_v8  ;;  %vm5471_vm5 = vmor %vm1792_vm3, %vm1793_vm6 }
  0xf3   : > { %v1785_v54 = vsel %vm5428_vm10, %v1784_v36, %v1780_v13  ;;  %3770 = vpow2.f32 %v468_v62  ;;  %v470_v55 = vmul.f32 1.442695, %v305_v51  ;;  %v306_v43 = vmin.f32 %v5450_v60, 20.0 }
  0xf4   : > { %v3243_v9 = vsel %vm939_vm13, %v5180_v53, %v1771_v32  ;;  %v1786_v16 = vmul.f32 %v1785_v54, %v5377_v61  ;;  %v1790_v26 = vmul.f32 %v3765_v19, %v1789_v7  ;;  %v815_v58 = vmul.f32 %v3767_v8, %v687_v15 }
  0xf5   : > { %v3769_v29 = vpop.eup %3768  ;;  %3371 = vst [vmem:[%s4528_s17 + $0xf8] sm:$0xff] %v3243_v9  ;;  %vm1807_vm8 = vweird.f32 %v5425_v42  ;;  %3772 = vpow2.f32 %v470_v55  ;;  %v472_v10 = vmul.f32 1.442695, %v306_v43  ;;  %v307_v53 = vmin.f32 %v5458_v21, 20.0 }
  0xf6   : > { %v3244_v61 = vsel %vm940_vm15, %v5199_v63, %v1786_v16  ;;  %v1791_v28 = vadd.f32 %v3765_v19, %v1790_v26  ;;  %v1803_v22 = vmul.f32 %v3769_v29, %v5425_v42  ;;  %v1811_v3 = vand.u32 2147483647, %v5425_v42 }
  0xf7   : > { %3372 = vst [vmem:[%s4528_s17 + $0x100] sm:$0xff] %v3244_v61  ;;  %v1813_v33 = vand.u32 2147483648, %v5425_v42  ;;  %v5487_v50 = vadd.f32 2.0, %v815_v58  ;;  %3774 = vpow2.f32 %v472_v10  ;;  %v474_v30 = vmul.f32 1.442695, %v307_v53 }
  0xf8   : > { %v1795_v37 = vsel %vm5471_vm5, %v3765_v19, %v1791_v28  ;;  %v1804_v59 = vsub.f32 1.0, %v1803_v22  ;;  %vm1808_vm9 = vweird.f32 %v3769_v29  ;;  %v308_v63 = vmin.f32 %v5478_v45, 20.0 }
  0xf9   : > { %v3771_v17 = vpop.eup %3770  ;;  %vm941_vm11 = vcmp.gt.f32.partialorder %v5232_v38, 20.0  ;;  %v1800_v24 = vsel %vm5445_vm4, %v1799_v57, %v1795_v37  ;;  %3776 = vrcp.f32 %v5487_v50  ;;  %v1070_v41 = vmul.f32 %v5408_v34, %v5251_v18  ;;  %vm5503_vm12 = vmor %vm1807_vm8, %vm1808_vm9  ;;  %v5523_v57 = vld [vmem:[%s4344_s24 + $0x150] sm:$0xff] }
  0xfa   : > { %v1801_v1 = vmul.f32 %v1800_v24, %v1069_v20  ;;  %v1805_v25 = vmul.f32 %v3769_v29, %v1804_v59  ;;  %v688_v12 = vadd.f32 2.0, %v3771_v17  ;;  %v1814_v35 = vor.u32 1.1754944e-38, %v1813_v33 }
  0xfb   : > { %v3773_v47 = vpop.eup %3772  ;;  %3778 = vpow2.f32 %v474_v30  ;;  %v476_v6 = vmul.f32 1.442695, %v308_v63  ;;  %vm1812_vm13 = vcmp.eq.f32.partialorder %v1811_v3, 8.507059e+37  ;;  %v309_v34 = vmin.f32 %v5497_v5, 20.0 }
  0xfc   : > { %v3245_v27 = vsel %vm941_vm11, %v5232_v38, %v1801_v1  ;;  %v1806_v56 = vadd.f32 %v3769_v29, %v1805_v25  ;;  %v816_v46 = vmul.f32 %v3771_v17, %v688_v12  ;;  %v689_v40 = vadd.f32 2.0, %v3773_v47 }
  0xfd   : > { %v3775_v44 = vpop.eup %3774  ;;  %3373 = vst [vmem:[%s4528_s17 + $0x108] sm:$0xff] %v3245_v27  ;;  %3780 = vpow2.f32 %v476_v6  ;;  %vm942_vm14 = vcmp.gt.f32.partialorder %v5251_v18, 20.0  ;;  %v1826_v20 = vand.u32 2147483647, %v5487_v50  ;;  %v1828_v14 = vand.u32 2147483648, %v5487_v50 }
  0xfe   : > { %v1810_v42 = vsel %vm5503_vm12, %v3769_v29, %v1806_v56  ;;  %v5512_v36 = vadd.f32 2.0, %v816_v46  ;;  %v690_v19 = vadd.f32 2.0, %v3775_v44  ;;  %v817_v51 = vmul.f32 %v3773_v47, %v689_v40 }
  0xff   : > { %v3777_v0 = vpop.eup %3776  ;;  %v1815_v38 = vsel %vm1812_vm13, %v1814_v35, %v1810_v42  ;;  %vm943_vm15 = vcmp.gt.f32.partialorder %v5257_v49, 20.0  ;;  %v1071_v8 = vmul.f32 %v815_v58, %v5257_v49  ;;  %vm1822_vm0 = vweird.f32 %v5487_v50 }
 0x100   : > { %v1816_v4 = vmul.f32 %v1815_v38, %v1070_v41  ;;  %v1818_v23 = vmul.f32 %v3777_v0, %v5487_v50  ;;  %3782 = vrcp.f32 %v5512_v36  ;;  %vm1823_vm7 = vweird.f32 %v3777_v0 }
 0x101   : > { %v3779_v48 = vpop.eup %3778  ;;  %v478_v11 = vmul.f32 1.442695, %v309_v34  ;;  %v5526_v13 = vadd.f32 2.0, %v817_v51  ;;  %v818_v7 = vmul.f32 %v3775_v44, %v690_v19  ;;  %vm5529_vm1 = vcmp.eq.f32.partialorder %v1826_v20, 8.507059e+37  ;;  %vm5540_vm10 = vmor %vm1822_vm0, %vm1823_vm7 }
 0x102   : > { %v3246_v62 = vsel %vm942_vm14, %v5251_v18, %v1816_v4  ;;  %v1819_v32 = vsub.f32 1.0, %v1818_v23  ;;  %v1841_v55 = vand.u32 2147483647, %v5512_v36  ;;  %v1843_v43 = vand.u32 2147483648, %v5512_v36 }
 0x103   : > { %v3781_v15 = vpop.eup %3780  ;;  %3374 = vst [vmem:[%s4528_s17 + $0x110] sm:$0xff] %v3246_v62  ;;  %v691_v9 = vadd.f32 2.0, %v3779_v48  ;;  %v1829_v26 = vor.u32 1.1754944e-38, %v1828_v14  ;;  %3784 = vrcp.f32 %v5526_v13  ;;  %v310_v18 = vmin.f32 %v5523_v57, 20.0 }
 0x104   : > { %v1820_v16 = vmul.f32 %v3777_v0, %v1819_v32  ;;  %v1072_v29 = vmul.f32 %v816_v46, %v5403_v39  ;;  %vm1837_vm2 = vweird.f32 %v5512_v36  ;;  %v5546_v31 = vadd.f32 2.0, %v818_v7 }
 0x105   : > { %v819_v10 = vmul.f32 %v3779_v48, %v691_v9  ;;  %v5549_v28 = vmul.f32 %v817_v51, %v5414_v52  ;;  %v692_v22 = vadd.f32 2.0, %v3781_v15  ;;  %3786 = vpow2.f32 %v478_v11 }
 0x106   : > { %v3783_v53 = vpop.eup %3782  ;;  %v1821_v61 = vadd.f32 %v3777_v0, %v1820_v16  ;;  %vm5552_vm3 = vcmp.eq.f32.partialorder %v1841_v55, 8.507059e+37  ;;  %v1844_v50 = vor.u32 1.1754944e-38, %v1843_v43  ;;  %3788 = vrcp.f32 %v5546_v31 }
 0x107   : > { %v1833_v3 = vmul.f32 %v3783_v53, %v5512_v36  ;;  %vm944_vm4 = vcmp.gt.f32.partialorder %v5403_v39, 20.0  ;;  %vm1852_vm6 = vweird.f32 %v5526_v13  ;;  %v1856_v37 = vand.u32 2147483647, %v5526_v13 }
 0x108   : > { %v1825_v30 = vsel %vm5540_vm10, %v3777_v0, %v1821_v61  ;;  %v1858_v59 = vand.u32 2147483648, %v5526_v13  ;;  %vm1838_vm5 = vweird.f32 %v3783_v53  ;;  %v5565_v24 = vadd.f32 2.0, %v819_v10 }
 0x109   : > { %v1830_v63 = vsel %vm5529_vm1, %v1829_v26, %v1825_v30  ;;  %v1834_v17 = vsub.f32 1.0, %v1833_v3  ;;  %v3785_v1 = vpop.eup %3784  ;;  %v5568_v12 = vmul.f32 %v818_v7, %v5450_v60  ;;  %v1871_v47 = vand.u32 2147483647, %v5546_v31  ;;  %vm5581_vm8 = vmor %vm1837_vm2, %vm1838_vm5 }
 0x10a   : > { %v1831_v25 = vmul.f32 %v1830_v63, %v1071_v8  ;;  %v5571_v41 = vmul.f32 %v3781_v15, %v692_v22  ;;  %v1848_v35 = vmul.f32 %v3785_v1, %v5526_v13  ;;  %v1873_v6 = vand.u32 2147483648, %v5546_v31 }
 0x10b   : > { %v1835_v2 = vmul.f32 %v3783_v53, %v1834_v17  ;;  %3790 = vrcp.f32 %v5565_v24  ;;  %v3787_v27 = vpop.eup %3786  ;;  %vm945_vm9 = vcmp.gt.f32.partialorder %v5414_v52, 20.0  ;;  %vm5586_vm11 = vcmp.eq.f32.partialorder %v1856_v37, 8.507059e+37  ;;  %v5652_v37 = vld [vmem:[%s4344_s24 + $0x158] sm:$0xff] }
 0x10c   : > { %v3247_v56 = vsel %vm943_vm15, %v5257_v49, %v1831_v25  ;;  %v1859_v40 = vor.u32 1.1754944e-38, %v1858_v59  ;;  %vm1867_vm12 = vweird.f32 %v5546_v31  ;;  %v3789_v34 = vpop.eup %3788  ;;  %v1849_v19 = vsub.f32 1.0, %v1848_v35  ;;  %v5655_v59 = vld [vmem:[%s4344_s24 + $0x160] sm:$0xff] }
 0x10d   : > { %3375 = vst [vmem:[%s4528_s17 + $0x118] sm:$0xff] %v3247_v56  ;;  %v1836_v42 = vadd.f32 %v3783_v53, %v1835_v2  ;;  %vm1853_vm13 = vweird.f32 %v3785_v1  ;;  %v5593_v49 = vadd.f32 2.0, %v5571_v41  ;;  %v1863_v36 = vmul.f32 %v3789_v34, %v5546_v31 }
 0x10e   : > { %vm5596_vm14 = vcmp.eq.f32.partialorder %v1871_v47, 8.507059e+37  ;;  %v5601_v38 = vmul.f32 %v819_v10, %v5458_v21  ;;  %v1886_v20 = vand.u32 2147483647, %v5565_v24  ;;  %v1850_v4 = vmul.f32 %v3785_v1, %v1849_v19  ;;  %vm5612_vm0 = vmor %vm1852_vm6, %vm1853_vm13 }
 0x10f   : > { %v1840_v51 = vsel %vm5581_vm8, %v3783_v53, %v1836_v42  ;;  %vm946_vm15 = vcmp.gt.f32.partialorder %v5450_v60, 20.0  ;;  %v1874_v23 = vor.u32 1.1754944e-38, %v1873_v6  ;;  %3792 = vrcp.f32 %v5593_v49  ;;  %v5683_v6 = vld [vmem:[%s4344_s24 + $0x168] sm:$0xff] }
 0x110   : > { %v1845_v14 = vsel %vm5552_vm3, %v1844_v50, %v1840_v51  ;;  %v1864_v8 = vsub.f32 1.0, %v1863_v36  ;;  %vm1868_vm7 = vweird.f32 %v3789_v34  ;;  %v1888_v11 = vand.u32 2147483648, %v5565_v24  ;;  %v5706_v51 = vld [vmem:[%s4344_s24 + $0x178] sm:$0xff] }
 0x111   : > { %v3791_v62 = vpop.eup %3790  ;;  %v1846_v32 = vmul.f32 %v1845_v14, %v1072_v29  ;;  %v1851_v7 = vadd.f32 %v3785_v1, %v1850_v4  ;;  %v693_v15 = vadd.f32 2.0, %v3787_v27  ;;  %v480_v54 = vmul.f32 1.442695, %v310_v18  ;;  %vm5632_vm2 = vmor %vm1867_vm12, %vm1868_vm7 }
 0x112   : > { %v1865_v55 = vmul.f32 %v3789_v34, %v1864_v8  ;;  %v1878_v43 = vmul.f32 %v3791_v62, %v5565_v24  ;;  %vm1882_vm1 = vweird.f32 %v5565_v24  ;;  %vm5621_vm10 = vcmp.eq.f32.partialorder %v1886_v20, 8.507059e+37 }
 0x113   : > { %v3248_v9 = vsel %vm944_vm4, %v5403_v39, %v1846_v32  ;;  %v1855_v16 = vsel %vm5612_vm0, %v3785_v1, %v1851_v7  ;;  %vm947_vm3 = vcmp.gt.f32.partialorder %v5458_v21, 20.0  ;;  %vm1883_vm6 = vweird.f32 %v3791_v62 }
 0x114   : > { %v5637_v18 = vmul.f32 %v3787_v27, %v693_v15  ;;  %3376 = vst [vmem:[%s4528_s17 + $0x120] sm:$0xff] %v3248_v9  ;;  %v1860_v39 = vsel %vm5586_vm11, %v1859_v40, %v1855_v16  ;;  %v1866_v58 = vadd.f32 %v3789_v34, %v1865_v55  ;;  %v1879_v29 = vsub.f32 1.0, %v1878_v43  ;;  %vm5665_vm4 = vmor %vm1882_vm1, %vm1883_vm6  ;;  %v5725_v55 = vld [vmem:[%s4344_s24 + $0x180] sm:$0xff]  ;;  %v5731_v9 = vld [vmem:[%s4344_s24 + $0x188] sm:$0xff] }
 0x115   : > { %3794 = vpow2.f32 %v480_v54  ;;  %v3793_v10 = vpop.eup %3792  ;;  %v1861_v31 = vmul.f32 %v1860_v39, %v5549_v28  ;;  %v1889_v53 = vor.u32 1.1754944e-38, %v1888_v11  ;;  %v1901_v61 = vand.u32 2147483647, %v5593_v49 }
 0x116   : > { %v5645_v22 = vadd.f32 2.0, %v5637_v18  ;;  %v1870_v3 = vsel %vm5632_vm2, %v3789_v34, %v1866_v58  ;;  %v1880_v33 = vmul.f32 %v3791_v62, %v1879_v29  ;;  %v1893_v50 = vmul.f32 %v3793_v10, %v5593_v49 }
 0x117   : > { %v1903_v30 = vand.u32 2147483648, %v5593_v49  ;;  %v3249_v28 = vsel %vm945_vm9, %v5414_v52, %v1861_v31  ;;  %v1875_v63 = vsel %vm5596_vm14, %v1874_v23, %v1870_v3  ;;  %vm948_vm5 = vcmp.gt.f32.partialorder %v5478_v45, 20.0 }
 0x118   : > { %vm1897_vm8 = vweird.f32 %v5593_v49  ;;  %3796 = vrcp.f32 %v5645_v22  ;;  %3377 = vst [vmem:[%s4528_s17 + $0x128] sm:$0xff] %v3249_v28  ;;  %v1876_v52 = vmul.f32 %v1875_v63, %v5568_v12  ;;  %v1881_v1 = vadd.f32 %v3791_v62, %v1880_v33 }
 0x119   : > { %v1894_v25 = vsub.f32 1.0, %v1893_v50  ;;  %vm1898_vm9 = vweird.f32 %v3793_v10  ;;  %v1076_v24 = vmul.f32 %v5571_v41, %v5478_v45  ;;  %vm5676_vm11 = vcmp.eq.f32.partialorder %v1901_v61, 8.507059e+37 }
 0x11a   : > { %v311_v2 = vmin.f32 %v5652_v37, 20.0  ;;  %v312_v35 = vmin.f32 %v5655_v59, 20.0  ;;  %v3250_v12 = vsel %vm946_vm15, %v5450_v60, %v1876_v52  ;;  %v1885_v41 = vsel %vm5665_vm4, %v3791_v62, %v1881_v1  ;;  %vm5695_vm12 = vmor %vm1897_vm8, %vm1898_vm9  ;;  %v5701_v60 = vld [vmem:[%s4344_s24 + $0x170] sm:$0xff] }
 0x11b   : > { %v3795_v27 = vpop.eup %3794  ;;  %v1895_v56 = vmul.f32 %v3793_v10, %v1894_v25  ;;  %v1904_v46 = vor.u32 1.1754944e-38, %v1903_v30  ;;  %3378 = vst [vmem:[%s4528_s17 + $0x130] sm:$0xff] %v3250_v12  ;;  %v1890_v44 = vsel %vm5621_vm10, %v1889_v53, %v1885_v41  ;;  %vm1912_vm13 = vweird.f32 %v5645_v22 }
 0x11c   : > { %v694_v34 = vadd.f32 2.0, %v3795_v27  ;;  %v482_v42 = vmul.f32 1.442695, %v311_v2  ;;  %v1891_v19 = vmul.f32 %v1890_v44, %v5601_v38  ;;  %v484_v0 = vmul.f32 1.442695, %v312_v35 }
 0x11d   : > { %v1896_v36 = vadd.f32 %v3793_v10, %v1895_v56  ;;  %v313_v20 = vmin.f32 %v5683_v6, 20.0  ;;  %v1916_v4 = vand.u32 2147483647, %v5645_v22  ;;  %v1918_v23 = vand.u32 2147483648, %v5645_v22 }
 0x11e   : > { %v3797_v49 = vpop.eup %3796  ;;  %v822_v14 = vmul.f32 %v3795_v27, %v694_v34  ;;  %3798 = vpow2.f32 %v482_v42  ;;  %v3251_v48 = vsel %vm947_vm3, %v5458_v21, %v1891_v19  ;;  %v314_v11 = vmin.f32 %v5701_v60, 20.0 }
 0x11f   : > { %v1900_v38 = vsel %vm5695_vm12, %v3793_v10, %v1896_v36  ;;  %v1908_v8 = vmul.f32 %v3797_v49, %v5645_v22  ;;  %3379 = vst [vmem:[%s4528_s17 + $0x138] sm:$0xff] %v3251_v48  ;;  %3800 = vpow2.f32 %v484_v0  ;;  %v315_v7 = vmin.f32 %v5706_v51, 20.0 }
 0x120   : > { %v1905_v62 = vsel %vm5676_vm11, %v1904_v46, %v1900_v38  ;;  %v5720_v32 = vadd.f32 2.0, %v822_v14  ;;  %vm1913_vm14 = vweird.f32 %v3797_v49  ;;  %v486_v54 = vmul.f32 1.442695, %v313_v20 }
 0x121   : > { %v1906_v15 = vmul.f32 %v1905_v62, %v1076_v24  ;;  %v1909_v21 = vsub.f32 1.0, %v1908_v8  ;;  %v1077_v26 = vmul.f32 %v5637_v18, %v5497_v5  ;;  %vm5738_vm15 = vmor %vm1912_vm13, %vm1913_vm14  ;;  %vm5742_vm0 = vcmp.eq.f32.partialorder %v1916_v4, 8.507059e+37  ;;  %v5757_v24 = vld [vmem:[%s4344_s24 + $0x190] sm:$0xff] }
 0x122   : > { %3802 = vrcp.f32 %v5720_v32  ;;  %v488_v29 = vmul.f32 1.442695, %v314_v11  ;;  %v490_v53 = vmul.f32 1.442695, %v315_v7  ;;  %v316_v61 = vmin.f32 %v5725_v55, 20.0 }
 0x123   : > { %v3252_v43 = vsel %vm948_vm5, %v5478_v45, %v1906_v15  ;;  %v1910_v13 = vmul.f32 %v3797_v49, %v1909_v21  ;;  %3804 = vpow2.f32 %v486_v54  ;;  %v1919_v45 = vor.u32 1.1754944e-38, %v1918_v23  ;;  %v5778_v23 = vld [vmem:[%s4344_s24 + $0x198] sm:$0xff] }
 0x124   : > { %v3799_v16 = vpop.eup %3798  ;;  %3380 = vst [vmem:[%s4528_s17 + $0x140] sm:$0xff] %v3252_v43  ;;  %3806 = vpow2.f32 %v488_v29  ;;  %v317_v18 = vmin.f32 %v5731_v9, 20.0  ;;  %vm949_vm7 = vcmp.gt.f32.partialorder %v5497_v5, 20.0  ;;  %v1933_v63 = vand.u32 2147483648, %v5720_v32 }
 0x125   : > { %v1911_v10 = vadd.f32 %v3797_v49, %v1910_v13  ;;  %v695_v31 = vadd.f32 2.0, %v3799_v16  ;;  %v3801_v3 = vpop.eup %3800  ;;  %3808 = vpow2.f32 %v490_v53  ;;  %vm1927_vm1 = vweird.f32 %v5720_v32 }
 0x126   : > { %v696_v50 = vadd.f32 2.0, %v3801_v3  ;;  %v492_v25 = vmul.f32 1.442695, %v316_v61  ;;  %vm950_vm10 = vcmp.gt.f32.partialorder %v5523_v57, 20.0  ;;  %v494_v27 = vmul.f32 1.442695, %v317_v18 }
 0x127   : > { %v1915_v22 = vsel %vm5738_vm15, %v3797_v49, %v1911_v10  ;;  %v823_v33 = vmul.f32 %v3799_v16, %v695_v31  ;;  %v1931_v56 = vand.u32 2147483647, %v5720_v32  ;;  %v1078_v44 = vmul.f32 %v822_v14, %v5523_v57 }
 0x128   : > { %v3803_v30 = vpop.eup %3802  ;;  %v1920_v28 = vsel %vm5742_vm0, %v1919_v45, %v1915_v22  ;;  %v824_v2 = vmul.f32 %v3801_v3, %v696_v50  ;;  %v1934_v40 = vor.u32 1.1754944e-38, %v1933_v63  ;;  %v318_v34 = vmin.f32 %v5757_v24, 20.0 }
 0x129   : > { %v3805_v17 = vpop.eup %3804  ;;  %v1921_v52 = vmul.f32 %v1920_v28, %v1077_v26  ;;  %v1923_v1 = vmul.f32 %v3803_v30, %v5720_v32  ;;  %v5760_v47 = vadd.f32 2.0, %v823_v33  ;;  %vm1928_vm2 = vweird.f32 %v3803_v30 }
 0x12a   : > { %v697_v35 = vadd.f32 2.0, %v3805_v17  ;;  %v3807_v46 = vpop.eup %3806  ;;  %v5768_v36 = vadd.f32 2.0, %v824_v2  ;;  %vm5772_vm3 = vmor %vm1927_vm1, %vm1928_vm2  ;;  %vm1932_vm6 = vcmp.eq.f32.partialorder %v1931_v56, 8.507059e+37  ;;  %v5781_v48 = vmul.f32 %v823_v33, %v5652_v37 }
 0x12b   : > { %v3253_v12 = vsel %vm949_vm7, %v5497_v5, %v1921_v52  ;;  %v1924_v41 = vsub.f32 1.0, %v1923_v1  ;;  %3810 = vrcp.f32 %v5760_v47  ;;  %v3809_v42 = vpop.eup %3808  ;;  %v1946_v20 = vand.u32 2147483647, %v5760_v47 }
 0x12c   : > { %3381 = vst [vmem:[%s4528_s17 + $0x148] sm:$0xff] %v3253_v12  ;;  %v825_v0 = vmul.f32 %v3805_v17, %v697_v35  ;;  %3812 = vpow2.f32 %v492_v25  ;;  %v698_v49 = vadd.f32 2.0, %v3807_v46  ;;  %v699_v4 = vadd.f32 2.0, %v3809_v42 }
 0x12d   : > { %v1925_v19 = vmul.f32 %v3803_v30, %v1924_v41  ;;  %3814 = vpow2.f32 %v494_v27  ;;  %v1948_v38 = vand.u32 2147483648, %v5760_v47  ;;  %v5787_v62 = vmul.f32 1.442695, %v318_v34 }
 0x12e   : > { %3816 = vrcp.f32 %v5768_v36  ;;  %v5785_v8 = vadd.f32 2.0, %v825_v0  ;;  %v826_v11 = vmul.f32 %v3807_v46, %v698_v49  ;;  %vm1942_vm4 = vweird.f32 %v5760_v47 }
 0x12f   : > { %v1926_v14 = vadd.f32 %v3803_v30, %v1925_v19  ;;  %v5792_v7 = vmul.f32 %v3809_v42, %v699_v4  ;;  %v319_v15 = vmin.f32 %v5778_v23, 20.0  ;;  %vm5795_vm5 = vcmp.eq.f32.partialorder %v1946_v20, 8.507059e+37 }
 0x130   : > { %v5800_v13 = vmul.f32 %v824_v2, %v5655_v59  ;;  %3818 = vrcp.f32 %v5785_v8  ;;  %v1961_v58 = vand.u32 2147483647, %v5768_v36  ;;  %v1963_v45 = vand.u32 2147483648, %v5768_v36 }
 0x131   : > { %v1930_v32 = vsel %vm5772_vm3, %v3803_v30, %v1926_v14  ;;  %v3811_v21 = vpop.eup %3810  ;;  %vm951_vm8 = vcmp.gt.f32.partialorder %v5652_v37, 20.0  ;;  %v1949_v10 = vor.u32 1.1754944e-38, %v1948_v38  ;;  %vm1957_vm11 = vweird.f32 %v5768_v36 }
 0x132   : > { %v1935_v54 = vsel %vm1932_vm6, %v1934_v40, %v1930_v32  ;;  %v3813_v16 = vpop.eup %3812  ;;  %v1938_v39 = vmul.f32 %v3811_v21, %v5760_v47  ;;  %vm1943_vm9 = vweird.f32 %v3811_v21  ;;  %v5810_v31 = vadd.f32 2.0, %v826_v11 }
 0x133   : > { %v1936_v26 = vmul.f32 %v1935_v54, %v1078_v44  ;;  %v5806_v29 = vpop.eup %3814  ;;  %v1976_v18 = vand.u32 2147483647, %v5785_v8  ;;  %v5817_v22 = vadd.f32 2.0, %v5792_v7  ;;  %v5822_v50 = vmul.f32 %v825_v0, %v5683_v6  ;;  %vm5834_vm14 = vmor %vm1942_vm4, %vm1943_vm9 }
 0x134   : > { %v3817_v53 = vpop.eup %3816  ;;  %v1939_v3 = vsub.f32 1.0, %v1938_v39  ;;  %v1978_v30 = vand.u32 2147483648, %v5785_v8  ;;  %3820 = vrcp.f32 %v5810_v31  ;;  %vm952_vm12 = vcmp.gt.f32.partialorder %v5655_v59, 20.0 }
 0x135   : > { %v3254_v61 = vsel %vm950_vm10, %v5523_v57, %v1936_v26  ;;  %v1953_v33 = vmul.f32 %v3817_v53, %v5768_v36  ;;  %vm5827_vm13 = vcmp.eq.f32.partialorder %v1961_v58, 8.507059e+37  ;;  %v1964_v63 = vor.u32 1.1754944e-38, %v1963_v45 }
 0x136   : > { %3382 = vst [vmem:[%s4528_s17 + $0x150] sm:$0xff] %v3254_v61  ;;  %v1940_v28 = vmul.f32 %v3811_v21, %v1939_v3  ;;  %v700_v17 = vadd.f32 2.0, %v3813_v16  ;;  %v3819_v52 = vpop.eup %3818  ;;  %vm1958_vm15 = vweird.f32 %v3817_v53  ;;  %vm1972_vm0 = vweird.f32 %v5785_v8 }
 0x137   : > { %v1954_v25 = vsub.f32 1.0, %v1953_v33  ;;  %3822 = vrcp.f32 %v5817_v22  ;;  %v1968_v35 = vmul.f32 %v3819_v52, %v5785_v8  ;;  %vm5841_vm7 = vcmp.eq.f32.partialorder %v1976_v18, 8.507059e+37  ;;  %vm5855_vm2 = vmor %vm1957_vm11, %vm1958_vm15 }
 0x138   : > { %v1941_v2 = vadd.f32 %v3811_v21, %v1940_v28  ;;  %v5846_v12 = vmul.f32 %v826_v11, %v5701_v60  ;;  %vm953_vm1 = vcmp.gt.f32.partialorder %v5683_v6, 20.0  ;;  %v1979_v41 = vor.u32 1.1754944e-38, %v1978_v30 }
 0x139   : > { %v1955_v47 = vmul.f32 %v3817_v53, %v1954_v25  ;;  %vm1987_vm10 = vweird.f32 %v5810_v31  ;;  %v1991_v56 = vand.u32 2147483647, %v5810_v31  ;;  %v1969_v40 = vsub.f32 1.0, %v1968_v35 }
 0x13a   : > { %v1945_v46 = vsel %vm5834_vm14, %v3811_v21, %v1941_v2  ;;  %vm1973_vm3 = vweird.f32 %v3819_v52  ;;  %v828_v34 = vmul.f32 %v3813_v16, %v700_v17  ;;  %v3821_v42 = vpop.eup %3820  ;;  %v1993_v5 = vand.u32 2147483648, %v5810_v31 }
 0x13b   : > { %v1950_v19 = vsel %vm5795_vm5, %v1949_v10, %v1945_v46  ;;  %v1956_v0 = vadd.f32 %v3817_v53, %v1955_v47  ;;  %v701_v20 = vadd.f32 2.0, %v5806_v29  ;;  %v1970_v36 = vmul.f32 %v3819_v52, %v1969_v40  ;;  %vm5870_vm4 = vmor %vm1972_vm0, %vm1973_vm3  ;;  %v5949_v47 = vld [vmem:[%s4344_s24 + $0x1a8] sm:$0xff] }
 0x13c   : > { %v1951_v49 = vmul.f32 %v1950_v19, %v5781_v48  ;;  %v1983_v4 = vmul.f32 %v3821_v42, %v5810_v31  ;;  %vm2002_vm6 = vweird.f32 %v5817_v22  ;;  %vm954_vm5 = vcmp.gt.f32.partialorder %v5701_v60, 20.0 }
 0x13d   : > { %v3823_v14 = vpop.eup %3822  ;;  %v1960_v38 = vsel %vm5855_vm2, %v3817_v53, %v1956_v0  ;;  %vm1988_vm9 = vweird.f32 %v3821_v42  ;;  %v2006_v48 = vand.u32 2147483647, %v5817_v22  ;;  %v5876_v32 = vadd.f32 2.0, %v828_v34 }
 0x13e   : > { %v3255_v21 = vsel %vm951_vm8, %v5652_v37, %v1951_v49  ;;  %v1965_v54 = vsel %vm5827_vm13, %v1964_v63, %v1960_v38  ;;  %v1971_v43 = vadd.f32 %v3819_v52, %v1970_v36  ;;  %v1984_v8 = vsub.f32 1.0, %v1983_v4  ;;  %vm5901_vm8 = vmor %vm1987_vm10, %vm1988_vm9 }
 0x13f   : > { %3383 = vst [vmem:[%s4528_s17 + $0x158] sm:$0xff] %v3255_v21  ;;  %v1966_v16 = vmul.f32 %v1965_v54, %v5800_v13  ;;  %v1998_v26 = vmul.f32 %v3823_v14, %v5817_v22  ;;  %3824 = vrcp.f32 %v5876_v32  ;;  %v5888_v39 = vmul.f32 %v5806_v29, %v701_v20 }
 0x140   : > { %v1975_v58 = vsel %vm5870_vm4, %v3819_v52, %v1971_v43  ;;  %v1985_v37 = vmul.f32 %v3821_v42, %v1984_v8  ;;  %v1994_v45 = vor.u32 1.1754944e-38, %v1993_v5  ;;  %v2008_v10 = vand.u32 2147483648, %v5817_v22 }
 0x141   : > { %v3256_v53 = vsel %vm952_vm12, %v5655_v59, %v1966_v16  ;;  %v1980_v13 = vsel %vm5841_vm7, %v1979_v41, %v1975_v58  ;;  %v1999_v61 = vsub.f32 1.0, %v1998_v26  ;;  %vm2003_vm11 = vweird.f32 %v3823_v14  ;;  %v5952_v41 = vld [vmem:[%s4344_s24 + $0x1b0] sm:$0xff] }
 0x142   : > { %3384 = vst [vmem:[%s4528_s17 + $0x160] sm:$0xff] %v3256_v53  ;;  %v1981_v3 = vmul.f32 %v1980_v13, %v5822_v50  ;;  %v1986_v18 = vadd.f32 %v3821_v42, %v1985_v37  ;;  %vm1992_vm13 = vcmp.eq.f32.partialorder %v1991_v56, 8.507059e+37  ;;  %v1083_v59 = vmul.f32 %v5792_v7, %v5706_v51  ;;  %vm5924_vm14 = vmor %vm2002_vm6, %vm2003_vm11 }
 0x143   : > { %v2000_v33 = vmul.f32 %v3823_v14, %v1999_v61  ;;  %vm5909_vm12 = vcmp.eq.f32.partialorder %v2006_v48, 8.507059e+37  ;;  %v2021_v31 = vand.u32 2147483647, %v5876_v32  ;;  %v5915_v28 = vadd.f32 2.0, %v5888_v39 }
 0x144   : > { %v3257_v50 = vsel %vm953_vm1, %v5683_v6, %v1981_v3  ;;  %v1990_v57 = vsel %vm5901_vm8, %v3821_v42, %v1986_v18  ;;  %v2009_v63 = vor.u32 1.1754944e-38, %v2008_v10  ;;  %3826 = vpow2.f32 %v5787_v62  ;;  %v5937_v62 = vld [vmem:[%s4344_s24 + $0x1a0] sm:$0xff]  ;;  %v5962_v42 = vld [vmem:[%s4344_s24 + $0x1b8] sm:$0xff] }
 0x145   : > { %v3825_v17 = vpop.eup %3824  ;;  %3385 = vst [vmem:[%s4528_s17 + $0x168] sm:$0xff] %v3257_v50  ;;  %v1995_v52 = vsel %vm1992_vm13, %v1994_v45, %v1990_v57  ;;  %v2001_v1 = vadd.f32 %v3823_v14, %v2000_v33  ;;  %v2023_v6 = vand.u32 2147483648, %v5876_v32  ;;  %3828 = vrcp.f32 %v5915_v28  ;;  %v6001_v57 = vld [vmem:[%s4344_s24 + $0x1c0] sm:$0xff] }
 0x146   : > { %v1996_v22 = vmul.f32 %v1995_v52, %v5846_v12  ;;  %vm955_vm15 = vcmp.gt.f32.partialorder %v5706_v51, 20.0  ;;  %v1084_v25 = vmul.f32 %v828_v34, %v5725_v55  ;;  %v2013_v2 = vmul.f32 %v3825_v17, %v5876_v32 }
 0x147   : > { %v2005_v35 = vsel %vm5924_vm14, %v3823_v14, %v2001_v1  ;;  %vm2017_vm0 = vweird.f32 %v5876_v32  ;;  %vm5942_vm7 = vcmp.eq.f32.partialorder %v2021_v31, 8.507059e+37  ;;  %v498_v12 = vmul.f32 1.442695, %v319_v15 }
 0x148   : > { %v3258_v56 = vsel %vm954_vm5, %v5701_v60, %v1996_v22  ;;  %v2010_v46 = vsel %vm5909_vm12, %v2009_v63, %v2005_v35  ;;  %v2014_v44 = vsub.f32 1.0, %v2013_v2  ;;  %vm2018_vm1 = vweird.f32 %v3825_v17 }
 0x149   : > { %3386 = vst [vmem:[%s4528_s17 + $0x170] sm:$0xff] %v3258_v56  ;;  %v2011_v40 = vmul.f32 %v2010_v46, %v1083_v59  ;;  %v2024_v34 = vor.u32 1.1754944e-38, %v2023_v6  ;;  %3830 = vpow2.f32 %v498_v12  ;;  %v320_v15 = vmin.f32 %v5937_v62, 20.0  ;;  %vm5972_vm2 = vmor %vm2017_vm0, %vm2018_vm1  ;;  %v6009_v46 = vld [vmem:[%s4344_s24 + $0x1c8] sm:$0xff] }
 0x14a   : > { %v3827_v19 = vpop.eup %3826  ;;  %v2015_v0 = vmul.f32 %v3825_v17, %v2014_v44  ;;  %vm2032_vm10 = vweird.f32 %v5915_v28  ;;  %v321_v60 = vmin.f32 %v5949_v47, 20.0  ;;  %v322_v5 = vmin.f32 %v5952_v41, 20.0 }
 0x14b   : > { %v3829_v20 = vpop.eup %3828  ;;  %v3259_v49 = vsel %vm955_vm15, %v5706_v51, %v2011_v40  ;;  %v2036_v4 = vand.u32 2147483647, %v5915_v28  ;;  %v702_v14 = vadd.f32 2.0, %v3827_v19  ;;  %v500_v38 = vmul.f32 1.442695, %v320_v15 }
 0x14c   : > { %3387 = vst [vmem:[%s4528_s17 + $0x178] sm:$0xff] %v3259_v49  ;;  %v2016_v11 = vadd.f32 %v3825_v17, %v2015_v0  ;;  %v2028_v48 = vmul.f32 %v3829_v20, %v5915_v28  ;;  %v502_v21 = vmul.f32 1.442695, %v321_v60  ;;  %v323_v54 = vmin.f32 %v5962_v42, 20.0 }
 0x14d   : > { %v2038_v43 = vand.u32 2147483648, %v5915_v28  ;;  %v830_v51 = vmul.f32 %v3827_v19, %v702_v14  ;;  %3832 = vpow2.f32 %v500_v38  ;;  %v504_v32 = vmul.f32 1.442695, %v322_v5 }
 0x14e   : > { %v2020_v8 = vsel %vm5972_vm2, %v3825_v17, %v2016_v11  ;;  %v2029_v16 = vsub.f32 1.0, %v2028_v48  ;;  %vm2033_vm3 = vweird.f32 %v3829_v20  ;;  %3834 = vpow2.f32 %v502_v21 }
 0x14f   : > { %v3831_v26 = vpop.eup %3830  ;;  %vm956_vm6 = vcmp.gt.f32.partialorder %v5725_v55, 20.0  ;;  %v2025_v58 = vsel %vm5942_vm7, %v2024_v34, %v2020_v8  ;;  %v1214_v37 = vadd.f32 2.0, %v830_v51  ;;  %3836 = vpow2.f32 %v504_v32  ;;  %vm5990_vm4 = vmor %vm2032_vm10, %vm2033_vm3 }
 0x150   : > { %v2026_v45 = vmul.f32 %v2025_v58, %v1084_v25  ;;  %v2030_v10 = vmul.f32 %v3829_v20, %v2029_v16  ;;  %v703_v53 = vadd.f32 2.0, %v3831_v26  ;;  %v506_v13 = vmul.f32 1.442695, %v323_v54 }
 0x151   : > { %v1085_v29 = vmul.f32 %v5888_v39, %v5731_v9  ;;  %v2039_v3 = vor.u32 1.1754944e-38, %v2038_v43  ;;  %3838 = vrcp.f32 %v1214_v37  ;;  %vm2037_vm5 = vcmp.eq.f32.partialorder %v2036_v4, 8.507059e+37 }
 0x152   : > { %v3260_v18 = vsel %vm956_vm6, %v5725_v55, %v2026_v45  ;;  %v2031_v59 = vadd.f32 %v3829_v20, %v2030_v10  ;;  %v831_v33 = vmul.f32 %v3831_v26, %v703_v53  ;;  %3840 = vpow2.f32 %v506_v13 }
 0x153   : > { %v3833_v30 = vpop.eup %3832  ;;  %3388 = vst [vmem:[%s4528_s17 + $0x180] sm:$0xff] %v3260_v18  ;;  %vm957_vm9 = vcmp.gt.f32.partialorder %v5731_v9, 20.0  ;;  %v2051_v63 = vand.u32 2147483647, %v1214_v37  ;;  %v2053_v1 = vand.u32 2147483648, %v1214_v37  ;;  %v324_v35 = vmin.f32 %v6001_v57, 20.0 }
 0x154   : > { %v3835_v31 = vpop.eup %3834  ;;  %v2035_v50 = vsel %vm5990_vm4, %v3829_v20, %v2031_v59  ;;  %v5998_v39 = vadd.f32 2.0, %v831_v33  ;;  %v704_v28 = vadd.f32 2.0, %v3833_v30  ;;  %v1086_v12 = vmul.f32 %v830_v51, %v5757_v24 }
 0x155   : > { %v3837_v7 = vpop.eup %3836  ;;  %v2040_v55 = vsel %vm2037_vm5, %v2039_v3, %v2035_v50  ;;  %v705_v17 = vadd.f32 2.0, %v3835_v31  ;;  %vm2047_vm8 = vweird.f32 %v1214_v37  ;;  %vm958_vm11 = vcmp.gt.f32.partialorder %v5757_v24, 20.0 }
 0x156   : > { %v2041_v52 = vmul.f32 %v2040_v55, %v1085_v29  ;;  %3842 = vrcp.f32 %v5998_v39  ;;  %v832_v22 = vmul.f32 %v3833_v30, %v704_v28  ;;  %v706_v2 = vadd.f32 2.0, %v3837_v7 }
 0x157   : > { %v3839_v6 = vpop.eup %3838  ;;  %v833_v25 = vmul.f32 %v3835_v31, %v705_v17  ;;  %vm6013_vm13 = vcmp.eq.f32.partialorder %v2051_v63, 8.507059e+37  ;;  %v2066_v40 = vand.u32 2147483647, %v5998_v39  ;;  %v2068_v34 = vand.u32 2147483648, %v5998_v39  ;;  %v6171_v31 = vld [vmem:[%s4344_s24 + $0x1e8] sm:$0xff] }
 0x158   : > { %v3261_v27 = vsel %vm957_vm9, %v5731_v9, %v2041_v52  ;;  %v2043_v56 = vmul.f32 %v3839_v6, %v1214_v37  ;;  %v6019_v15 = vadd.f32 2.0, %v832_v22  ;;  %v3841_v9 = vpop.eup %3840  ;;  %vm2048_vm12 = vweird.f32 %v3839_v6 }
 0x159   : > { %3389 = vst [vmem:[%s4528_s17 + $0x188] sm:$0xff] %v3261_v27  ;;  %v2054_v0 = vor.u32 1.1754944e-38, %v2053_v1  ;;  %v6021_v60 = vadd.f32 2.0, %v833_v25  ;;  %v6024_v5 = vmul.f32 %v3837_v7, %v706_v2  ;;  %v508_v20 = vmul.f32 1.442695, %v324_v35  ;;  %vm6031_vm15 = vmor %vm2047_vm8, %vm2048_vm12 }
 0x15a   : > { %v2044_v19 = vsub.f32 1.0, %v2043_v56  ;;  %3844 = vrcp.f32 %v6019_v15  ;;  %v325_v49 = vmin.f32 %v6009_v46, 20.0  ;;  %v1087_v14 = vmul.f32 %v831_v33, %v5778_v23 }
 0x15b   : > { %vm2062_vm14 = vweird.f32 %v5998_v39  ;;  %3846 = vrcp.f32 %v6021_v60  ;;  %vm6036_vm0 = vcmp.eq.f32.partialorder %v2066_v40, 8.507059e+37  ;;  %v2069_v21 = vor.u32 1.1754944e-38, %v2068_v34 }
 0x15c   : > { %v3843_v36 = vpop.eup %3842  ;;  %v2045_v4 = vmul.f32 %v3839_v6, %v2044_v19  ;;  %v707_v54 = vadd.f32 2.0, %v3841_v9  ;;  %vm959_vm7 = vcmp.gt.f32.partialorder %v5778_v23, 20.0  ;;  %v6042_v51 = vmul.f32 %v832_v22, %v5937_v62 }
 0x15d   : > { %v2058_v11 = vmul.f32 %v3843_v36, %v5998_v39  ;;  %v2081_v32 = vand.u32 2147483647, %v6019_v15  ;;  %v2083_v8 = vand.u32 2147483648, %v6019_v15  ;;  %vm2063_vm1 = vweird.f32 %v3843_v36 }
 0x15e   : > { %v2046_v43 = vadd.f32 %v3839_v6, %v2045_v4  ;;  %v6047_v26 = vadd.f32 2.0, %v6024_v5  ;;  %3848 = vpow2.f32 %v508_v20  ;;  %vm2077_vm10 = vweird.f32 %v6019_v15  ;;  %vm6063_vm3 = vmor %vm2062_vm14, %vm2063_vm1 }
 0x15f   : > { %v2059_v16 = vsub.f32 1.0, %v2058_v11  ;;  %v6053_v37 = vmul.f32 %v833_v25, %v5949_v47  ;;  %vm2092_vm2 = vweird.f32 %v6021_v60  ;;  %v6059_v13 = vmul.f32 %v3841_v9, %v707_v54 }
 0x160   : > { %v2050_v58 = vsel %vm6031_vm15, %v3839_v6, %v2046_v43  ;;  %v3845_v45 = vpop.eup %3844  ;;  %3850 = vrcp.f32 %v6047_v26  ;;  %v2096_v59 = vand.u32 2147483647, %v6021_v60  ;;  %v510_v33 = vmul.f32 1.442695, %v325_v49 }
 0x161   : > { %v2055_v10 = vsel %vm6013_vm13, %v2054_v0, %v2050_v58  ;;  %v2060_v53 = vmul.f32 %v3843_v36, %v2059_v16  ;;  %v3847_v29 = vpop.eup %3846  ;;  %v2073_v18 = vmul.f32 %v3845_v45, %v6019_v15  ;;  %vm960_vm6 = vcmp.gt.f32.partialorder %v5937_v62, 20.0 }
 0x162   : > { %v2056_v61 = vmul.f32 %v2055_v10, %v1086_v12  ;;  %vm6070_vm4 = vcmp.eq.f32.partialorder %v2081_v32, 8.507059e+37  ;;  %v2084_v50 = vor.u32 1.1754944e-38, %v2083_v8  ;;  %v2088_v39 = vmul.f32 %v3847_v29, %v6021_v60 }
 0x163   : > { %v2061_v30 = vadd.f32 %v3843_v36, %v2060_v53  ;;  %v2074_v7 = vsub.f32 1.0, %v2073_v18  ;;  %vm2078_vm5 = vweird.f32 %v3845_v45  ;;  %vm961_vm9 = vcmp.gt.f32.partialorder %v5949_v47, 20.0 }
 0x164   : > { %v3262_v28 = vsel %vm958_vm11, %v5757_v24, %v2056_v61  ;;  %v2098_v55 = vand.u32 2147483648, %v6021_v60  ;;  %v3849_v63 = vpop.eup %3848  ;;  %v2089_v52 = vsub.f32 1.0, %v2088_v39  ;;  %vm2093_vm8 = vweird.f32 %v3847_v29  ;;  %vm6091_vm11 = vmor %vm2077_vm10, %vm2078_vm5 }
 0x165   : > { %3390 = vst [vmem:[%s4528_s17 + $0x190] sm:$0xff] %v3262_v28  ;;  %v2065_v17 = vsel %vm6063_vm3, %v3843_v36, %v2061_v30  ;;  %v6084_v1 = vadd.f32 2.0, %v6059_v13  ;;  %v2075_v24 = vmul.f32 %v3845_v45, %v2074_v7  ;;  %v708_v22 = vadd.f32 2.0, %v3849_v63  ;;  %vm6099_vm13 = vmor %vm2092_vm2, %vm2093_vm8  ;;  %v6119_v36 = vld [vmem:[%s4344_s24 + $0x1d0] sm:$0xff] }
 0x166   : > { %v2070_v6 = vsel %vm6036_vm0, %v2069_v21, %v2065_v17  ;;  %3852 = vpow2.f32 %v510_v33  ;;  %v3851_v25 = vpop.eup %3850  ;;  %v2090_v27 = vmul.f32 %v3847_v29, %v2089_v52  ;;  %v2111_v12 = vand.u32 2147483647, %v6047_v26 }
 0x167   : > { %v2071_v2 = vmul.f32 %v2070_v6, %v1087_v14  ;;  %3854 = vrcp.f32 %v6084_v1  ;;  %v2076_v56 = vadd.f32 %v3845_v45, %v2075_v24  ;;  %vm6103_vm12 = vcmp.eq.f32.partialorder %v2096_v59, 8.507059e+37  ;;  %v6164_v59 = vld [vmem:[%s4344_s24 + $0x1e0] sm:$0xff] }
 0x168   : > { %v2099_v34 = vor.u32 1.1754944e-38, %v2098_v55  ;;  %v2103_v15 = vmul.f32 %v3851_v25, %v6047_v26  ;;  %v2091_v19 = vadd.f32 %v3847_v29, %v2090_v27  ;;  %v2113_v0 = vand.u32 2147483648, %v6047_v26 }
 0x169   : > { %v3263_v9 = vsel %vm959_vm7, %v5778_v23, %v2071_v2  ;;  %v6112_v20 = vmul.f32 %v3849_v63, %v708_v22  ;;  %v2080_v60 = vsel %vm6091_vm11, %v3845_v45, %v2076_v56  ;;  %vm2107_vm14 = vweird.f32 %v6047_v26  ;;  %v6195_v2 = vld [vmem:[%s4344_s24 + $0x1f0] sm:$0xff] }
 0x16a   : > { %3391 = vst [vmem:[%s4528_s17 + $0x198] sm:$0xff] %v3263_v9  ;;  %v2104_v49 = vsub.f32 1.0, %v2103_v15  ;;  %vm2108_vm15 = vweird.f32 %v3851_v25  ;;  %v2085_v4 = vsel %vm6070_vm4, %v2084_v50, %v2080_v60  ;;  %v2095_v23 = vsel %vm6099_vm13, %v3847_v29, %v2091_v19  ;;  %v6149_v29 = vld [vmem:[%s4344_s24 + $0x1d8] sm:$0xff] }
 0x16b   : > { %v1090_v14 = vmul.f32 %v6024_v5, %v5952_v41  ;;  %vm6127_vm0 = vcmp.eq.f32.partialorder %v2111_v12, 8.507059e+37  ;;  %v2086_v48 = vmul.f32 %v2085_v4, %v6042_v51  ;;  %v2100_v21 = vsel %vm6103_vm12, %v2099_v34, %v2095_v23  ;;  %vm6138_vm7 = vmor %vm2107_vm14, %vm2108_vm15 }
 0x16c   : > { %v3853_v11 = vpop.eup %3852  ;;  %v2105_v54 = vmul.f32 %v3851_v25, %v2104_v49  ;;  %v6135_v43 = vadd.f32 2.0, %v6112_v20  ;;  %v2101_v5 = vmul.f32 %v2100_v21, %v6053_v37  ;;  %v2114_v16 = vor.u32 1.1754944e-38, %v2113_v0 }
 0x16d   : > { %v3855_v32 = vpop.eup %3854  ;;  %v709_v26 = vadd.f32 2.0, %v3853_v11  ;;  %v326_v58 = vmin.f32 %v6119_v36, 20.0  ;;  %v3264_v51 = vsel %vm960_vm6, %v5937_v62, %v2086_v48  ;;  %v2128_v53 = vand.u32 2147483648, %v6084_v1 }
 0x16e   : > { %v2106_v45 = vadd.f32 %v3851_v25, %v2105_v54  ;;  %v2118_v10 = vmul.f32 %v3855_v32, %v6084_v1  ;;  %3392 = vst [vmem:[%s4528_s17 + $0x1a0] sm:$0xff] %v3264_v51  ;;  %v3265_v37 = vsel %vm961_vm9, %v5949_v47, %v2101_v5  ;;  %vm2122_vm1 = vweird.f32 %v6084_v1 }
 0x16f   : > { %v2126_v61 = vand.u32 2147483647, %v6084_v1  ;;  %3856 = vrcp.f32 %v6135_v43  ;;  %3393 = vst [vmem:[%s4528_s17 + $0x1a8] sm:$0xff] %v3265_v37  ;;  %vm2123_vm10 = vweird.f32 %v3855_v32  ;;  %v6161_v18 = vmul.f32 %v3853_v11, %v709_v26 }
 0x170   : > { %v2110_v62 = vsel %vm6138_vm7, %v3851_v25, %v2106_v45  ;;  %v2119_v3 = vsub.f32 1.0, %v2118_v10  ;;  %vm962_vm2 = vcmp.gt.f32.partialorder %v5952_v41, 20.0  ;;  %v512_v33 = vmul.f32 1.442695, %v326_v58  ;;  %vm6177_vm3 = vmor %vm2122_vm1, %vm2123_vm10 }
 0x171   : > { %v2115_v47 = vsel %vm6127_vm0, %v2114_v16, %v2110_v62  ;;  %v327_v30 = vmin.f32 %v6149_v29, 20.0  ;;  %v1091_v39 = vmul.f32 %v6059_v13, %v5962_v42  ;;  %v2129_v7 = vor.u32 1.1754944e-38, %v2128_v53  ;;  %v6225_v16 = vld [vmem:[%s4344_s24 + $0x200] sm:$0xff] }
 0x172   : > { %v2116_v50 = vmul.f32 %v2115_v47, %v1090_v14  ;;  %v2120_v28 = vmul.f32 %v3855_v32, %v2119_v3  ;;  %v6182_v63 = vadd.f32 2.0, %v6161_v18  ;;  %3858 = vpow2.f32 %v512_v33 }
 0x173   : > { %v514_v17 = vmul.f32 1.442695, %v327_v30  ;;  %v328_v52 = vmin.f32 %v6164_v59, 20.0  ;;  %vm2127_vm6 = vcmp.eq.f32.partialorder %v2126_v61, 8.507059e+37  ;;  %v329_v24 = vmin.f32 %v6171_v31, 20.0 }
 0x174   : > { %v3266_v6 = vsel %vm962_vm2, %v5952_v41, %v2116_v50  ;;  %v2121_v13 = vadd.f32 %v3855_v32, %v2120_v28  ;;  %vm963_vm4 = vcmp.gt.f32.partialorder %v5962_v42, 20.0  ;;  %3860 = vrcp.f32 %v6182_v63  ;;  %v6198_v41 = vld [vmem:[%s4344_s24 + $0x1f8] sm:$0xff] }
 0x175   : > { %v3857_v1 = vpop.eup %3856  ;;  %3394 = vst [vmem:[%s4528_s17 + $0x1b0] sm:$0xff] %v3266_v6  ;;  %vm2137_vm5 = vweird.f32 %v6135_v43  ;;  %3862 = vpow2.f32 %v514_v17  ;;  %v2141_v27 = vand.u32 2147483647, %v6135_v43  ;;  %v2143_v12 = vand.u32 2147483648, %v6135_v43  ;;  %v6249_v17 = vld [vmem:[%s4344_s24 + $0x208] sm:$0xff] }
 0x176   : > { %v2125_v22 = vsel %vm6177_vm3, %v3855_v32, %v2121_v13  ;;  %v2133_v25 = vmul.f32 %v3857_v1, %v6135_v43  ;;  %v516_v56 = vmul.f32 1.442695, %v328_v52  ;;  %vm2138_vm9 = vweird.f32 %v3857_v1 }
 0x177   : > { %v2130_v35 = vsel %vm2127_vm6, %v2129_v7, %v2125_v22  ;;  %v518_v34 = vmul.f32 1.442695, %v329_v24  ;;  %v1092_v9 = vmul.f32 %v6112_v20, %v6001_v57  ;;  %v330_v19 = vmin.f32 %v6195_v2, 20.0  ;;  %vm6212_vm8 = vmor %vm2137_vm5, %vm2138_vm9 }
 0x178   : > { %v2131_v44 = vmul.f32 %v2130_v35, %v1091_v39  ;;  %v2134_v40 = vsub.f32 1.0, %v2133_v25  ;;  %v3859_v15 = vpop.eup %3858  ;;  %3864 = vpow2.f32 %v516_v56  ;;  %v331_v0 = vmin.f32 %v6198_v41, 20.0 }
 0x179   : > { %v710_v4 = vadd.f32 2.0, %v3859_v15  ;;  %3866 = vpow2.f32 %v518_v34  ;;  %vm6216_vm11 = vcmp.eq.f32.partialorder %v2141_v27, 8.507059e+37  ;;  %v2144_v38 = vor.u32 1.1754944e-38, %v2143_v12 }
 0x17a   : > { %v3267_v60 = vsel %vm963_vm4, %v5962_v42, %v2131_v44  ;;  %v2135_v49 = vmul.f32 %v3857_v1, %v2134_v40  ;;  %v3861_v23 = vpop.eup %3860  ;;  %vm2152_vm13 = vweird.f32 %v6182_v63  ;;  %v520_v42 = vmul.f32 1.442695, %v330_v19 }
 0x17b   : > { %3395 = vst [vmem:[%s4528_s17 + $0x1b8] sm:$0xff] %v3267_v60  ;;  %v3863_v11 = vpop.eup %3862  ;;  %v2148_v21 = vmul.f32 %v3861_v23, %v6182_v63  ;;  %v2156_v54 = vand.u32 2147483647, %v6182_v63  ;;  %v838_v32 = vmul.f32 %v3859_v15, %v710_v4  ;;  %v2158_v43 = vand.u32 2147483648, %v6182_v63 }
 0x17c   : > { %v2136_v48 = vadd.f32 %v3857_v1, %v2135_v49  ;;  %v711_v5 = vadd.f32 2.0, %v3863_v11  ;;  %3868 = vpow2.f32 %v520_v42  ;;  %v522_v8 = vmul.f32 1.442695, %v331_v0 }
 0x17d   : > { %v2149_v58 = vsub.f32 1.0, %v2148_v21  ;;  %vm2153_vm12 = vweird.f32 %v3861_v23  ;;  %v1222_v51 = vadd.f32 2.0, %v838_v32  ;;  %vm964_vm14 = vcmp.gt.f32.partialorder %v6001_v57, 20.0 }
 0x17e   : > { %v2140_v26 = vsel %vm6212_vm8, %v3857_v1, %v2136_v48  ;;  %v3865_v45 = vpop.eup %3864  ;;  %v1093_v53 = vmul.f32 %v6161_v18, %v6009_v46  ;;  %v839_v37 = vmul.f32 %v3863_v11, %v711_v5  ;;  %v332_v47 = vmin.f32 %v6225_v16, 20.0  ;;  %vm6237_vm15 = vmor %vm2152_vm13, %vm2153_vm12 }
 0x17f   : > { %v2145_v10 = vsel %vm6216_vm11, %v2144_v38, %v2140_v26  ;;  %v3867_v61 = vpop.eup %3866  ;;  %v2150_v3 = vmul.f32 %v3861_v23, %v2149_v58  ;;  %3870 = vrcp.f32 %v1222_v51  ;;  %vm6241_vm0 = vcmp.eq.f32.partialorder %v2156_v54, 8.507059e+37 }
 0x180   : > { %v2146_v62 = vmul.f32 %v2145_v10, %v1092_v9  ;;  %v2159_v18 = vor.u32 1.1754944e-38, %v2158_v43  ;;  %v6245_v50 = vadd.f32 2.0, %v839_v37  ;;  %3872 = vpow2.f32 %v522_v8 }
 0x181   : > { %v2151_v28 = vadd.f32 %v3861_v23, %v2150_v3  ;;  %v712_v7 = vadd.f32 2.0, %v3865_v45  ;;  %v713_v55 = vadd.f32 2.0, %v3867_v61  ;;  %vm965_vm7 = vcmp.gt.f32.partialorder %v6009_v46, 20.0 }
 0x182   : > { %v3268_v39 = vsel %vm964_vm14, %v6001_v57, %v2146_v62  ;;  %v3869_v63 = vpop.eup %3868  ;;  %3874 = vrcp.f32 %v6245_v50  ;;  %v524_v13 = vmul.f32 1.442695, %v332_v47  ;;  %v333_v22 = vmin.f32 %v6249_v17, 20.0 }
 0x183   : > { %3396 = vst [vmem:[%s4528_s17 + $0x1c0] sm:$0xff] %v3268_v39  ;;  %v2155_v52 = vsel %vm6237_vm15, %v3861_v23, %v2151_v28  ;;  %v840_v6 = vmul.f32 %v3865_v45, %v712_v7  ;;  %v841_v57 = vmul.f32 %v3867_v61, %v713_v55  ;;  %v714_v1 = vadd.f32 2.0, %v3869_v63 }
 0x184   : > { %v2160_v24 = vsel %vm6241_vm0, %v2159_v18, %v2155_v52  ;;  %v1094_v27 = vmul.f32 %v838_v32, %v6119_v36  ;;  %v2171_v12 = vand.u32 2147483647, %v1222_v51  ;;  %v2173_v56 = vand.u32 2147483648, %v1222_v51 }
 0x185   : > { %v3871_v25 = vpop.eup %3870  ;;  %v2161_v35 = vmul.f32 %v2160_v24, %v1093_v53  ;;  %vm2167_vm1 = vweird.f32 %v1222_v51  ;;  %v1095_v34 = vmul.f32 %v839_v37, %v6149_v29  ;;  %v6261_v15 = vadd.f32 2.0, %v840_v6 }
 0x186   : > { %v3873_v44 = vpop.eup %3872  ;;  %v2163_v40 = vmul.f32 %v3871_v25, %v1222_v51  ;;  %vm966_vm10 = vcmp.gt.f32.partialorder %v6119_v36, 20.0  ;;  %v2186_v19 = vand.u32 2147483647, %v6245_v50  ;;  %v2188_v0 = vand.u32 2147483648, %v6245_v50 }
 0x187   : > { %v3269_v9 = vsel %vm965_vm7, %v6009_v46, %v2161_v35  ;;  %v6269_v60 = vadd.f32 2.0, %v841_v57  ;;  %vm2168_vm2 = vweird.f32 %v3871_v25  ;;  %3876 = vrcp.f32 %v6261_v15 }
 0x188   : > { %v3875_v49 = vpop.eup %3874  ;;  %3397 = vst [vmem:[%s4528_s17 + $0x1c8] sm:$0xff] %v3269_v9  ;;  %v2164_v4 = vsub.f32 1.0, %v2163_v40  ;;  %v6273_v23 = vmul.f32 %v3869_v63, %v714_v1  ;;  %vm6275_vm3 = vcmp.eq.f32.partialorder %v2171_v12, 8.507059e+37  ;;  %v2174_v46 = vor.u32 1.1754944e-38, %v2173_v56  ;;  %vm6285_vm5 = vmor %vm2167_vm1, %vm2168_vm2 }
 0x189   : > { %v2178_v20 = vmul.f32 %v3875_v49, %v6245_v50  ;;  %3878 = vrcp.f32 %v6269_v60  ;;  %vm967_vm6 = vcmp.gt.f32.partialorder %v6149_v29, 20.0  ;;  %vm2182_vm4 = vweird.f32 %v6245_v50 }
 0x18a   : > { %v2165_v38 = vmul.f32 %v3871_v25, %v2164_v4  ;;  %v2201_v42 = vand.u32 2147483647, %v6261_v15  ;;  %v715_v11 = vadd.f32 2.0, %v3873_v44  ;;  %vm2183_vm9 = vweird.f32 %v3875_v49 }
 0x18b   : > { %v2179_v21 = vsub.f32 1.0, %v2178_v20  ;;  %vm6289_vm8 = vcmp.eq.f32.partialorder %v2186_v19, 8.507059e+37  ;;  %v2189_v32 = vor.u32 1.1754944e-38, %v2188_v0  ;;  %v6294_v5 = vmul.f32 %v840_v6, %v6164_v59  ;;  %vm6308_vm13 = vmor %vm2182_vm4, %vm2183_vm9  ;;  %v6369_v0 = vld [vmem:[%s4344_s24 + $0x210] sm:$0xff] }
 0x18c   : > { %v2166_v43 = vadd.f32 %v3871_v25, %v2165_v38  ;;  %v6297_v8 = vmul.f32 %v841_v57, %v6171_v31  ;;  %v6300_v26 = vadd.f32 2.0, %v6273_v23  ;;  %vm2197_vm11 = vweird.f32 %v6261_v15 }
 0x18d   : > { %v2180_v58 = vmul.f32 %v3875_v49, %v2179_v21  ;;  %v2203_v51 = vand.u32 2147483648, %v6261_v15  ;;  %3880 = vpow2.f32 %v524_v13  ;;  %v3877_v45 = vpop.eup %3876  ;;  %vm6312_vm12 = vcmp.eq.f32.partialorder %v2201_v42, 8.507059e+37 }
 0x18e   : > { %v2170_v10 = vsel %vm6285_vm5, %v3871_v25, %v2166_v43  ;;  %3882 = vrcp.f32 %v6300_v26  ;;  %v6317_v61 = vmul.f32 %v3873_v44, %v715_v11  ;;  %v2193_v33 = vmul.f32 %v3877_v45, %v6261_v15 }
 0x18f   : > { %v3879_v62 = vpop.eup %3878  ;;  %v2175_v3 = vsel %vm6275_vm3, %v2174_v46, %v2170_v10  ;;  %v2181_v47 = vadd.f32 %v3875_v49, %v2180_v58  ;;  %vm2212_vm14 = vweird.f32 %v6269_v60  ;;  %vm968_vm15 = vcmp.gt.f32.partialorder %v6164_v59, 20.0 }
 0x190   : > { %v2176_v30 = vmul.f32 %v2175_v3, %v1094_v27  ;;  %v2208_v18 = vmul.f32 %v3879_v62, %v6269_v60  ;;  %v2216_v50 = vand.u32 2147483647, %v6269_v60  ;;  %v2218_v39 = vand.u32 2147483648, %v6269_v60 }
 0x191   : > { %v2185_v28 = vsel %vm6308_vm13, %v3875_v49, %v2181_v47  ;;  %v2194_v7 = vsub.f32 1.0, %v2193_v33  ;;  %vm2198_vm0 = vweird.f32 %v3877_v45  ;;  %vm969_vm7 = vcmp.gt.f32.partialorder %v6171_v31, 20.0  ;;  %v6418_v47 = vld [vmem:[%s4344_s24 + $0x220] sm:$0xff] }
 0x192   : > { %vm2213_vm1 = vweird.f32 %v3879_v62  ;;  %v3270_v55 = vsel %vm966_vm10, %v6119_v36, %v2176_v30  ;;  %v2190_v63 = vsel %vm6289_vm8, %v2189_v32, %v2185_v28  ;;  %v2209_v52 = vsub.f32 1.0, %v2208_v18  ;;  %vm6343_vm10 = vmor %vm2197_vm11, %vm2198_vm0  ;;  %v6425_v18 = vld [vmem:[%s4344_s24 + $0x228] sm:$0xff] }
 0x193   : > { %v6336_v6 = vadd.f32 2.0, %v6317_v61  ;;  %v3881_v13 = vpop.eup %3880  ;;  %3398 = vst [vmem:[%s4528_s17 + $0x1d0] sm:$0xff] %v3270_v55  ;;  %v2191_v24 = vmul.f32 %v2190_v63, %v1095_v34  ;;  %v2195_v57 = vmul.f32 %v3877_v45, %v2194_v7  ;;  %v2204_v1 = vor.u32 1.1754944e-38, %v2203_v51  ;;  %vm6358_vm3 = vmor %vm2212_vm14, %vm2213_vm1  ;;  %v6405_v51 = vld [vmem:[%s4344_s24 + $0x218] sm:$0xff] }
 0x194   : > { %v526_v25 = vmul.f32 1.442695, %v333_v22  ;;  %v3883_v35 = vpop.eup %3882  ;;  %v2210_v27 = vmul.f32 %v3879_v62, %v2209_v52  ;;  %vm6347_vm2 = vcmp.eq.f32.partialorder %v2216_v50, 8.507059e+37  ;;  %v2219_v56 = vor.u32 1.1754944e-38, %v2218_v39 }
 0x195   : > { %3884 = vrcp.f32 %v6336_v6  ;;  %v3271_v22 = vsel %vm967_vm6, %v6149_v29, %v2191_v24  ;;  %v2196_v44 = vadd.f32 %v3877_v45, %v2195_v57  ;;  %v2223_v34 = vmul.f32 %v3883_v35, %v6300_v26  ;;  %v6439_v24 = vld [vmem:[%s4344_s24 + $0x230] sm:$0xff] }
 0x196   : > { %vm2227_vm4 = vweird.f32 %v6300_v26  ;;  %3399 = vst [vmem:[%s4528_s17 + $0x1d8] sm:$0xff] %v3271_v22  ;;  %v2211_v15 = vadd.f32 %v3879_v62, %v2210_v27  ;;  %vm970_vm5 = vcmp.gt.f32.partialorder %v6195_v2, 20.0  ;;  %v2231_v9 = vand.u32 2147483647, %v6300_v26 }
 0x197   : > { %v2233_v29 = vand.u32 2147483648, %v6300_v26  ;;  %v716_v19 = vadd.f32 2.0, %v3881_v13  ;;  %v2200_v60 = vsel %vm6343_vm10, %v3877_v45, %v2196_v44  ;;  %v2224_v49 = vsub.f32 1.0, %v2223_v34 }
 0x198   : > { %vm2228_vm6 = vweird.f32 %v3883_v35  ;;  %3886 = vpow2.f32 %v526_v25  ;;  %v2205_v4 = vsel %vm6312_vm12, %v2204_v1, %v2200_v60  ;;  %v2215_v14 = vsel %vm6358_vm3, %v3879_v62, %v2211_v15 }
 0x199   : > { %v1098_v46 = vmul.f32 %v6273_v23, %v6195_v2  ;;  %v6379_v20 = vmul.f32 %v3881_v13, %v716_v19  ;;  %v2206_v38 = vmul.f32 %v2205_v4, %v6294_v5  ;;  %v2220_v42 = vsel %vm6347_vm2, %v2219_v56, %v2215_v14  ;;  %vm6388_vm9 = vmor %vm2227_vm4, %vm2228_vm6 }
 0x19a   : > { %v2225_v11 = vmul.f32 %v3883_v35, %v2224_v49  ;;  %v334_v48 = vmin.f32 %v6369_v0, 20.0  ;;  %v2221_v54 = vmul.f32 %v2220_v42, %v6297_v8  ;;  %vm6392_vm8 = vcmp.eq.f32.partialorder %v2231_v9, 8.507059e+37  ;;  %v6461_v49 = vld [vmem:[%s4344_s24 + $0x238] sm:$0xff] }
 0x19b   : > { %v3885_v21 = vpop.eup %3884  ;;  %v2234_v43 = vor.u32 1.1754944e-38, %v2233_v29  ;;  %v6397_v5 = vadd.f32 2.0, %v6379_v20  ;;  %v3272_v58 = vsel %vm968_vm15, %v6164_v59, %v2206_v38  ;;  %vm2242_vm11 = vweird.f32 %v6336_v6 }
 0x19c   : > { %v2226_v8 = vadd.f32 %v3883_v35, %v2225_v11  ;;  %v2238_v26 = vmul.f32 %v3885_v21, %v6336_v6  ;;  %3400 = vst [vmem:[%s4528_s17 + $0x1e0] sm:$0xff] %v3272_v58  ;;  %v3273_v45 = vsel %vm969_vm7, %v6171_v31, %v2221_v54  ;;  %v2246_v10 = vand.u32 2147483647, %v6336_v6 }
 0x19d   : > { %v2248_v53 = vand.u32 2147483648, %v6336_v6  ;;  %3888 = vrcp.f32 %v6397_v5  ;;  %3401 = vst [vmem:[%s4528_s17 + $0x1e8] sm:$0xff] %v3273_v45  ;;  %vm2243_vm13 = vweird.f32 %v3885_v21  ;;  %v528_v3 = vmul.f32 1.442695, %v334_v48 }
 0x19e   : > { %v3887_v59 = vpop.eup %3886  ;;  %v2230_v37 = vsel %vm6388_vm9, %v3883_v35, %v2226_v8  ;;  %v2239_v62 = vsub.f32 1.0, %v2238_v26  ;;  %vm971_vm12 = vcmp.gt.f32.partialorder %v6198_v41, 20.0  ;;  %v335_v30 = vmin.f32 %v6405_v51, 20.0  ;;  %vm6431_vm14 = vmor %vm2242_vm11, %vm2243_vm13 }
 0x19f   : > { %v2235_v31 = vsel %vm6392_vm8, %v2234_v43, %v2230_v37  ;;  %v717_v33 = vadd.f32 2.0, %v3887_v59  ;;  %v1099_v39 = vmul.f32 %v6317_v61, %v6198_v41  ;;  %3890 = vpow2.f32 %v528_v3  ;;  %v6488_v37 = vld [vmem:[%s4344_s24 + $0x248] sm:$0xff] }
 0x1a0   : > { %v2236_v50 = vmul.f32 %v2235_v31, %v1098_v46  ;;  %v2240_v28 = vmul.f32 %v3885_v21, %v2239_v62  ;;  %v2249_v55 = vor.u32 1.1754944e-38, %v2248_v53  ;;  %v530_v52 = vmul.f32 1.442695, %v335_v30 }
 0x1a1   : > { %v6435_v63 = vmul.f32 %v3887_v59, %v717_v33  ;;  %v336_v13 = vmin.f32 %v6418_v47, 20.0  ;;  %vm2247_vm15 = vcmp.eq.f32.partialorder %v2246_v10, 8.507059e+37  ;;  %v337_v6 = vmin.f32 %v6425_v18, 20.0 }
 0x1a2   : > { %v3274_v61 = vsel %vm970_vm5, %v6195_v2, %v2236_v50  ;;  %v2241_v57 = vadd.f32 %v3885_v21, %v2240_v28  ;;  %vm2257_vm0 = vweird.f32 %v6397_v5  ;;  %3892 = vpow2.f32 %v530_v52 }
 0x1a3   : > { %v3889_v1 = vpop.eup %3888  ;;  %3402 = vst [vmem:[%s4528_s17 + $0x1f0] sm:$0xff] %v3274_v61  ;;  %v6448_v25 = vadd.f32 2.0, %v6435_v63  ;;  %v532_v35 = vmul.f32 1.442695, %v336_v13  ;;  %v534_v12 = vmul.f32 1.442695, %v337_v6  ;;  %v1100_v14 = vmul.f32 %v6379_v20, %v6225_v16 }
 0x1a4   : > { %v2245_v36 = vsel %vm6431_vm14, %v3885_v21, %v2241_v57  ;;  %v2253_v27 = vmul.f32 %v3889_v1, %v6397_v5  ;;  %v338_v2 = vmin.f32 %v6439_v24, 20.0  ;;  %v2261_v22 = vand.u32 2147483647, %v6397_v5  ;;  %v6477_v20 = vld [vmem:[%s4344_s24 + $0x240] sm:$0xff] }
 0x1a5   : > { %v2250_v56 = vsel %vm2247_vm15, %v2249_v55, %v2245_v36  ;;  %v2263_v44 = vand.u32 2147483648, %v6397_v5  ;;  %3894 = vrcp.f32 %v6448_v25  ;;  %v3891_v40 = vpop.eup %3890  ;;  %vm2258_vm7 = vweird.f32 %v3889_v1 }
 0x1a6   : > { %v2251_v34 = vmul.f32 %v2250_v56, %v1099_v39  ;;  %v2254_v15 = vsub.f32 1.0, %v2253_v27  ;;  %3896 = vpow2.f32 %v532_v35  ;;  %v718_v9 = vadd.f32 2.0, %v3891_v40  ;;  %vm6468_vm1 = vmor %vm2257_vm0, %vm2258_vm7 }
 0x1a7   : > { %3898 = vpow2.f32 %v534_v12  ;;  %v536_v60 = vmul.f32 1.442695, %v338_v2  ;;  %v2264_v38 = vor.u32 1.1754944e-38, %v2263_v44  ;;  %vm2262_vm10 = vcmp.eq.f32.partialorder %v2261_v22, 8.507059e+37 }
 0x1a8   : > { %v3275_v29 = vsel %vm971_vm12, %v6198_v41, %v2251_v34  ;;  %v2255_v19 = vmul.f32 %v3889_v1, %v2254_v15  ;;  %v3893_v4 = vpop.eup %3892  ;;  %v846_v42 = vmul.f32 %v3891_v40, %v718_v9  ;;  %vm972_vm2 = vcmp.gt.f32.partialorder %v6225_v16, 20.0 }
 0x1a9   : > { %3403 = vst [vmem:[%s4528_s17 + $0x1f8] sm:$0xff] %v3275_v29  ;;  %v719_v41 = vadd.f32 2.0, %v3893_v4  ;;  %3900 = vpow2.f32 %v536_v60  ;;  %v339_v54 = vmin.f32 %v6461_v49, 20.0  ;;  %vm2272_vm3 = vweird.f32 %v6448_v25 }
 0x1aa   : > { %v2256_v11 = vadd.f32 %v3889_v1, %v2255_v19  ;;  %v6473_v21 = vadd.f32 2.0, %v846_v42  ;;  %v2276_v26 = vand.u32 2147483647, %v6448_v25  ;;  %v2278_v45 = vand.u32 2147483648, %v6448_v25 }
 0x1ab   : > { %v3895_v48 = vpop.eup %3894  ;;  %v847_v5 = vmul.f32 %v3893_v4, %v719_v41  ;;  %v340_v59 = vmin.f32 %v6477_v20, 20.0  ;;  %v538_v33 = vmul.f32 1.442695, %v339_v54  ;;  %vm973_vm5 = vcmp.gt.f32.partialorder %v6249_v17, 20.0 }
 0x1ac   : > { %v3897_v23 = vpop.eup %3896  ;;  %v2260_v32 = vsel %vm6468_vm1, %v3889_v1, %v2256_v11  ;;  %v2268_v43 = vmul.f32 %v3895_v48, %v6448_v25  ;;  %3902 = vrcp.f32 %v6473_v21  ;;  %vm2273_vm4 = vweird.f32 %v3895_v48 }
 0x1ad   : > { %v3899_v58 = vpop.eup %3898  ;;  %v2265_v8 = vsel %vm2262_vm10, %v2264_v38, %v2260_v32  ;;  %v6490_v62 = vadd.f32 2.0, %v847_v5  ;;  %v720_v3 = vadd.f32 2.0, %v3897_v23  ;;  %v1101_v39 = vmul.f32 %v6435_v63, %v6249_v17  ;;  %vm6501_vm6 = vmor %vm2272_vm3, %vm2273_vm4 }
 0x1ae   : > { %v2266_v10 = vmul.f32 %v2265_v8, %v1100_v14  ;;  %v2269_v53 = vsub.f32 1.0, %v2268_v43  ;;  %v721_v31 = vadd.f32 2.0, %v3899_v58  ;;  %vm6505_vm9 = vcmp.eq.f32.partialorder %v2276_v26, 8.507059e+37 }
 0x1af   : > { %v3901_v30 = vpop.eup %3900  ;;  %v2279_v52 = vor.u32 1.1754944e-38, %v2278_v45  ;;  %3904 = vrcp.f32 %v6490_v62  ;;  %v848_v61 = vmul.f32 %v3897_v23, %v720_v3  ;;  %v540_v57 = vmul.f32 1.442695, %v340_v59  ;;  %v6667_v3 = vld [vmem:[%s4344_s24 + $0x260] sm:$0xff] }
 0x1b0   : > { %v3276_v50 = vsel %vm972_vm2, %v6225_v16, %v2266_v10  ;;  %v2270_v28 = vmul.f32 %v3895_v48, %v2269_v53  ;;  %v341_v16 = vmin.f32 %v6488_v37, 20.0  ;;  %v849_v63 = vmul.f32 %v3899_v58, %v721_v31 }
 0x1b1   : > { %3404 = vst [vmem:[%s4528_s17 + $0x200] sm:$0xff] %v3276_v50  ;;  %v1102_v1 = vmul.f32 %v846_v42, %v6369_v0  ;;  %vm2287_vm8 = vweird.f32 %v6473_v21  ;;  %v722_v25 = vadd.f32 2.0, %v3901_v30  ;;  %3906 = vpow2.f32 %v538_v33 }
 0x1b2   : > { %v2271_v13 = vadd.f32 %v3895_v48, %v2270_v28  ;;  %v3903_v6 = vpop.eup %3902  ;;  %v2291_v27 = vand.u32 2147483647, %v6473_v21  ;;  %v2293_v12 = vand.u32 2147483648, %v6473_v21  ;;  %vm974_vm11 = vcmp.gt.f32.partialorder %v6369_v0, 20.0 }
 0x1b3   : > { %v2283_v36 = vmul.f32 %v3903_v6, %v6473_v21  ;;  %v6522_v56 = vmul.f32 %v847_v5, %v6405_v51  ;;  %v6524_v22 = vadd.f32 2.0, %v848_v61  ;;  %v6526_v44 = vadd.f32 2.0, %v849_v63 }
 0x1b4   : > { %v2275_v35 = vsel %vm6501_vm6, %v3895_v48, %v2271_v13  ;;  %vm2288_vm13 = vweird.f32 %v3903_v6  ;;  %3908 = vpow2.f32 %v540_v57  ;;  %v2306_v9 = vand.u32 2147483647, %v6490_v62 }
 0x1b5   : > { %v2280_v2 = vsel %vm6505_vm9, %v2279_v52, %v2275_v35  ;;  %v2284_v34 = vsub.f32 1.0, %v2283_v36  ;;  %v3905_v15 = vpop.eup %3904  ;;  %v2308_v29 = vand.u32 2147483648, %v6490_v62  ;;  %3910 = vrcp.f32 %v6524_v22  ;;  %vm6542_vm14 = vmor %vm2287_vm8, %vm2288_vm13 }
 0x1b6   : > { %v2281_v40 = vmul.f32 %v2280_v2, %v1101_v39  ;;  %v850_v19 = vmul.f32 %v3901_v30, %v722_v25  ;;  %vm6534_vm12 = vcmp.eq.f32.partialorder %v2291_v27, 8.507059e+37  ;;  %v2298_v46 = vmul.f32 %v3905_v15, %v6490_v62 }
 0x1b7   : > { %v2285_v4 = vmul.f32 %v3903_v6, %v2284_v34  ;;  %v3907_v38 = vpop.eup %3906  ;;  %v2294_v11 = vor.u32 1.1754944e-38, %v2293_v12  ;;  %vm975_vm15 = vcmp.gt.f32.partialorder %v6405_v51, 20.0  ;;  %vm2302_vm0 = vweird.f32 %v6490_v62 }
 0x1b8   : > { %v3277_v60 = vsel %vm973_vm5, %v6249_v17, %v2281_v40  ;;  %v2321_v17 = vand.u32 2147483647, %v6524_v22  ;;  %3912 = vrcp.f32 %v6526_v44  ;;  %v2299_v48 = vsub.f32 1.0, %v2298_v46 }
 0x1b9   : > { %3405 = vst [vmem:[%s4528_s17 + $0x208] sm:$0xff] %v3277_v60  ;;  %v2286_v41 = vadd.f32 %v3903_v6, %v2285_v4  ;;  %vm2303_vm7 = vweird.f32 %v3905_v15  ;;  %v2323_v54 = vand.u32 2147483648, %v6524_v22  ;;  %vm6551_vm1 = vcmp.eq.f32.partialorder %v2306_v9, 8.507059e+37  ;;  %v6615_v9 = vld [vmem:[%s4344_s24 + $0x250] sm:$0xff] }
 0x1ba   : > { %v2309_v23 = vor.u32 1.1754944e-38, %v2308_v29  ;;  %v6555_v32 = vadd.f32 2.0, %v850_v19  ;;  %v723_v43 = vadd.f32 2.0, %v3907_v38  ;;  %v3909_v5 = vpop.eup %3908  ;;  %v2300_v8 = vmul.f32 %v3905_v15, %v2299_v48  ;;  %vm6567_vm10 = vmor %vm2302_vm0, %vm2303_vm7 }
 0x1bb   : > { %v2290_v58 = vsel %vm6542_vm14, %v3903_v6, %v2286_v41  ;;  %v1104_v26 = vmul.f32 %v848_v61, %v6418_v47  ;;  %v6561_v45 = vmul.f32 %v849_v63, %v6425_v18  ;;  %v3911_v10 = vpop.eup %3910  ;;  %vm2317_vm2 = vweird.f32 %v6524_v22 }
 0x1bc   : > { %v2295_v53 = vsel %vm6534_vm12, %v2294_v11, %v2290_v58  ;;  %vm6572_vm3 = vcmp.eq.f32.partialorder %v2321_v17, 8.507059e+37  ;;  %3914 = vrcp.f32 %v6555_v32  ;;  %v2301_v33 = vadd.f32 %v3905_v15, %v2300_v8 }
 0x1bd   : > { %v2296_v31 = vmul.f32 %v2295_v53, %v1102_v1  ;;  %v2313_v30 = vmul.f32 %v3911_v10, %v6524_v22  ;;  %v2324_v50 = vor.u32 1.1754944e-38, %v2323_v54  ;;  %vm976_vm4 = vcmp.gt.f32.partialorder %v6418_v47, 20.0  ;;  %v6646_v54 = vld [vmem:[%s4344_s24 + $0x258] sm:$0xff] }
 0x1be   : > { %v3913_v39 = vpop.eup %3912  ;;  %vm2318_vm5 = vweird.f32 %v3911_v10  ;;  %v2336_v62 = vand.u32 2147483647, %v6526_v44  ;;  %v851_v28 = vmul.f32 %v3907_v38, %v723_v43  ;;  %v724_v7 = vadd.f32 2.0, %v3909_v5 }
 0x1bf   : > { %v3278_v55 = vsel %vm974_vm11, %v6369_v0, %v2296_v31  ;;  %v2305_v52 = vsel %vm6567_vm10, %v3905_v15, %v2301_v33  ;;  %v2314_v13 = vsub.f32 1.0, %v2313_v30  ;;  %v2328_v61 = vmul.f32 %v3913_v39, %v6526_v44  ;;  %vm6598_vm11 = vmor %vm2317_vm2, %vm2318_vm5  ;;  %v6677_v33 = vld [vmem:[%s4344_s24 + $0x268] sm:$0xff]  ;;  %v6680_v30 = vld [vmem:[%s4344_s24 + $0x270] sm:$0xff] }
 0x1c0   : > { %3406 = vst [vmem:[%s4528_s17 + $0x210] sm:$0xff] %v3278_v55  ;;  %v2310_v63 = vsel %vm6551_vm1, %v2309_v23, %v2305_v52  ;;  %vm977_vm6 = vcmp.gt.f32.partialorder %v6425_v18, 20.0  ;;  %vm2332_vm9 = vweird.f32 %v6526_v44  ;;  %vm2333_vm8 = vweird.f32 %v3913_v39 }
 0x1c1   : > { %v2338_v57 = vand.u32 2147483648, %v6526_v44  ;;  %v2311_v0 = vmul.f32 %v2310_v63, %v6522_v56  ;;  %v2315_v6 = vmul.f32 %v3911_v10, %v2314_v13  ;;  %v2329_v1 = vsub.f32 1.0, %v2328_v61  ;;  %vm6621_vm12 = vmor %vm2332_vm9, %vm2333_vm8 }
 0x1c2   : > { %v6593_v25 = vadd.f32 2.0, %v851_v28  ;;  %v3915_v35 = vpop.eup %3914  ;;  %vm6602_vm13 = vcmp.eq.f32.partialorder %v2336_v62, 8.507059e+37  ;;  %v1106_v12 = vmul.f32 %v850_v19, %v6439_v24  ;;  %v2351_v2 = vand.u32 2147483647, %v6555_v32 }
 0x1c3   : > { %v6608_v56 = vmul.f32 %v3909_v5, %v724_v7  ;;  %v3279_v40 = vsel %vm975_vm15, %v6405_v51, %v2311_v0  ;;  %v2316_v34 = vadd.f32 %v3911_v10, %v2315_v6  ;;  %v2330_v22 = vmul.f32 %v3913_v39, %v2329_v1 }
 0x1c4   : > { %v2343_v15 = vmul.f32 %v3915_v35, %v6555_v32  ;;  %3407 = vst [vmem:[%s4528_s17 + $0x218] sm:$0xff] %v3279_v40  ;;  %v2339_v19 = vor.u32 1.1754944e-38, %v2338_v57  ;;  %vm978_vm14 = vcmp.gt.f32.partialorder %v6439_v24, 20.0  ;;  %vm2347_vm15 = vweird.f32 %v6555_v32 }
 0x1c5   : > { %v2353_v51 = vand.u32 2147483648, %v6555_v32  ;;  %3916 = vrcp.f32 %v6593_v25  ;;  %v2320_v60 = vsel %vm6598_vm11, %v3911_v10, %v2316_v34  ;;  %v2331_v4 = vadd.f32 %v3913_v39, %v2330_v22 }
 0x1c6   : > { %v2344_v14 = vsub.f32 1.0, %v2343_v15  ;;  %vm2348_vm0 = vweird.f32 %v3915_v35  ;;  %v2325_v44 = vsel %vm6572_vm3, %v2324_v50, %v2320_v60  ;;  %v6634_v46 = vadd.f32 2.0, %v6608_v56 }
 0x1c7   : > { %v542_v38 = vmul.f32 1.442695, %v341_v16  ;;  %v342_v42 = vmin.f32 %v6615_v9, 20.0  ;;  %v2326_v11 = vmul.f32 %v2325_v44, %v1104_v26  ;;  %v2335_v17 = vsel %vm6621_vm12, %v3913_v39, %v2331_v4  ;;  %vm6652_vm1 = vmor %vm2347_vm15, %vm2348_vm0 }
 0x1c8   : > { %v2345_v41 = vmul.f32 %v3915_v35, %v2344_v14  ;;  %vm6641_vm7 = vcmp.eq.f32.partialorder %v2351_v2, 8.507059e+37  ;;  %v2340_v21 = vsel %vm6602_vm13, %v2339_v19, %v2335_v17  ;;  %v2354_v23 = vor.u32 1.1754944e-38, %v2353_v51  ;;  %v6711_v51 = vld [vmem:[%s4344_s24 + $0x278] sm:$0xff] }
 0x1c9   : > { %v2366_v43 = vand.u32 2147483647, %v6593_v25  ;;  %3918 = vrcp.f32 %v6634_v46  ;;  %v3280_v5 = vsel %vm976_vm4, %v6418_v47, %v2326_v11  ;;  %v2341_v58 = vmul.f32 %v2340_v21, %v6561_v45 }
 0x1ca   : > { %v2346_v8 = vadd.f32 %v3915_v35, %v2345_v41  ;;  %v1107_v32 = vmul.f32 %v851_v28, %v6461_v49  ;;  %3408 = vst [vmem:[%s4528_s17 + $0x220] sm:$0xff] %v3280_v5  ;;  %v2368_v10 = vand.u32 2147483648, %v6593_v25  ;;  %3920 = vpow2.f32 %v542_v38  ;;  %v6724_v38 = vld [vmem:[%s4344_s24 + $0x280] sm:$0xff]  ;;  %v6727_v41 = vld [vmem:[%s4344_s24 + $0x288] sm:$0xff] }
 0x1cb   : > { %v3917_v26 = vpop.eup %3916  ;;  %v544_v53 = vmul.f32 1.442695, %v342_v42  ;;  %v343_v59 = vmin.f32 %v6646_v54, 20.0  ;;  %v3281_v47 = vsel %vm977_vm6, %v6425_v18, %v2341_v58  ;;  %vm2362_vm10 = vweird.f32 %v6593_v25 }
 0x1cc   : > { %v2350_v45 = vsel %vm6652_vm1, %v3915_v35, %v2346_v8  ;;  %v2358_v31 = vmul.f32 %v3917_v26, %v6593_v25  ;;  %3409 = vst [vmem:[%s4528_s17 + $0x228] sm:$0xff] %v3281_v47  ;;  %vm2363_vm2 = vweird.f32 %v3917_v26  ;;  %vm6685_vm3 = vcmp.eq.f32.partialorder %v2366_v43, 8.507059e+37 }
 0x1cd   : > { %v2355_v50 = vsel %vm6641_vm7, %v2354_v23, %v2350_v45  ;;  %3922 = vpow2.f32 %v544_v53  ;;  %v546_v28 = vmul.f32 1.442695, %v343_v59  ;;  %v344_v7 = vmin.f32 %v6667_v3, 20.0  ;;  %vm6702_vm5 = vmor %vm2362_vm10, %vm2363_vm2  ;;  %v6742_v59 = vld [vmem:[%s4344_s24 + $0x290] sm:$0xff] }
 0x1ce   : > { %v2356_v18 = vmul.f32 %v2355_v50, %v1106_v12  ;;  %v2359_v62 = vsub.f32 1.0, %v2358_v31  ;;  %v2369_v52 = vor.u32 1.1754944e-38, %v2368_v10  ;;  %vm2377_vm4 = vweird.f32 %v6634_v46 }
 0x1cf   : > { %v3919_v55 = vpop.eup %3918  ;;  %v345_v13 = vmin.f32 %v6677_v33, 20.0  ;;  %v346_v61 = vmin.f32 %v6680_v30, 20.0  ;;  %v2381_v6 = vand.u32 2147483647, %v6634_v46  ;;  %v2383_v36 = vand.u32 2147483648, %v6634_v46 }
 0x1d0   : > { %v3282_v63 = vsel %vm978_vm14, %v6439_v24, %v2356_v18  ;;  %v2360_v57 = vmul.f32 %v3917_v26, %v2359_v62  ;;  %v2373_v0 = vmul.f32 %v3919_v55, %v6634_v46  ;;  %v3921_v1 = vpop.eup %3920  ;;  %3924 = vpow2.f32 %v546_v28 }
 0x1d1   : > { %3410 = vst [vmem:[%s4528_s17 + $0x230] sm:$0xff] %v3282_v63  ;;  %v548_v27 = vmul.f32 1.442695, %v344_v7  ;;  %v550_v24 = vmul.f32 1.442695, %v345_v13  ;;  %vm2378_vm6 = vweird.f32 %v3919_v55  ;;  %v725_v40 = vadd.f32 2.0, %v3921_v1 }
 0x1d2   : > { %v2361_v12 = vadd.f32 %v3917_v26, %v2360_v57  ;;  %v2374_v2 = vsub.f32 1.0, %v2373_v0  ;;  %vm979_vm9 = vcmp.gt.f32.partialorder %v6461_v49, 20.0  ;;  %v552_v25 = vmul.f32 1.442695, %v346_v61  ;;  %vm6719_vm8 = vmor %vm2377_vm4, %vm2378_vm6 }
 0x1d3   : > { %v3923_v34 = vpop.eup %3922  ;;  %3926 = vpow2.f32 %v548_v27  ;;  %v853_v29 = vmul.f32 %v3921_v1, %v725_v40  ;;  %v1108_v4 = vmul.f32 %v6608_v56, %v6477_v20  ;;  %v2384_v44 = vor.u32 1.1754944e-38, %v2383_v36 }
 0x1d4   : > { %v2365_v22 = vsel %vm6702_vm5, %v3917_v26, %v2361_v12  ;;  %v2375_v15 = vmul.f32 %v3919_v55, %v2374_v2  ;;  %v726_v19 = vadd.f32 2.0, %v3923_v34  ;;  %3928 = vpow2.f32 %v550_v24 }
 0x1d5   : > { %v2370_v60 = vsel %vm6685_vm3, %v2369_v52, %v2365_v22  ;;  %vm2382_vm11 = vcmp.eq.f32.partialorder %v2381_v6, 8.507059e+37  ;;  %v1237_v17 = vadd.f32 2.0, %v853_v29  ;;  %3930 = vpow2.f32 %v552_v25 }
 0x1d6   : > { %v2371_v42 = vmul.f32 %v2370_v60, %v1107_v32  ;;  %v2376_v11 = vadd.f32 %v3919_v55, %v2375_v15  ;;  %v3925_v48 = vpop.eup %3924  ;;  %v854_v21 = vmul.f32 %v3923_v34, %v726_v19  ;;  %v347_v56 = vmin.f32 %v6711_v51, 20.0 }
 0x1d7   : > { %3932 = vrcp.f32 %v1237_v17  ;;  %v348_v23 = vmin.f32 %v6724_v38, 20.0  ;;  %vm980_vm13 = vcmp.gt.f32.partialorder %v6477_v20, 20.0  ;;  %v349_v58 = vmin.f32 %v6727_v41, 20.0 }
 0x1d8   : > { %v3283_v46 = vsel %vm979_vm9, %v6461_v49, %v2371_v42  ;;  %v2380_v16 = vsel %vm6719_vm8, %v3919_v55, %v2376_v11  ;;  %v6739_v32 = vadd.f32 2.0, %v854_v21  ;;  %v727_v26 = vadd.f32 2.0, %v3925_v48 }
 0x1d9   : > { %v3927_v43 = vpop.eup %3926  ;;  %3411 = vst [vmem:[%s4528_s17 + $0x238] sm:$0xff] %v3283_v46  ;;  %v2385_v5 = vsel %vm2382_vm11, %v2384_v44, %v2380_v16  ;;  %v2396_v53 = vand.u32 2147483647, %v1237_v17  ;;  %v554_v45 = vmul.f32 1.442695, %v347_v56  ;;  %v2398_v39 = vand.u32 2147483648, %v1237_v17 }
 0x1da   : > { %v2386_v8 = vmul.f32 %v2385_v5, %v1108_v4  ;;  %v728_v10 = vadd.f32 2.0, %v3927_v43  ;;  %v3929_v49 = vpop.eup %3928  ;;  %3934 = vrcp.f32 %v6739_v32  ;;  %v556_v31 = vmul.f32 1.442695, %v348_v23 }
 0x1db   : > { %v3931_v50 = vpop.eup %3930  ;;  %v855_v18 = vmul.f32 %v3925_v48, %v727_v26  ;;  %v558_v28 = vmul.f32 1.442695, %v349_v58  ;;  %v1109_v55 = vmul.f32 %v853_v29, %v6488_v37  ;;  %v729_v52 = vadd.f32 2.0, %v3929_v49 }
 0x1dc   : > { %v3284_v47 = vsel %vm980_vm13, %v6477_v20, %v2386_v8  ;;  %v856_v62 = vmul.f32 %v3927_v43, %v728_v10  ;;  %v730_v13 = vadd.f32 2.0, %v3931_v50  ;;  %v350_v61 = vmin.f32 %v6742_v59, 20.0 }
 0x1dd   : > { %3412 = vst [vmem:[%s4528_s17 + $0x240] sm:$0xff] %v3284_v47  ;;  %v3933_v7 = vpop.eup %3932  ;;  %vm2392_vm12 = vweird.f32 %v1237_v17  ;;  %vm6749_vm14 = vcmp.eq.f32.partialorder %v2396_v53, 8.507059e+37  ;;  %v6754_v57 = vmul.f32 %v854_v21, %v6615_v9  ;;  %vm981_vm15 = vcmp.gt.f32.partialorder %v6488_v37, 20.0 }
 0x1de   : > { %v2388_v63 = vmul.f32 %v3933_v7, %v1237_v17  ;;  %v2411_v0 = vand.u32 2147483647, %v6739_v32  ;;  %v2413_v6 = vand.u32 2147483648, %v6739_v32  ;;  %v6759_v1 = vadd.f32 2.0, %v855_v18 }
 0x1df   : > { %v6761_v35 = vadd.f32 2.0, %v856_v62  ;;  %vm2393_vm0 = vweird.f32 %v3933_v7  ;;  %v2399_v27 = vor.u32 1.1754944e-38, %v2398_v39  ;;  %3936 = vpow2.f32 %v554_v45 }
 0x1e0   : > { %v2389_v36 = vsub.f32 1.0, %v2388_v63  ;;  %v3935_v24 = vpop.eup %3934  ;;  %vm2407_vm7 = vweird.f32 %v6739_v32  ;;  %3938 = vrcp.f32 %v6759_v1  ;;  %v6765_v12 = vmul.f32 %v3929_v49, %v729_v52  ;;  %vm6773_vm1 = vmor %vm2392_vm12, %vm2393_vm0 }
 0x1e1   : > { %v6767_v2 = vmul.f32 %v3931_v50, %v730_v13  ;;  %v2403_v34 = vmul.f32 %v3935_v24, %v6739_v32  ;;  %v2426_v25 = vand.u32 2147483647, %v6759_v1  ;;  %3940 = vrcp.f32 %v6761_v35 }
 0x1e2   : > { %v2390_v40 = vmul.f32 %v3933_v7, %v2389_v36  ;;  %vm982_vm10 = vcmp.gt.f32.partialorder %v6615_v9, 20.0  ;;  %vm6778_vm2 = vcmp.eq.f32.partialorder %v2411_v0, 8.507059e+37  ;;  %v2414_v29 = vor.u32 1.1754944e-38, %v2413_v6 }
 0x1e3   : > { %v2428_v19 = vand.u32 2147483648, %v6759_v1  ;;  %3942 = vpow2.f32 %v556_v31  ;;  %v2404_v4 = vsub.f32 1.0, %v2403_v34  ;;  %vm2408_vm3 = vweird.f32 %v3935_v24 }
 0x1e4   : > { %v2391_v60 = vadd.f32 %v3933_v7, %v2390_v40  ;;  %v6784_v14 = vmul.f32 %v855_v18, %v6646_v54  ;;  %vm2422_vm4 = vweird.f32 %v6759_v1  ;;  %v6788_v44 = vmul.f32 %v856_v62, %v6667_v3  ;;  %vm6806_vm6 = vmor %vm2407_vm7, %vm2408_vm3 }
 0x1e5   : > { %v6791_v42 = vadd.f32 2.0, %v6765_v12  ;;  %3944 = vpow2.f32 %v558_v28  ;;  %v3937_v11 = vpop.eup %3936  ;;  %v2405_v48 = vmul.f32 %v3935_v24, %v2404_v4  ;;  %vm6795_vm5 = vcmp.eq.f32.partialorder %v2426_v25, 8.507059e+37 }
 0x1e6   : > { %v2395_v17 = vsel %vm6773_vm1, %v3933_v7, %v2391_v60  ;;  %v6800_v56 = vadd.f32 2.0, %v6767_v2  ;;  %v3939_v46 = vpop.eup %3938  ;;  %v2429_v43 = vor.u32 1.1754944e-38, %v2428_v19  ;;  %v2441_v5 = vand.u32 2147483647, %v6761_v35 }
 0x1e7   : > { %v2400_v16 = vsel %vm6749_vm14, %v2399_v27, %v2395_v17  ;;  %3946 = vrcp.f32 %v6791_v42  ;;  %v3941_v58 = vpop.eup %3940  ;;  %v2406_v26 = vadd.f32 %v3935_v24, %v2405_v48  ;;  %v2418_v10 = vmul.f32 %v3939_v46, %v6759_v1 }
 0x1e8   : > { %v2401_v8 = vmul.f32 %v2400_v16, %v1109_v55  ;;  %v2443_v49 = vand.u32 2147483648, %v6761_v35  ;;  %vm983_vm9 = vcmp.gt.f32.partialorder %v6646_v54, 20.0  ;;  %vm2423_vm8 = vweird.f32 %v3939_v46 }
 0x1e9   : > { %v3943_v53 = vpop.eup %3942  ;;  %v2433_v32 = vmul.f32 %v3941_v58, %v6761_v35  ;;  %vm2437_vm11 = vweird.f32 %v6761_v35  ;;  %v731_v47 = vadd.f32 2.0, %v3937_v11  ;;  %v2410_v31 = vsel %vm6806_vm6, %v3935_v24, %v2406_v26 }
 0x1ea   : > { %v3285_v45 = vsel %vm981_vm15, %v6488_v37, %v2401_v8  ;;  %v2419_v50 = vsub.f32 1.0, %v2418_v10  ;;  %vm984_vm13 = vcmp.gt.f32.partialorder %v6667_v3, 20.0  ;;  %3948 = vrcp.f32 %v6800_v56  ;;  %vm6838_vm15 = vmor %vm2422_vm4, %vm2423_vm8 }
 0x1eb   : > { %v6824_v39 = vpop.eup %3944  ;;  %3413 = vst [vmem:[%s4528_s17 + $0x248] sm:$0xff] %v3285_v45  ;;  %v2415_v18 = vsel %vm6778_vm2, %v2414_v29, %v2410_v31  ;;  %v2434_v62 = vsub.f32 1.0, %v2433_v32  ;;  %vm2438_vm12 = vweird.f32 %v3941_v58  ;;  %v2458_v28 = vand.u32 2147483648, %v6791_v42  ;;  %v6920_v31 = vld [vmem:[%s4344_s24 + $0x298] sm:$0xff] }
 0x1ec   : > { %v2416_v37 = vmul.f32 %v2415_v18, %v6754_v57  ;;  %v2420_v7 = vmul.f32 %v3939_v46, %v2419_v50  ;;  %vm6831_vm14 = vcmp.eq.f32.partialorder %v2441_v5, 8.507059e+37  ;;  %v2444_v52 = vor.u32 1.1754944e-38, %v2443_v49  ;;  %vm6850_vm7 = vmor %vm2437_vm11, %vm2438_vm12  ;;  %v6923_v50 = vld [vmem:[%s4344_s24 + $0x2a0] sm:$0xff] }
 0x1ed   : > { %v3947_v13 = vpop.eup %3946  ;;  %v2435_v20 = vmul.f32 %v3941_v58, %v2434_v62  ;;  %vm2452_vm0 = vweird.f32 %v6791_v42  ;;  %v6843_v0 = vmul.f32 %v3937_v11, %v731_v47  ;;  %v732_v57 = vadd.f32 2.0, %v3943_v53 }
 0x1ee   : > { %v3286_v6 = vsel %vm982_vm10, %v6615_v9, %v2416_v37  ;;  %v2421_v36 = vadd.f32 %v3939_v46, %v2420_v7  ;;  %v2448_v1 = vmul.f32 %v3947_v13, %v6791_v42  ;;  %v2456_v24 = vand.u32 2147483647, %v6791_v42 }
 0x1ef   : > { %3414 = vst [vmem:[%s4528_s17 + $0x250] sm:$0xff] %v3286_v6  ;;  %v2436_v40 = vadd.f32 %v3941_v58, %v2435_v20  ;;  %vm985_vm1 = vcmp.gt.f32.partialorder %v6677_v33, 20.0  ;;  %v2459_v34 = vor.u32 1.1754944e-38, %v2458_v28  ;;  %vm2467_vm2 = vweird.f32 %v6800_v56 }
 0x1f0   : > { %v2473_v9 = vand.u32 2147483648, %v6800_v56  ;;  %v3949_v25 = vpop.eup %3948  ;;  %v2425_v35 = vsel %vm6838_vm15, %v3939_v46, %v2421_v36  ;;  %v2449_v22 = vsub.f32 1.0, %v2448_v1  ;;  %vm2453_vm10 = vweird.f32 %v3947_v13 }
 0x1f1   : > { %v6863_v15 = vadd.f32 2.0, %v6843_v0  ;;  %v2430_v29 = vsel %vm6795_vm5, %v2429_v43, %v2425_v35  ;;  %v2440_v19 = vsel %vm6850_vm7, %v3941_v58, %v2436_v40  ;;  %v2463_v60 = vmul.f32 %v3949_v25, %v6800_v56  ;;  %vm6879_vm3 = vmor %vm2452_vm0, %vm2453_vm10 }
 0x1f2   : > { %v6870_v4 = vmul.f32 %v3943_v53, %v732_v57  ;;  %v2431_v11 = vmul.f32 %v2430_v29, %v6784_v14  ;;  %v2445_v17 = vsel %vm6831_vm14, %v2444_v52, %v2440_v19  ;;  %v2450_v48 = vmul.f32 %v3947_v13, %v2449_v22 }
 0x1f3   : > { %3950 = vrcp.f32 %v6863_v15  ;;  %v2446_v21 = vmul.f32 %v2445_v17, %v6788_v44  ;;  %v2464_v16 = vsub.f32 1.0, %v2463_v60  ;;  %vm2468_vm4 = vweird.f32 %v3949_v25 }
 0x1f4   : > { %v2471_v23 = vand.u32 2147483647, %v6800_v56  ;;  %v3287_v14 = vsel %vm983_vm9, %v6646_v54, %v2431_v11  ;;  %v1113_v43 = vmul.f32 %v6765_v12, %v6677_v33  ;;  %v2451_v5 = vadd.f32 %v3947_v13, %v2450_v48  ;;  %vm6905_vm6 = vmor %vm2467_vm2, %vm2468_vm4 }
 0x1f5   : > { %vm2457_vm5 = vcmp.eq.f32.partialorder %v2456_v24, 8.507059e+37  ;;  %3415 = vst [vmem:[%s4528_s17 + $0x258] sm:$0xff] %v3287_v14  ;;  %v3288_v44 = vsel %vm984_vm13, %v6667_v3, %v2446_v21  ;;  %v2465_v42 = vmul.f32 %v3949_v25, %v2464_v16  ;;  %v6894_v58 = vadd.f32 2.0, %v6870_v4 }
 0x1f6   : > { %v560_v8 = vmul.f32 1.442695, %v350_v61  ;;  %3416 = vst [vmem:[%s4528_s17 + $0x260] sm:$0xff] %v3288_v44  ;;  %v2455_v54 = vsel %vm6879_vm3, %v3947_v13, %v2451_v5  ;;  %v1114_v12 = vmul.f32 %v6767_v2, %v6680_v30  ;;  %v2474_v3 = vor.u32 1.1754944e-38, %v2473_v9  ;;  %v6940_v13 = vld [vmem:[%s4344_s24 + $0x2a8] sm:$0xff] }
 0x1f7   : > { %v733_v10 = vadd.f32 2.0, %v6824_v39  ;;  %v2460_v49 = vsel %vm2457_vm5, %v2459_v34, %v2455_v54  ;;  %v2466_v61 = vadd.f32 %v3949_v25, %v2465_v42  ;;  %vm2472_vm9 = vcmp.eq.f32.partialorder %v2471_v23, 8.507059e+37 }
 0x1f8   : > { %3952 = vrcp.f32 %v6894_v58  ;;  %v2461_v32 = vmul.f32 %v2460_v49, %v1113_v43  ;;  %vm986_vm8 = vcmp.gt.f32.partialorder %v6680_v30, 20.0  ;;  %v2486_v45 = vand.u32 2147483647, %v6863_v15 }
 0x1f9   : > { %v3951_v53 = vpop.eup %3950  ;;  %v6913_v2 = vmul.f32 %v6824_v39, %v733_v10  ;;  %v2470_v56 = vsel %vm6905_vm6, %v3949_v25, %v2466_v61  ;;  %3954 = vpow2.f32 %v560_v8  ;;  %vm2482_vm11 = vweird.f32 %v6863_v15 }
 0x1fa   : > { %v2478_v47 = vmul.f32 %v3951_v53, %v6863_v15  ;;  %v3289_v18 = vsel %vm985_vm1, %v6677_v33, %v2461_v32  ;;  %v2475_v62 = vsel %vm2472_vm9, %v2474_v3, %v2470_v56  ;;  %v2488_v39 = vand.u32 2147483648, %v6863_v15  ;;  %v6963_v15 = vld [vmem:[%s4344_s24 + $0x2b0] sm:$0xff] }
 0x1fb   : > { %3417 = vst [vmem:[%s4528_s17 + $0x268] sm:$0xff] %v3289_v18  ;;  %v2476_v28 = vmul.f32 %v2475_v62, %v1114_v12  ;;  %vm2483_vm13 = vweird.f32 %v3951_v53  ;;  %v6932_v7 = vadd.f32 2.0, %v6913_v2  ;;  %vm987_vm12 = vcmp.gt.f32.partialorder %v6711_v51, 20.0 }
 0x1fc   : > { %v2479_v37 = vsub.f32 1.0, %v2478_v47  ;;  %v1115_v55 = vmul.f32 %v6843_v0, %v6711_v51  ;;  %v351_v33 = vmin.f32 %v6920_v31, 20.0  ;;  %v352_v52 = vmin.f32 %v6923_v50, 20.0  ;;  %vm6953_vm15 = vmor %vm2482_vm11, %vm2483_vm13 }
 0x1fd   : > { %v3290_v20 = vsel %vm986_vm8, %v6680_v30, %v2476_v28  ;;  %vm6945_vm14 = vcmp.eq.f32.partialorder %v2486_v45, 8.507059e+37  ;;  %3956 = vrcp.f32 %v6932_v7  ;;  %v2489_v36 = vor.u32 1.1754944e-38, %v2488_v39 }
 0x1fe   : > { %v3953_v63 = vpop.eup %3952  ;;  %v2480_v57 = vmul.f32 %v3951_v53, %v2479_v37  ;;  %3418 = vst [vmem:[%s4528_s17 + $0x270] sm:$0xff] %v3290_v20  ;;  %vm2497_vm0 = vweird.f32 %v6894_v58  ;;  %v2503_v30 = vand.u32 2147483648, %v6894_v58  ;;  %v562_v40 = vmul.f32 1.442695, %v351_v33  ;;  %v7005_v37 = vld [vmem:[%s4344_s24 + $0x2c0] sm:$0xff]  ;;  %v7017_v20 = vld [vmem:[%s4344_s24 + $0x2c8] sm:$0xff] }
 0x1ff   : > { %v2493_v27 = vmul.f32 %v3953_v63, %v6894_v58  ;;  %v3955_v1 = vpop.eup %3954  ;;  %v564_v34 = vmul.f32 1.442695, %v352_v52  ;;  %v353_v9 = vmin.f32 %v6940_v13, 20.0  ;;  %vm2498_vm7 = vweird.f32 %v3953_v63 }
 0x200   : > { %v2481_v24 = vadd.f32 %v3951_v53, %v2480_v57  ;;  %v2501_v35 = vand.u32 2147483647, %v6894_v58  ;;  %v734_v22 = vadd.f32 2.0, %v3955_v1  ;;  %v1116_v19 = vmul.f32 %v6870_v4, %v6724_v38  ;;  %vm6973_vm1 = vmor %vm2497_vm0, %vm2498_vm7 }
 0x201   : > { %v2494_v25 = vsub.f32 1.0, %v2493_v27  ;;  %3958 = vpow2.f32 %v562_v40  ;;  %v566_v60 = vmul.f32 1.442695, %v353_v9  ;;  %v2504_v23 = vor.u32 1.1754944e-38, %v2503_v30 }
 0x202   : > { %v2485_v29 = vsel %vm6953_vm15, %v3951_v53, %v2481_v24  ;;  %v862_v48 = vmul.f32 %v3955_v1, %v734_v22  ;;  %3960 = vpow2.f32 %v564_v34  ;;  %v354_v4 = vmin.f32 %v6963_v15, 20.0  ;;  %v6993_v53 = vld [vmem:[%s4344_s24 + $0x2b8] sm:$0xff] }
 0x203   : > { %v2490_v11 = vsel %vm6945_vm14, %v2489_v36, %v2485_v29  ;;  %v2495_v17 = vmul.f32 %v3953_v63, %v2494_v25  ;;  %v3957_v21 = vpop.eup %3956  ;;  %3962 = vpow2.f32 %v566_v60  ;;  %vm2502_vm2 = vcmp.eq.f32.partialorder %v2501_v35, 8.507059e+37 }
 0x204   : > { %v2491_v46 = vmul.f32 %v2490_v11, %v1115_v55  ;;  %v2508_v43 = vmul.f32 %v3957_v21, %v6932_v7  ;;  %vm2512_vm10 = vweird.f32 %v6932_v7  ;;  %v2518_v44 = vand.u32 2147483648, %v6932_v7 }
 0x205   : > { %v2496_v14 = vadd.f32 %v3953_v63, %v2495_v17  ;;  %v6984_v42 = vadd.f32 2.0, %v862_v48  ;;  %v568_v58 = vmul.f32 1.442695, %v354_v4  ;;  %vm2513_vm3 = vweird.f32 %v3957_v21 }
 0x206   : > { %v3291_v5 = vsel %vm987_vm12, %v6711_v51, %v2491_v46  ;;  %v2509_v54 = vsub.f32 1.0, %v2508_v43  ;;  %v2516_v12 = vand.u32 2147483647, %v6932_v7  ;;  %vm988_vm4 = vcmp.gt.f32.partialorder %v6724_v38, 20.0  ;;  %vm6999_vm5 = vmor %vm2512_vm10, %vm2513_vm3  ;;  %v7045_v46 = vld [vmem:[%s4344_s24 + $0x2d0] sm:$0xff] }
 0x207   : > { %3419 = vst [vmem:[%s4528_s17 + $0x278] sm:$0xff] %v3291_v5  ;;  %v2500_v8 = vsel %vm6973_vm1, %v3953_v63, %v2496_v14  ;;  %v3959_v26 = vpop.eup %3958  ;;  %3964 = vrcp.f32 %v6984_v42  ;;  %v1117_v56 = vmul.f32 %v6913_v2, %v6727_v41  ;;  %v2519_v45 = vor.u32 1.1754944e-38, %v2518_v44 }
 0x208   : > { %v2505_v3 = vsel %vm2502_vm2, %v2504_v23, %v2500_v8  ;;  %v3961_v51 = vpop.eup %3960  ;;  %v2510_v49 = vmul.f32 %v3957_v21, %v2509_v54  ;;  %v735_v61 = vadd.f32 2.0, %v3959_v26  ;;  %3966 = vpow2.f32 %v568_v58 }
 0x209   : > { %v2506_v10 = vmul.f32 %v2505_v3, %v1116_v19  ;;  %v3963_v32 = vpop.eup %3962  ;;  %v736_v18 = vadd.f32 2.0, %v3961_v51  ;;  %vm2517_vm6 = vcmp.eq.f32.partialorder %v2516_v12, 8.507059e+37  ;;  %vm989_vm9 = vcmp.gt.f32.partialorder %v6727_v41, 20.0 }
 0x20a   : > { %v2511_v39 = vadd.f32 %v3957_v21, %v2510_v49  ;;  %v863_v28 = vmul.f32 %v3959_v26, %v735_v61  ;;  %v737_v7 = vadd.f32 2.0, %v3963_v32  ;;  %v355_v55 = vmin.f32 %v6993_v53, 20.0 }
 0x20b   : > { %v3292_v62 = vsel %vm988_vm4, %v6724_v38, %v2506_v10  ;;  %v864_v2 = vmul.f32 %v3961_v51, %v736_v18  ;;  %v1118_v52 = vmul.f32 %v862_v48, %v6742_v59  ;;  %v2531_v63 = vand.u32 2147483647, %v6984_v42 }
 0x20c   : > { %3420 = vst [vmem:[%s4528_s17 + $0x280] sm:$0xff] %v3292_v62  ;;  %v2515_v33 = vsel %vm6999_vm5, %v3957_v21, %v2511_v39  ;;  %v7014_v38 = vadd.f32 2.0, %v863_v28  ;;  %v2533_v0 = vand.u32 2147483648, %v6984_v42  ;;  %v356_v27 = vmin.f32 %v7005_v37, 20.0 }
 0x20d   : > { %v3965_v57 = vpop.eup %3964  ;;  %v2520_v6 = vsel %vm2517_vm6, %v2519_v45, %v2515_v33  ;;  %v7020_v36 = vadd.f32 2.0, %v864_v2  ;;  %v865_v24 = vmul.f32 %v3963_v32, %v737_v7  ;;  %vm990_vm8 = vcmp.gt.f32.partialorder %v6742_v59, 20.0 }
 0x20e   : > { %v2521_v30 = vmul.f32 %v2520_v6, %v1117_v56  ;;  %v2523_v1 = vmul.f32 %v3965_v57, %v6984_v42  ;;  %3968 = vrcp.f32 %v7014_v38  ;;  %v3967_v40 = vpop.eup %3966  ;;  %vm2527_vm11 = vweird.f32 %v6984_v42 }
 0x20f   : > { %3970 = vrcp.f32 %v7020_v36  ;;  %v570_v34 = vmul.f32 1.442695, %v355_v55  ;;  %v357_v9 = vmin.f32 %v7017_v20, 20.0  ;;  %vm2528_vm13 = vweird.f32 %v3965_v57 }
 0x210   : > { %v3293_v25 = vsel %vm989_vm9, %v6727_v41, %v2521_v30  ;;  %v2524_v35 = vsub.f32 1.0, %v2523_v1  ;;  %vm7032_vm12 = vcmp.eq.f32.partialorder %v2531_v63, 8.507059e+37  ;;  %v2534_v29 = vor.u32 1.1754944e-38, %v2533_v0  ;;  %vm7049_vm14 = vmor %vm2527_vm11, %vm2528_vm13 }
 0x211   : > { %3421 = vst [vmem:[%s4528_s17 + $0x288] sm:$0xff] %v3293_v25  ;;  %v7038_v19 = vmul.f32 %v863_v28, %v6920_v31  ;;  %v2546_v60 = vand.u32 2147483647, %v7014_v38  ;;  %v572_v11 = vmul.f32 1.442695, %v356_v27  ;;  %v2548_v48 = vand.u32 2147483648, %v7014_v38 }
 0x212   : > { %v2525_v17 = vmul.f32 %v3965_v57, %v2524_v35  ;;  %v7042_v21 = vadd.f32 2.0, %v865_v24  ;;  %v738_v41 = vadd.f32 2.0, %v3967_v40  ;;  %vm2542_vm15 = vweird.f32 %v7014_v38 }
 0x213   : > { %v7055_v23 = vmul.f32 %v864_v2, %v6923_v50  ;;  %3972 = vpow2.f32 %v570_v34  ;;  %v574_v4 = vmul.f32 1.442695, %v357_v9  ;;  %vm2557_vm0 = vweird.f32 %v7020_v36 }
 0x214   : > { %v3969_v14 = vpop.eup %3968  ;;  %v2526_v43 = vadd.f32 %v3965_v57, %v2525_v17  ;;  %v2561_v5 = vand.u32 2147483647, %v7020_v36  ;;  %3974 = vrcp.f32 %v7042_v21  ;;  %vm7061_vm7 = vcmp.eq.f32.partialorder %v2546_v60, 8.507059e+37 }
 0x215   : > { %v3971_v44 = vpop.eup %3970  ;;  %v2538_v42 = vmul.f32 %v3969_v14, %v7014_v38  ;;  %v7065_v8 = vmul.f32 %v3967_v40, %v738_v41  ;;  %v358_v54 = vmin.f32 %v7045_v46, 20.0  ;;  %vm991_vm1 = vcmp.gt.f32.partialorder %v6920_v31, 20.0 }
 0x216   : > { %v2530_v12 = vsel %vm7049_vm14, %v3965_v57, %v2526_v43  ;;  %v2549_v26 = vor.u32 1.1754944e-38, %v2548_v48  ;;  %v2553_v3 = vmul.f32 %v3971_v44, %v7020_v36  ;;  %v2563_v51 = vand.u32 2147483648, %v7020_v36 }
 0x217   : > { %v2535_v10 = vsel %vm7032_vm12, %v2534_v29, %v2530_v12  ;;  %v2539_v49 = vsub.f32 1.0, %v2538_v42  ;;  %vm2543_vm2 = vweird.f32 %v3969_v14  ;;  %vm992_vm10 = vcmp.gt.f32.partialorder %v6923_v50, 20.0 }
 0x218   : > { %vm2558_vm3 = vweird.f32 %v3971_v44  ;;  %v2536_v61 = vmul.f32 %v2535_v10, %v1118_v52  ;;  %v2554_v32 = vsub.f32 1.0, %v2553_v3  ;;  %v7077_v56 = vadd.f32 2.0, %v7065_v8  ;;  %vm7085_vm4 = vmor %vm2542_vm15, %vm2543_vm2 }
 0x219   : > { %3976 = vpow2.f32 %v572_v11  ;;  %v3973_v47 = vpop.eup %3972  ;;  %v2540_v45 = vmul.f32 %v3969_v14, %v2539_v49  ;;  %v1121_v18 = vmul.f32 %v865_v24, %v6940_v13  ;;  %v576_v62 = vmul.f32 1.442695, %v358_v54  ;;  %vm7095_vm5 = vmor %vm2557_vm0, %vm2558_vm3  ;;  %v7155_v49 = vld [vmem:[%s4344_s24 + $0x2d8] sm:$0xff] }
 0x21a   : > { %3978 = vpow2.f32 %v574_v4  ;;  %v3975_v39 = vpop.eup %3974  ;;  %v3294_v28 = vsel %vm990_vm8, %v6742_v59, %v2536_v61  ;;  %v2555_v7 = vmul.f32 %v3971_v44, %v2554_v32  ;;  %v2576_v55 = vand.u32 2147483647, %v7042_v21 }
 0x21b   : > { %3980 = vrcp.f32 %v7077_v56  ;;  %3422 = vst [vmem:[%s4528_s17 + $0x290] sm:$0xff] %v3294_v28  ;;  %v2541_v33 = vadd.f32 %v3969_v14, %v2540_v45  ;;  %vm7099_vm6 = vcmp.eq.f32.partialorder %v2561_v5, 8.507059e+37  ;;  %v2564_v63 = vor.u32 1.1754944e-38, %v2563_v51 }
 0x21c   : > { %v2568_v38 = vmul.f32 %v3975_v39, %v7042_v21  ;;  %v2556_v57 = vadd.f32 %v3971_v44, %v2555_v7  ;;  %vm993_vm9 = vcmp.gt.f32.partialorder %v6940_v13, 20.0  ;;  %vm2572_vm8 = vweird.f32 %v7042_v21 }
 0x21d   : > { %v2578_v6 = vand.u32 2147483648, %v7042_v21  ;;  %v739_v0 = vadd.f32 2.0, %v3973_v47  ;;  %v2545_v36 = vsel %vm7085_vm4, %v3969_v14, %v2541_v33  ;;  %vm2573_vm11 = vweird.f32 %v3975_v39 }
 0x21e   : > { %v2569_v27 = vsub.f32 1.0, %v2568_v38  ;;  %3982 = vpow2.f32 %v576_v62  ;;  %v2550_v1 = vsel %vm7061_vm7, %v2549_v26, %v2545_v36  ;;  %v2560_v24 = vsel %vm7095_vm5, %v3971_v44, %v2556_v57  ;;  %vm7123_vm12 = vmor %vm2572_vm8, %vm2573_vm11 }
 0x21f   : > { %v3977_v30 = vpop.eup %3976  ;;  %vm7113_vm13 = vcmp.eq.f32.partialorder %v2576_v55, 8.507059e+37  ;;  %v867_v34 = vmul.f32 %v3973_v47, %v739_v0  ;;  %v2551_v25 = vmul.f32 %v2550_v1, %v7038_v19  ;;  %v2565_v35 = vsel %vm7099_vm6, %v2564_v63, %v2560_v24 }
 0x220   : > { %v3979_v9 = vpop.eup %3978  ;;  %v2570_v22 = vmul.f32 %v3975_v39, %v2569_v27  ;;  %v740_v29 = vadd.f32 2.0, %v3977_v30  ;;  %v2566_v11 = vmul.f32 %v2565_v35, %v7055_v23  ;;  %v2579_v48 = vor.u32 1.1754944e-38, %v2578_v6 }
 0x221   : > { %v3981_v60 = vpop.eup %3980  ;;  %v7127_v41 = vadd.f32 2.0, %v867_v34  ;;  %v741_v16 = vadd.f32 2.0, %v3979_v9  ;;  %v3295_v19 = vsel %vm991_vm1, %v6920_v31, %v2551_v25  ;;  %v2591_v23 = vand.u32 2147483647, %v7077_v56 }
 0x222   : > { %v2571_v4 = vadd.f32 %v3975_v39, %v2570_v22  ;;  %v2583_v14 = vmul.f32 %v3981_v60, %v7077_v56  ;;  %3423 = vst [vmem:[%s4528_s17 + $0x298] sm:$0xff] %v3295_v19  ;;  %v3296_v21 = vsel %vm992_vm10, %v6923_v50, %v2566_v11  ;;  %vm994_vm14 = vcmp.gt.f32.partialorder %v6963_v15, 20.0  ;;  %v7220_v22 = vld [vmem:[%s4344_s24 + $0x2e0] sm:$0xff] }
 0x223   : > { %vm2587_vm15 = vweird.f32 %v7077_v56  ;;  %v2593_v43 = vand.u32 2147483648, %v7077_v56  ;;  %3984 = vrcp.f32 %v7127_v41  ;;  %3424 = vst [vmem:[%s4528_s17 + $0x2a0] sm:$0xff] %v3296_v21  ;;  %vm2588_vm0 = vweird.f32 %v3981_v60 }
 0x224   : > { %v3983_v31 = vpop.eup %3982  ;;  %v2575_v5 = vsel %vm7123_vm12, %v3975_v39, %v2571_v4  ;;  %v2584_v44 = vsub.f32 1.0, %v2583_v14  ;;  %v868_v42 = vmul.f32 %v3977_v30, %v740_v29  ;;  %v2606_v58 = vand.u32 2147483647, %v7127_v41  ;;  %vm7159_vm1 = vmor %vm2587_vm15, %vm2588_vm0 }
 0x225   : > { %v2580_v50 = vsel %vm7113_vm13, %v2579_v48, %v2575_v5  ;;  %v869_v54 = vmul.f32 %v3979_v9, %v741_v16  ;;  %v742_v12 = vadd.f32 2.0, %v3983_v31  ;;  %v1122_v3 = vmul.f32 %v7065_v8, %v6963_v15  ;;  %v7228_v48 = vld [vmem:[%s4344_s24 + $0x2e8] sm:$0xff] }
 0x226   : > { %v2581_v26 = vmul.f32 %v2580_v50, %v1121_v18  ;;  %v2585_v51 = vmul.f32 %v3981_v60, %v2584_v44  ;;  %vm7150_vm7 = vcmp.eq.f32.partialorder %v2591_v23, 8.507059e+37  ;;  %v2594_v32 = vor.u32 1.1754944e-38, %v2593_v43  ;;  %v7245_v44 = vld [vmem:[%s4344_s24 + $0x2f8] sm:$0xff] }
 0x227   : > { %v2608_v47 = vand.u32 2147483648, %v7127_v41  ;;  %v7164_v45 = vadd.f32 2.0, %v868_v42  ;;  %v7166_v18 = vadd.f32 2.0, %v869_v54  ;;  %v1123_v39 = vmul.f32 %v867_v34, %v6993_v53 }
 0x228   : > { %v3297_v8 = vsel %vm993_vm9, %v6940_v13, %v2581_v26  ;;  %v2586_v62 = vadd.f32 %v3981_v60, %v2585_v51  ;;  %vm2602_vm2 = vweird.f32 %v7127_v41  ;;  %vm7174_vm10 = vcmp.eq.f32.partialorder %v2606_v58, 8.507059e+37 }
 0x229   : > { %v3985_v56 = vpop.eup %3984  ;;  %3425 = vst [vmem:[%s4528_s17 + $0x2a8] sm:$0xff] %v3297_v8  ;;  %3986 = vrcp.f32 %v7164_v45  ;;  %v870_v2 = vmul.f32 %v3983_v31, %v742_v12  ;;  %v359_v7 = vmin.f32 %v7155_v49, 20.0  ;;  %v2621_v33 = vand.u32 2147483647, %v7164_v45  ;;  %v7249_v12 = vld [vmem:[%s4344_s24 + $0x300] sm:$0xff] }
 0x22a   : > { %v2590_v55 = vsel %vm7159_vm1, %v3981_v60, %v2586_v62  ;;  %v2598_v13 = vmul.f32 %v3985_v56, %v7127_v41  ;;  %3988 = vrcp.f32 %v7166_v18  ;;  %vm995_vm3 = vcmp.gt.f32.partialorder %v6993_v53, 20.0  ;;  %v7231_v41 = vld [vmem:[%s4344_s24 + $0x2f0] sm:$0xff] }
 0x22b   : > { %v2595_v52 = vsel %vm7150_vm7, %v2594_v32, %v2590_v55  ;;  %v2609_v59 = vor.u32 1.1754944e-38, %v2608_v47  ;;  %v7189_v63 = vmul.f32 %v868_v42, %v7005_v37  ;;  %v2623_v38 = vand.u32 2147483648, %v7164_v45 }
 0x22c   : > { %v2596_v57 = vmul.f32 %v2595_v52, %v1122_v3  ;;  %v2599_v6 = vsub.f32 1.0, %v2598_v13  ;;  %vm2603_vm4 = vweird.f32 %v3985_v56  ;;  %v2636_v0 = vand.u32 2147483647, %v7166_v18 }
 0x22d   : > { %v7194_v36 = vmul.f32 %v869_v54, %v7017_v20  ;;  %v2638_v27 = vand.u32 2147483648, %v7166_v18  ;;  %v7197_v30 = vadd.f32 2.0, %v870_v2  ;;  %v578_v1 = vmul.f32 1.442695, %v359_v7  ;;  %vm7210_vm9 = vmor %vm2602_vm2, %vm2603_vm4 }
 0x22e   : > { %v3298_v24 = vsel %vm994_vm14, %v6963_v15, %v2596_v57  ;;  %v2600_v40 = vmul.f32 %v3985_v56, %v2599_v6  ;;  %vm2617_vm5 = vweird.f32 %v7164_v45  ;;  %vm7203_vm6 = vcmp.eq.f32.partialorder %v2621_v33, 8.507059e+37 }
 0x22f   : > { %v3987_v9 = vpop.eup %3986  ;;  %3426 = vst [vmem:[%s4528_s17 + $0x2b0] sm:$0xff] %v3298_v24  ;;  %v2624_v35 = vor.u32 1.1754944e-38, %v2623_v38  ;;  %vm2632_vm8 = vweird.f32 %v7166_v18  ;;  %v7216_v15 = vmul.f32 %v870_v2, %v7045_v46  ;;  %3990 = vrcp.f32 %v7197_v30 }
 0x230   : > { %v3989_v29 = vpop.eup %3988  ;;  %v2601_v60 = vadd.f32 %v3985_v56, %v2600_v40  ;;  %v2613_v11 = vmul.f32 %v3987_v9, %v7164_v45  ;;  %vm7223_vm11 = vcmp.eq.f32.partialorder %v2636_v0, 8.507059e+37  ;;  %3992 = vpow2.f32 %v578_v1  ;;  %v7290_v40 = vld [vmem:[%s4344_s24 + $0x308] sm:$0xff] }
 0x231   : > { %vm996_vm13 = vcmp.gt.f32.partialorder %v7005_v37, 20.0  ;;  %vm2618_vm12 = vweird.f32 %v3987_v9  ;;  %v2628_v16 = vmul.f32 %v3989_v29, %v7166_v18  ;;  %v2639_v19 = vor.u32 1.1754944e-38, %v2638_v27 }
 0x232   : > { %vm2647_vm14 = vweird.f32 %v7197_v30  ;;  %v2605_v4 = vsel %vm7210_vm9, %v3985_v56, %v2601_v60  ;;  %v2614_v14 = vsub.f32 1.0, %v2613_v11  ;;  %vm997_vm15 = vcmp.gt.f32.partialorder %v7017_v20, 20.0  ;;  %vm7254_vm7 = vmor %vm2617_vm5, %vm2618_vm12 }
 0x233   : > { %vm2633_vm0 = vweird.f32 %v3989_v29  ;;  %v360_v23 = vmin.f32 %v7220_v22, 20.0  ;;  %v2610_v21 = vsel %vm7174_vm10, %v2609_v59, %v2605_v4  ;;  %v2629_v43 = vsub.f32 1.0, %v2628_v16 }
 0x234   : > { %v361_v31 = vmin.f32 %v7228_v48, 20.0  ;;  %v362_v5 = vmin.f32 %v7231_v41, 20.0  ;;  %v2611_v42 = vmul.f32 %v2610_v21, %v1123_v39  ;;  %v2615_v50 = vmul.f32 %v3987_v9, %v2614_v14  ;;  %vm7265_vm1 = vmor %vm2632_vm8, %vm2633_vm0 }
 0x235   : > { %v2651_v58 = vand.u32 2147483647, %v7197_v30  ;;  %v580_v54 = vmul.f32 1.442695, %v360_v23  ;;  %v3991_v26 = vpop.eup %3990  ;;  %v2630_v51 = vmul.f32 %v3989_v29, %v2629_v43  ;;  %v2653_v10 = vand.u32 2147483648, %v7197_v30 }
 0x236   : > { %v582_v61 = vmul.f32 1.442695, %v361_v31  ;;  %v584_v32 = vmul.f32 1.442695, %v362_v5  ;;  %v3993_v47 = vpop.eup %3992  ;;  %v3299_v8 = vsel %vm995_vm3, %v6993_v53, %v2611_v42  ;;  %v2616_v62 = vadd.f32 %v3987_v9, %v2615_v50  ;;  %v7309_v5 = vld [vmem:[%s4344_s24 + $0x310] sm:$0xff] }
 0x237   : > { %v2643_v39 = vmul.f32 %v3991_v26, %v7197_v30  ;;  %v363_v56 = vmin.f32 %v7245_v44, 20.0  ;;  %3427 = vst [vmem:[%s4528_s17 + $0x2b8] sm:$0xff] %v3299_v8  ;;  %v2631_v28 = vadd.f32 %v3989_v29, %v2630_v51  ;;  %v743_v2 = vadd.f32 2.0, %v3993_v47 }
 0x238   : > { %3994 = vpow2.f32 %v580_v54  ;;  %v364_v7 = vmin.f32 %v7249_v12, 20.0  ;;  %v2620_v53 = vsel %vm7254_vm7, %v3987_v9, %v2616_v62  ;;  %vm2648_vm2 = vweird.f32 %v3991_v26 }
 0x239   : > { %v2644_v55 = vsub.f32 1.0, %v2643_v39  ;;  %3996 = vpow2.f32 %v582_v61  ;;  %v2625_v18 = vsel %vm7203_vm6, %v2624_v35, %v2620_v53  ;;  %v2635_v13 = vsel %vm7265_vm1, %v3989_v29, %v2631_v28  ;;  %vm7285_vm10 = vmor %vm2647_vm14, %vm2648_vm2 }
 0x23a   : > { %v871_v33 = vmul.f32 %v3993_v47, %v743_v2  ;;  %3998 = vpow2.f32 %v584_v32  ;;  %v2626_v52 = vmul.f32 %v2625_v18, %v7189_v63  ;;  %v2640_v59 = vsel %vm7223_vm11, %v2639_v19, %v2635_v13 }
 0x23b   : > { %v2645_v38 = vmul.f32 %v3991_v26, %v2644_v55  ;;  %v586_v57 = vmul.f32 1.442695, %v363_v56  ;;  %v2641_v6 = vmul.f32 %v2640_v59, %v7194_v36  ;;  %v2654_v27 = vor.u32 1.1754944e-38, %v2653_v10 }
 0x23c   : > { %v1255_v1 = vadd.f32 2.0, %v871_v33  ;;  %v588_v24 = vmul.f32 1.442695, %v364_v7  ;;  %v3300_v63 = vsel %vm996_vm13, %v7005_v37, %v2626_v52  ;;  %vm2652_vm3 = vcmp.eq.f32.partialorder %v2651_v58, 8.507059e+37 }
 0x23d   : > { %v2646_v34 = vadd.f32 %v3991_v26, %v2645_v38  ;;  %4000 = vpow2.f32 %v586_v57  ;;  %3428 = vst [vmem:[%s4528_s17 + $0x2c0] sm:$0xff] %v3300_v63  ;;  %v3301_v36 = vsel %vm997_vm15, %v7017_v20, %v2641_v6  ;;  %v365_v29 = vmin.f32 %v7290_v40, 20.0 }
 0x23e   : > { %v3995_v9 = vpop.eup %3994  ;;  %4002 = vrcp.f32 %v1255_v1  ;;  %3429 = vst [vmem:[%s4528_s17 + $0x2c8] sm:$0xff] %v3301_v36  ;;  %vm998_vm4 = vcmp.gt.f32.partialorder %v7045_v46, 20.0  ;;  %v2666_v19 = vand.u32 2147483647, %v1255_v1  ;;  %v2668_v4 = vand.u32 2147483648, %v1255_v1 }
 0x23f   : > { %v3997_v30 = vpop.eup %3996  ;;  %v2650_v25 = vsel %vm7285_vm10, %v3991_v26, %v2646_v34  ;;  %v744_v35 = vadd.f32 2.0, %v3995_v9  ;;  %4004 = vpow2.f32 %v588_v24  ;;  %v590_v31 = vmul.f32 1.442695, %v365_v29 }
 0x240   : > { %v3999_v37 = vpop.eup %3998  ;;  %v2655_v60 = vsel %vm2652_vm3, %v2654_v27, %v2650_v25  ;;  %v745_v11 = vadd.f32 2.0, %v3997_v30  ;;  %vm2662_vm5 = vweird.f32 %v1255_v1  ;;  %vm999_vm6 = vcmp.gt.f32.partialorder %v7155_v49, 20.0 }
 0x241   : > { %v2656_v17 = vmul.f32 %v2655_v60, %v7216_v15  ;;  %v872_v20 = vmul.f32 %v3995_v9, %v744_v35  ;;  %v746_v16 = vadd.f32 2.0, %v3999_v37  ;;  %v1127_v15 = vmul.f32 %v871_v33, %v7155_v49 }
 0x242   : > { %v873_v14 = vmul.f32 %v3997_v30, %v745_v11  ;;  %vm7317_vm9 = vcmp.eq.f32.partialorder %v2666_v19, 8.507059e+37  ;;  %v2669_v51 = vor.u32 1.1754944e-38, %v2668_v4  ;;  %v366_v10 = vmin.f32 %v7309_v5, 20.0 }
 0x243   : > { %v4001_v23 = vpop.eup %4000  ;;  %v3302_v21 = vsel %vm998_vm4, %v7045_v46, %v2656_v17  ;;  %v7306_v43 = vadd.f32 2.0, %v872_v20  ;;  %v874_v58 = vmul.f32 %v3999_v37, %v746_v16  ;;  %v7329_v56 = vmul.f32 %v872_v20, %v7220_v22 }
 0x244   : > { %v4003_v42 = vpop.eup %4002  ;;  %3430 = vst [vmem:[%s4528_s17 + $0x2d0] sm:$0xff] %v3302_v21  ;;  %v7312_v50 = vadd.f32 2.0, %v873_v14  ;;  %v747_v54 = vadd.f32 2.0, %v4001_v23  ;;  %v7339_v53 = vmul.f32 %v873_v14, %v7228_v48  ;;  %vm1000_vm0 = vcmp.gt.f32.partialorder %v7220_v22, 20.0 }
 0x245   : > { %v2658_v26 = vmul.f32 %v4003_v42, %v1255_v1  ;;  %4006 = vrcp.f32 %v7306_v43  ;;  %v4005_v3 = vpop.eup %4004  ;;  %vm2663_vm8 = vweird.f32 %v4003_v42  ;;  %v2681_v32 = vand.u32 2147483647, %v7306_v43 }
 0x246   : > { %4008 = vrcp.f32 %v7312_v50  ;;  %v2683_v47 = vand.u32 2147483648, %v7306_v43  ;;  %v2696_v8 = vand.u32 2147483647, %v7312_v50  ;;  %v7326_v62 = vadd.f32 2.0, %v874_v58  ;;  %vm7333_vm11 = vmor %vm2662_vm5, %vm2663_vm8 }
 0x247   : > { %v2659_v61 = vsub.f32 1.0, %v2658_v26  ;;  %4010 = vpow2.f32 %v590_v31  ;;  %v875_v45 = vmul.f32 %v4001_v23, %v747_v54  ;;  %v2698_v28 = vand.u32 2147483648, %v7312_v50 }
 0x248   : > { %v748_v2 = vadd.f32 2.0, %v4005_v3  ;;  %vm2677_vm13 = vweird.f32 %v7306_v43  ;;  %vm2692_vm12 = vweird.f32 %v7312_v50  ;;  %4012 = vrcp.f32 %v7326_v62 }
 0x249   : > { %v2660_v39 = vmul.f32 %v4003_v42, %v2659_v61  ;;  %vm7343_vm14 = vcmp.eq.f32.partialorder %v2681_v32, 8.507059e+37  ;;  %v7348_v33 = vmul.f32 %v874_v58, %v7231_v41  ;;  %v7350_v52 = vadd.f32 2.0, %v875_v45 }
 0x24a   : > { %v2684_v57 = vor.u32 1.1754944e-38, %v2683_v47  ;;  %vm7353_vm15 = vcmp.eq.f32.partialorder %v2696_v8, 8.507059e+37  ;;  %v7357_v0 = vmul.f32 %v4005_v3, %v748_v2  ;;  %v2699_v63 = vor.u32 1.1754944e-38, %v2698_v28 }
 0x24b   : > { %v4007_v55 = vpop.eup %4006  ;;  %v2661_v18 = vadd.f32 %v4003_v42, %v2660_v39  ;;  %4014 = vrcp.f32 %v7350_v52  ;;  %vm1001_vm1 = vcmp.gt.f32.partialorder %v7228_v48, 20.0  ;;  %v2711_v36 = vand.u32 2147483647, %v7326_v62 }
 0x24c   : > { %v4009_v59 = vpop.eup %4008  ;;  %v2673_v38 = vmul.f32 %v4007_v55, %v7306_v43  ;;  %vm2678_vm7 = vweird.f32 %v4007_v55  ;;  %vm2707_vm10 = vweird.f32 %v7326_v62  ;;  %v2713_v37 = vand.u32 2147483648, %v7326_v62 }
 0x24d   : > { %v4011_v27 = vpop.eup %4010  ;;  %v2665_v1 = vsel %vm7333_vm11, %v4003_v42, %v2661_v18  ;;  %v2688_v24 = vmul.f32 %v4009_v59, %v7312_v50  ;;  %vm2693_vm2 = vweird.f32 %v4009_v59  ;;  %v7371_v60 = vadd.f32 2.0, %v7357_v0  ;;  %vm7378_vm3 = vmor %vm2677_vm13, %vm2678_vm7 }
 0x24e   : > { %v2670_v34 = vsel %vm7317_vm9, %v2669_v51, %v2665_v1  ;;  %v2674_v9 = vsub.f32 1.0, %v2673_v38  ;;  %v4013_v35 = vpop.eup %4012  ;;  %v749_v11 = vadd.f32 2.0, %v4011_v27  ;;  %v7384_v4 = vmul.f32 %v875_v45, %v7245_v44  ;;  %vm7389_vm4 = vmor %vm2692_vm12, %vm2693_vm2 }
 0x24f   : > { %v2671_v30 = vmul.f32 %v2670_v34, %v1127_v15  ;;  %v2689_v25 = vsub.f32 1.0, %v2688_v24  ;;  %v2703_v19 = vmul.f32 %v4013_v35, %v7326_v62  ;;  %vm1002_vm5 = vcmp.gt.f32.partialorder %v7231_v41, 20.0  ;;  %v7465_v34 = vld [vmem:[%s4344_s24 + $0x320] sm:$0xff] }
 0x250   : > { %v2675_v29 = vmul.f32 %v4007_v55, %v2674_v9  ;;  %v2726_v21 = vand.u32 2147483647, %v7350_v52  ;;  %4016 = vrcp.f32 %v7371_v60  ;;  %vm2708_vm9 = vweird.f32 %v4013_v35  ;;  %v7468_v9 = vld [vmem:[%s4344_s24 + $0x328] sm:$0xff] }
 0x251   : > { %v3303_v17 = vsel %vm999_vm6, %v7155_v49, %v2671_v30  ;;  %v2690_v16 = vmul.f32 %v4009_v59, %v2689_v25  ;;  %vm7394_vm6 = vcmp.eq.f32.partialorder %v2711_v36, 8.507059e+37  ;;  %v4015_v43 = vpop.eup %4014  ;;  %v2704_v42 = vsub.f32 1.0, %v2703_v19  ;;  %vm7417_vm13 = vmor %vm2707_vm10, %vm2708_vm9  ;;  %v7471_v36 = vld [vmem:[%s4344_s24 + $0x330] sm:$0xff] }
 0x252   : > { %3431 = vst [vmem:[%s4528_s17 + $0x2d8] sm:$0xff] %v3303_v17  ;;  %v2676_v14 = vadd.f32 %v4007_v55, %v2675_v29  ;;  %v2728_v50 = vand.u32 2147483648, %v7350_v52  ;;  %v2714_v54 = vor.u32 1.1754944e-38, %v2713_v37  ;;  %v2718_v15 = vmul.f32 %v4015_v43, %v7350_v52 }
 0x253   : > { %v2691_v31 = vadd.f32 %v4009_v59, %v2690_v16  ;;  %v7404_v26 = vmul.f32 %v4011_v27, %v749_v11  ;;  %v2705_v51 = vmul.f32 %v4013_v35, %v2704_v42  ;;  %vm1003_vm8 = vcmp.gt.f32.partialorder %v7245_v44, 20.0 }
 0x254   : > { %v2680_v58 = vsel %vm7378_vm3, %v4007_v55, %v2676_v14  ;;  %vm2722_vm11 = vweird.f32 %v7350_v52  ;;  %v2719_v8 = vsub.f32 1.0, %v2718_v15  ;;  %vm2723_vm12 = vweird.f32 %v4015_v43 }
 0x255   : > { %v2685_v3 = vsel %vm7343_vm14, %v2684_v57, %v2680_v58  ;;  %v2695_v46 = vsel %vm7389_vm4, %v4009_v59, %v2691_v31  ;;  %v2706_v39 = vadd.f32 %v4013_v35, %v2705_v51  ;;  %vm7422_vm14 = vcmp.eq.f32.partialorder %v2726_v21, 8.507059e+37 }
 0x256   : > { %v2686_v61 = vmul.f32 %v2685_v3, %v7329_v56  ;;  %v2700_v32 = vsel %vm7353_vm15, %v2699_v63, %v2695_v46  ;;  %v2729_v56 = vor.u32 1.1754944e-38, %v2728_v50  ;;  %v4017_v2 = vpop.eup %4016  ;;  %v2720_v7 = vmul.f32 %v4015_v43, %v2719_v8  ;;  %vm7442_vm15 = vmor %vm2722_vm11, %vm2723_vm12 }
 0x257   : > { %v2701_v45 = vmul.f32 %v2700_v32, %v7339_v53  ;;  %v7430_v55 = vadd.f32 2.0, %v7404_v26  ;;  %v592_v18 = vmul.f32 1.442695, %v366_v10  ;;  %v2710_v13 = vsel %vm7417_vm13, %v4013_v35, %v2706_v39  ;;  %v7449_v10 = vld [vmem:[%s4344_s24 + $0x318] sm:$0xff] }
 0x258   : > { %v3304_v62 = vsel %vm1000_vm0, %v7220_v22, %v2686_v61  ;;  %v2733_v22 = vmul.f32 %v4017_v2, %v7371_v60  ;;  %v2741_v38 = vand.u32 2147483647, %v7371_v60  ;;  %v2721_v57 = vadd.f32 %v4015_v43, %v2720_v7 }
 0x259   : > { %3432 = vst [vmem:[%s4528_s17 + $0x2e0] sm:$0xff] %v3304_v62  ;;  %v3305_v53 = vsel %vm1001_vm1, %v7228_v48, %v2701_v45  ;;  %v2715_v48 = vsel %vm7394_vm6, %v2714_v54, %v2710_v13  ;;  %vm1004_vm0 = vcmp.gt.f32.partialorder %v7249_v12, 20.0  ;;  %v2743_v52 = vand.u32 2147483648, %v7371_v60  ;;  %v7511_v54 = vld [vmem:[%s4344_s24 + $0x340] sm:$0xff] }
 0x25a   : > { %3433 = vst [vmem:[%s4528_s17 + $0x2e8] sm:$0xff] %v3305_v53  ;;  %4018 = vrcp.f32 %v7430_v55  ;;  %v2716_v6 = vmul.f32 %v2715_v48, %v7348_v33  ;;  %v2734_v27 = vsub.f32 1.0, %v2733_v22  ;;  %vm2737_vm7 = vweird.f32 %v7371_v60 }
 0x25b   : > { %vm2738_vm1 = vweird.f32 %v4017_v2  ;;  %v2725_v1 = vsel %vm7442_vm15, %v4015_v43, %v2721_v57  ;;  %v1132_v24 = vmul.f32 %v7357_v0, %v7249_v12  ;;  %4020 = vpow2.f32 %v592_v18  ;;  %v7483_v0 = vld [vmem:[%s4344_s24 + $0x338] sm:$0xff] }
 0x25c   : > { %v367_v63 = vmin.f32 %v7449_v10, 20.0  ;;  %v3306_v33 = vsel %vm1002_vm5, %v7231_v41, %v2716_v6  ;;  %v2730_v30 = vsel %vm7422_vm14, %v2729_v56, %v2725_v1  ;;  %v2735_v25 = vmul.f32 %v4017_v2, %v2734_v27  ;;  %vm7490_vm10 = vmor %vm2737_vm7, %vm2738_vm1  ;;  %v7545_v1 = vld [vmem:[%s4344_s24 + $0x358] sm:$0xff] }
 0x25d   : > { %vm7478_vm2 = vcmp.eq.f32.partialorder %v2741_v38, 8.507059e+37  ;;  %3434 = vst [vmem:[%s4528_s17 + $0x2f0] sm:$0xff] %v3306_v33  ;;  %v2731_v29 = vmul.f32 %v2730_v30, %v7384_v4  ;;  %v2744_v41 = vor.u32 1.1754944e-38, %v2743_v52  ;;  %vm2752_vm3 = vweird.f32 %v7430_v55 }
 0x25e   : > { %v594_v11 = vmul.f32 1.442695, %v367_v63  ;;  %v2736_v17 = vadd.f32 %v4017_v2, %v2735_v25  ;;  %v368_v20 = vmin.f32 %v7465_v34, 20.0  ;;  %v369_v16 = vmin.f32 %v7468_v9, 20.0 }
 0x25f   : > { %v370_v19 = vmin.f32 %v7471_v36, 20.0  ;;  %v3307_v60 = vsel %vm1003_vm8, %v7245_v44, %v2731_v29  ;;  %v2756_v14 = vand.u32 2147483647, %v7430_v55  ;;  %v371_v23 = vmin.f32 %v7483_v0, 20.0 }
 0x260   : > { %v4019_v4 = vpop.eup %4018  ;;  %4022 = vpow2.f32 %v594_v11  ;;  %3435 = vst [vmem:[%s4528_s17 + $0x2f8] sm:$0xff] %v3307_v60  ;;  %v2740_v49 = vsel %vm7490_vm10, %v4017_v2, %v2736_v17  ;;  %v2758_v43 = vand.u32 2147483648, %v7430_v55  ;;  %v596_v31 = vmul.f32 1.442695, %v368_v20  ;;  %v7532_v2 = vld [vmem:[%s4344_s24 + $0x348] sm:$0xff] }
 0x261   : > { %v2748_v21 = vmul.f32 %v4019_v4, %v7430_v55  ;;  %v4021_v42 = vpop.eup %4020  ;;  %v2745_v50 = vsel %vm7478_vm2, %v2744_v41, %v2740_v49  ;;  %vm2753_vm4 = vweird.f32 %v4019_v4  ;;  %v598_v44 = vmul.f32 1.442695, %v369_v16 }
 0x262   : > { %v600_v58 = vmul.f32 1.442695, %v370_v19  ;;  %v2746_v15 = vmul.f32 %v2745_v50, %v1132_v24  ;;  %v750_v46 = vadd.f32 2.0, %v4021_v42  ;;  %4024 = vpow2.f32 %v596_v31  ;;  %vm7523_vm5 = vmor %vm2752_vm3, %vm2753_vm4 }
 0x263   : > { %v2749_v3 = vsub.f32 1.0, %v2748_v21  ;;  %4026 = vpow2.f32 %v598_v44  ;;  %v602_v51 = vmul.f32 1.442695, %v371_v23  ;;  %v372_v8 = vmin.f32 %v7511_v54, 20.0 }
 0x264   : > { %v3308_v61 = vsel %vm1004_vm0, %v7249_v12, %v2746_v15  ;;  %v878_v47 = vmul.f32 %v4021_v42, %v750_v46  ;;  %v1133_v39 = vmul.f32 %v7404_v26, %v7290_v40  ;;  %vm7527_vm6 = vcmp.eq.f32.partialorder %v2756_v14, 8.507059e+37  ;;  %v7535_v26 = vld [vmem:[%s4344_s24 + $0x350] sm:$0xff] }
 0x265   : > { %v2750_v32 = vmul.f32 %v4019_v4, %v2749_v3  ;;  %3436 = vst [vmem:[%s4528_s17 + $0x300] sm:$0xff] %v3308_v61  ;;  %v2759_v12 = vor.u32 1.1754944e-38, %v2758_v43  ;;  %4028 = vpow2.f32 %v600_v58  ;;  %vm1005_vm9 = vcmp.gt.f32.partialorder %v7290_v40, 20.0 }
 0x266   : > { %v4023_v45 = vpop.eup %4022  ;;  %v1262_v7 = vadd.f32 2.0, %v878_v47  ;;  %4030 = vpow2.f32 %v602_v51  ;;  %v604_v13 = vmul.f32 1.442695, %v372_v8  ;;  %v373_v59 = vmin.f32 %v7532_v2, 20.0 }
 0x267   : > { %v2751_v62 = vadd.f32 %v4019_v4, %v2750_v32  ;;  %v751_v18 = vadd.f32 2.0, %v4023_v45  ;;  %v374_v52 = vmin.f32 %v7535_v26, 20.0  ;;  %v7548_v63 = vmul.f32 %v878_v47, %v7309_v5 }
 0x268   : > { %v4025_v55 = vpop.eup %4024  ;;  %4032 = vrcp.f32 %v1262_v7  ;;  %v2771_v33 = vand.u32 2147483647, %v1262_v7  ;;  %v2773_v37 = vand.u32 2147483648, %v1262_v7  ;;  %v7557_v11 = vmul.f32 1.442695, %v373_v59 }
 0x269   : > { %v2755_v53 = vsel %vm7523_vm5, %v4019_v4, %v2751_v62  ;;  %v4027_v22 = vpop.eup %4026  ;;  %v879_v48 = vmul.f32 %v4023_v45, %v751_v18  ;;  %v752_v57 = vadd.f32 2.0, %v4025_v55  ;;  %4034 = vpow2.f32 %v604_v13 }
 0x26a   : > { %v2760_v38 = vsel %vm7527_vm6, %v2759_v12, %v2755_v53  ;;  %v753_v27 = vadd.f32 2.0, %v4027_v22  ;;  %v7559_v17 = vmul.f32 1.442695, %v374_v52  ;;  %v375_v20 = vmin.f32 %v7545_v1, 20.0 }
 0x26b   : > { %v2761_v6 = vmul.f32 %v2760_v38, %v1133_v39  ;;  %v4029_v24 = vpop.eup %4028  ;;  %v7550_v30 = vadd.f32 2.0, %v879_v48  ;;  %v880_v25 = vmul.f32 %v4025_v55, %v752_v57  ;;  %vm2767_vm8 = vweird.f32 %v1262_v7 }
 0x26c   : > { %v4031_v35 = vpop.eup %4030  ;;  %v881_v41 = vmul.f32 %v4027_v22, %v753_v27  ;;  %v754_v60 = vadd.f32 2.0, %v4029_v24  ;;  %vm7566_vm11 = vcmp.eq.f32.partialorder %v2771_v33, 8.507059e+37  ;;  %vm1006_vm13 = vcmp.gt.f32.partialorder %v7309_v5, 20.0 }
 0x26d   : > { %v3309_v29 = vsel %vm1005_vm9, %v7290_v40, %v2761_v6  ;;  %4036 = vrcp.f32 %v7550_v30  ;;  %v7562_v19 = vadd.f32 2.0, %v880_v25  ;;  %v2786_v23 = vand.u32 2147483647, %v7550_v30 }
 0x26e   : > { %3437 = vst [vmem:[%s4528_s17 + $0x308] sm:$0xff] %v3309_v29  ;;  %v4033_v16 = vpop.eup %4032  ;;  %v7564_v4 = vadd.f32 2.0, %v881_v41  ;;  %v755_v49 = vadd.f32 2.0, %v4031_v35  ;;  %v2774_v21 = vor.u32 1.1754944e-38, %v2773_v37  ;;  %v7573_v43 = vmul.f32 %v879_v48, %v7449_v10 }
 0x26f   : > { %v2763_v40 = vmul.f32 %v4033_v16, %v1262_v7  ;;  %v2788_v31 = vand.u32 2147483648, %v7550_v30  ;;  %4038 = vrcp.f32 %v7562_v19  ;;  %vm2768_vm12 = vweird.f32 %v4033_v16  ;;  %v4035_v44 = vpop.eup %4034 }
 0x270   : > { %v2801_v50 = vand.u32 2147483647, %v7562_v19  ;;  %4040 = vrcp.f32 %v7564_v4  ;;  %vm2782_vm14 = vweird.f32 %v7550_v30  ;;  %v7581_v58 = vmul.f32 %v880_v25, %v7465_v34  ;;  %vm7594_vm0 = vmor %vm2767_vm8, %vm2768_vm12 }
 0x271   : > { %v2764_v42 = vsub.f32 1.0, %v2763_v40  ;;  %v2803_v15 = vand.u32 2147483648, %v7562_v19  ;;  %v882_v3 = vmul.f32 %v4029_v24, %v754_v60  ;;  %vm7584_vm15 = vcmp.eq.f32.partialorder %v2786_v23, 8.507059e+37 }
 0x272   : > { %v7589_v32 = vmul.f32 %v881_v41, %v7468_v9  ;;  %v7591_v47 = vmul.f32 %v4031_v35, %v755_v49  ;;  %v2789_v39 = vor.u32 1.1754944e-38, %v2788_v31  ;;  %vm2797_vm7 = vweird.f32 %v7562_v19 }
 0x273   : > { %v4037_v46 = vpop.eup %4036  ;;  %v2765_v51 = vmul.f32 %v4033_v16, %v2764_v42  ;;  %vm2812_vm1 = vweird.f32 %v7564_v4  ;;  %vm1007_vm2 = vcmp.gt.f32.partialorder %v7449_v10, 20.0  ;;  %vm7602_vm10 = vcmp.eq.f32.partialorder %v2801_v50, 8.507059e+37 }
 0x274   : > { %v2778_v45 = vmul.f32 %v4037_v46, %v7550_v30  ;;  %v2816_v12 = vand.u32 2147483647, %v7564_v4  ;;  %v7607_v62 = vadd.f32 2.0, %v882_v3  ;;  %vm2783_vm3 = vweird.f32 %v4037_v46 }
 0x275   : > { %v2766_v28 = vadd.f32 %v4033_v16, %v2765_v51  ;;  %v4039_v7 = vpop.eup %4038  ;;  %v2804_v55 = vor.u32 1.1754944e-38, %v2803_v15  ;;  %v7610_v53 = vadd.f32 2.0, %v7591_v47  ;;  %v756_v38 = vadd.f32 2.0, %v4035_v44  ;;  %vm7624_vm5 = vmor %vm2782_vm14, %vm2783_vm3 }
 0x276   : > { %v2779_v18 = vsub.f32 1.0, %v2778_v45  ;;  %v4041_v13 = vpop.eup %4040  ;;  %v2793_v22 = vmul.f32 %v4039_v7, %v7562_v19  ;;  %4042 = vrcp.f32 %v7607_v62  ;;  %vm1008_vm4 = vcmp.gt.f32.partialorder %v7465_v34, 20.0 }
 0x277   : > { %v2770_v59 = vsel %vm7594_vm0, %v4033_v16, %v2766_v28  ;;  %v2808_v52 = vmul.f32 %v4041_v13, %v7564_v4  ;;  %v2818_v6 = vand.u32 2147483648, %v7564_v4  ;;  %vm2798_vm6 = vweird.f32 %v4039_v7 }
 0x278   : > { %v2775_v48 = vsel %vm7566_vm11, %v2774_v21, %v2770_v59  ;;  %v2780_v57 = vmul.f32 %v4037_v46, %v2779_v18  ;;  %v2794_v33 = vsub.f32 1.0, %v2793_v22  ;;  %vm1009_vm9 = vcmp.gt.f32.partialorder %v7468_v9, 20.0  ;;  %vm7645_vm12 = vmor %vm2797_vm7, %vm2798_vm6 }
 0x279   : > { %v2776_v27 = vmul.f32 %v2775_v48, %v7548_v63  ;;  %vm7629_vm8 = vcmp.eq.f32.partialorder %v2816_v12, 8.507059e+37  ;;  %v2809_v29 = vsub.f32 1.0, %v2808_v52  ;;  %vm2813_vm11 = vweird.f32 %v4041_v13 }
 0x27a   : > { %v2781_v35 = vadd.f32 %v4037_v46, %v2780_v57  ;;  %4044 = vrcp.f32 %v7610_v53  ;;  %v2795_v30 = vmul.f32 %v4039_v7, %v2794_v33  ;;  %v7637_v37 = vmul.f32 %v4035_v44, %v756_v38 }
 0x27b   : > { %v3310_v63 = vsel %vm1006_vm13, %v7309_v5, %v2776_v27  ;;  %4046 = vpow2.f32 %v7557_v11  ;;  %v2810_v60 = vmul.f32 %v4041_v13, %v2809_v29  ;;  %v2819_v40 = vor.u32 1.1754944e-38, %v2818_v6  ;;  %vm7655_vm13 = vmor %vm2812_vm1, %vm2813_vm11 }
 0x27c   : > { %3438 = vst [vmem:[%s4528_s17 + $0x310] sm:$0xff] %v3310_v63  ;;  %v2785_v41 = vsel %vm7624_vm5, %v4037_v46, %v2781_v35  ;;  %v1138_v14 = vmul.f32 %v882_v3, %v7471_v36  ;;  %v4043_v5 = vpop.eup %4042  ;;  %v2796_v49 = vadd.f32 %v4039_v7, %v2795_v30  ;;  %vm2827_vm14 = vweird.f32 %v7607_v62  ;;  %v7730_v35 = vld [vmem:[%s4344_s24 + $0x368] sm:$0xff] }
 0x27d   : > { %v2790_v23 = vsel %vm7584_vm15, %v2789_v39, %v2785_v41  ;;  %v2833_v19 = vand.u32 2147483648, %v7607_v62  ;;  %v2811_v31 = vadd.f32 %v4041_v13, %v2810_v60  ;;  %v2823_v42 = vmul.f32 %v4043_v5, %v7607_v62 }
 0x27e   : > { %v2791_v21 = vmul.f32 %v2790_v23, %v7573_v43  ;;  %v2831_v50 = vand.u32 2147483647, %v7607_v62  ;;  %v2800_v44 = vsel %vm7645_vm12, %v4039_v7, %v2796_v49  ;;  %vm2828_vm15 = vweird.f32 %v4043_v5  ;;  %v7744_v49 = vld [vmem:[%s4344_s24 + $0x370] sm:$0xff] }
 0x27f   : > { %vm2842_vm0 = vweird.f32 %v7610_v53  ;;  %v7668_v4 = vadd.f32 2.0, %v7637_v37  ;;  %v2805_v43 = vsel %vm7602_vm10, %v2804_v55, %v2800_v44  ;;  %v2815_v46 = vsel %vm7655_vm13, %v4041_v13, %v2811_v31  ;;  %vm7691_vm7 = vmor %vm2827_vm14, %vm2828_vm15 }
 0x280   : > { %v4045_v15 = vpop.eup %4044  ;;  %v3311_v3 = vsel %vm1007_vm2, %v7449_v10, %v2791_v21  ;;  %v2824_v51 = vsub.f32 1.0, %v2823_v42  ;;  %v2806_v8 = vmul.f32 %v2805_v43, %v7581_v58  ;;  %v2820_v45 = vsel %vm7629_vm8, %v2819_v40, %v2815_v46  ;;  %v7760_v43 = vld [vmem:[%s4344_s24 + $0x378] sm:$0xff] }
 0x281   : > { %v4047_v61 = vpop.eup %4046  ;;  %3439 = vst [vmem:[%s4528_s17 + $0x318] sm:$0xff] %v3311_v3  ;;  %v2834_v39 = vor.u32 1.1754944e-38, %v2833_v19  ;;  %v2838_v28 = vmul.f32 %v4045_v15, %v7610_v53  ;;  %v2821_v10 = vmul.f32 %v2820_v45, %v7589_v32  ;;  %v2848_v12 = vand.u32 2147483648, %v7610_v53 }
 0x282   : > { %v2825_v56 = vmul.f32 %v4043_v5, %v2824_v51  ;;  %4048 = vrcp.f32 %v7668_v4  ;;  %v3312_v7 = vsel %vm1008_vm4, %v7465_v34, %v2806_v8  ;;  %vm2843_vm1 = vweird.f32 %v4045_v15  ;;  %v7701_v34 = vld [vmem:[%s4344_s24 + $0x360] sm:$0xff] }
 0x283   : > { %v2839_v18 = vsub.f32 1.0, %v2838_v28  ;;  %v2846_v32 = vand.u32 2147483647, %v7610_v53  ;;  %3440 = vst [vmem:[%s4528_s17 + $0x320] sm:$0xff] %v3312_v7  ;;  %v3313_v55 = vsel %vm1009_vm9, %v7468_v9, %v2821_v10  ;;  %vm2832_vm2 = vcmp.eq.f32.partialorder %v2831_v50, 8.507059e+37  ;;  %vm7712_vm3 = vmor %vm2842_vm0, %vm2843_vm1  ;;  %v7767_v8 = vld [vmem:[%s4344_s24 + $0x380] sm:$0xff] }
 0x284   : > { %v2826_v13 = vadd.f32 %v4043_v5, %v2825_v56  ;;  %v757_v59 = vadd.f32 2.0, %v4047_v61  ;;  %3441 = vst [vmem:[%s4528_s17 + $0x328] sm:$0xff] %v3313_v55  ;;  %vm1010_vm10 = vcmp.gt.f32.partialorder %v7471_v36, 20.0  ;;  %v1139_v62 = vmul.f32 %v7591_v47, %v7483_v0  ;;  %v7775_v7 = vld [vmem:[%s4344_s24 + $0x388] sm:$0xff] }
 0x285   : > { %v2840_v22 = vmul.f32 %v4045_v15, %v2839_v18  ;;  %4050 = vpow2.f32 %v7559_v17  ;;  %v2849_v48 = vor.u32 1.1754944e-38, %v2848_v12  ;;  %v610_v52 = vmul.f32 1.442695, %v375_v20 }
 0x286   : > { %v2830_v38 = vsel %vm7691_vm7, %v4043_v5, %v2826_v13  ;;  %v7716_v57 = vmul.f32 %v4047_v61, %v757_v59  ;;  %vm2847_vm4 = vcmp.eq.f32.partialorder %v2846_v32, 8.507059e+37  ;;  %v376_v17 = vmin.f32 %v7701_v34, 20.0 }
 0x287   : > { %v2835_v47 = vsel %vm2832_vm2, %v2834_v39, %v2830_v38  ;;  %v2841_v6 = vadd.f32 %v4045_v15, %v2840_v22  ;;  %vm1011_vm5 = vcmp.gt.f32.partialorder %v7483_v0, 20.0  ;;  %4052 = vpow2.f32 %v610_v52 }
 0x288   : > { %v4049_v27 = vpop.eup %4048  ;;  %v2836_v24 = vmul.f32 %v2835_v47, %v1138_v14  ;;  %v7723_v53 = vadd.f32 2.0, %v7716_v57  ;;  %vm2857_vm6 = vweird.f32 %v7668_v4  ;;  %v612_v20 = vmul.f32 1.442695, %v376_v17 }
 0x289   : > { %v2845_v33 = vsel %vm7712_vm3, %v4045_v15, %v2841_v6  ;;  %v2853_v25 = vmul.f32 %v4049_v27, %v7668_v4  ;;  %v2863_v30 = vand.u32 2147483648, %v7668_v4  ;;  %vm2858_vm9 = vweird.f32 %v4049_v27 }
 0x28a   : > { %v3314_v29 = vsel %vm1010_vm10, %v7471_v36, %v2836_v24  ;;  %v2850_v63 = vsel %vm2847_vm4, %v2849_v48, %v2845_v33  ;;  %4054 = vrcp.f32 %v7723_v53  ;;  %v2861_v40 = vand.u32 2147483647, %v7668_v4  ;;  %vm7749_vm8 = vmor %vm2857_vm6, %vm2858_vm9 }
 0x28b   : > { %v4051_v41 = vpop.eup %4050  ;;  %3442 = vst [vmem:[%s4528_s17 + $0x330] sm:$0xff] %v3314_v29  ;;  %v2851_v16 = vmul.f32 %v2850_v63, %v1139_v62  ;;  %v2854_v60 = vsub.f32 1.0, %v2853_v25  ;;  %4056 = vpow2.f32 %v612_v20  ;;  %v377_v5 = vmin.f32 %v7730_v35, 20.0 }
 0x28c   : > { %v758_v14 = vadd.f32 2.0, %v4051_v41  ;;  %v2864_v21 = vor.u32 1.1754944e-38, %v2863_v30  ;;  %v1140_v50 = vmul.f32 %v7637_v37, %v7511_v54  ;;  %vm2862_vm11 = vcmp.eq.f32.partialorder %v2861_v40, 8.507059e+37 }
 0x28d   : > { %v3315_v36 = vsel %vm1011_vm5, %v7483_v0, %v2851_v16  ;;  %v2855_v23 = vmul.f32 %v4049_v27, %v2854_v60  ;;  %v4053_v11 = vpop.eup %4052  ;;  %v614_v42 = vmul.f32 1.442695, %v377_v5  ;;  %vm1012_vm12 = vcmp.gt.f32.partialorder %v7511_v54, 20.0 }
 0x28e   : > { %3443 = vst [vmem:[%s4528_s17 + $0x338] sm:$0xff] %v3315_v36  ;;  %v886_v31 = vmul.f32 %v4051_v41, %v758_v14  ;;  %v759_v44 = vadd.f32 2.0, %v4053_v11  ;;  %v378_v4 = vmin.f32 %v7744_v49, 20.0  ;;  %v2876_v37 = vand.u32 2147483647, %v7723_v53 }
 0x28f   : > { %v2856_v0 = vadd.f32 %v4049_v27, %v2855_v23  ;;  %4058 = vpow2.f32 %v614_v42  ;;  %vm1013_vm13 = vcmp.gt.f32.partialorder %v7532_v2, 20.0  ;;  %vm2872_vm14 = vweird.f32 %v7723_v53 }
 0x290   : > { %v4055_v15 = vpop.eup %4054  ;;  %v7756_v3 = vadd.f32 2.0, %v886_v31  ;;  %v887_v61 = vmul.f32 %v4053_v11, %v759_v44  ;;  %v2878_v28 = vand.u32 2147483648, %v7723_v53  ;;  %v379_v12 = vmin.f32 %v7760_v43, 20.0 }
 0x291   : > { %v2860_v46 = vsel %vm7749_vm8, %v4049_v27, %v2856_v0  ;;  %v2868_v51 = vmul.f32 %v4055_v15, %v7723_v53  ;;  %v4057_v45 = vpop.eup %4056  ;;  %vm2873_vm15 = vweird.f32 %v4055_v15  ;;  %v616_v32 = vmul.f32 1.442695, %v378_v4 }
 0x292   : > { %v2865_v39 = vsel %vm2862_vm11, %v2864_v21, %v2860_v46  ;;  %4060 = vrcp.f32 %v7756_v3  ;;  %v7777_v58 = vadd.f32 2.0, %v887_v61  ;;  %v760_v18 = vadd.f32 2.0, %v4057_v45  ;;  %vm7792_vm7 = vmor %vm2872_vm14, %vm2873_vm15 }
 0x293   : > { %v2866_v10 = vmul.f32 %v2865_v39, %v1140_v50  ;;  %v2869_v56 = vsub.f32 1.0, %v2868_v51  ;;  %v380_v55 = vmin.f32 %v7767_v8, 20.0  ;;  %v1141_v59 = vmul.f32 %v7716_v57, %v7532_v2 }
 0x294   : > { %vm7785_vm0 = vcmp.eq.f32.partialorder %v2876_v37, 8.507059e+37  ;;  %v2879_v48 = vor.u32 1.1754944e-38, %v2878_v28  ;;  %v1142_v52 = vmul.f32 %v886_v31, %v7535_v26  ;;  %4062 = vrcp.f32 %v7777_v58 }
 0x295   : > { %v3316_v13 = vsel %vm1012_vm12, %v7511_v54, %v2866_v10  ;;  %v2870_v62 = vmul.f32 %v4055_v15, %v2869_v56  ;;  %v4059_v38 = vpop.eup %4058  ;;  %v381_v54 = vmin.f32 %v7775_v7, 20.0  ;;  %v888_v47 = vmul.f32 %v4057_v45, %v760_v18 }
 0x296   : > { %3444 = vst [vmem:[%s4528_s17 + $0x340] sm:$0xff] %v3316_v13  ;;  %v761_v6 = vadd.f32 2.0, %v4059_v38  ;;  %4064 = vpow2.f32 %v616_v32  ;;  %vm2887_vm1 = vweird.f32 %v7756_v3  ;;  %v2891_v27 = vand.u32 2147483647, %v7756_v3 }
 0x297   : > { %v2871_v57 = vadd.f32 %v4055_v15, %v2870_v62  ;;  %v618_v24 = vmul.f32 1.442695, %v379_v12  ;;  %v620_v53 = vmul.f32 1.442695, %v380_v55  ;;  %v2893_v20 = vand.u32 2147483648, %v7756_v3 }
 0x298   : > { %v4061_v17 = vpop.eup %4060  ;;  %v7806_v29 = vmul.f32 %v887_v61, %v7545_v1  ;;  %vm1014_vm2 = vcmp.gt.f32.partialorder %v7535_v26, 20.0  ;;  %v7811_v30 = vadd.f32 2.0, %v888_v47  ;;  %v889_v41 = vmul.f32 %v4059_v38, %v761_v6 }
 0x299   : > { %v2875_v33 = vsel %vm7792_vm7, %v4055_v15, %v2871_v57  ;;  %v2883_v25 = vmul.f32 %v4061_v17, %v7756_v3  ;;  %4066 = vpow2.f32 %v618_v24  ;;  %vm2888_vm10 = vweird.f32 %v4061_v17 }
 0x29a   : > { %v2880_v63 = vsel %vm7785_vm0, %v2879_v48, %v2875_v33  ;;  %4068 = vpow2.f32 %v620_v53  ;;  %v4063_v40 = vpop.eup %4062  ;;  %vm7813_vm3 = vcmp.eq.f32.partialorder %v2891_v27, 8.507059e+37  ;;  %v2906_v5 = vand.u32 2147483647, %v7777_v58  ;;  %vm7827_vm4 = vmor %vm2887_vm1, %vm2888_vm10 }
 0x29b   : > { %v2881_v16 = vmul.f32 %v2880_v63, %v1141_v59  ;;  %v2884_v60 = vsub.f32 1.0, %v2883_v25  ;;  %v2908_v36 = vand.u32 2147483648, %v7777_v58  ;;  %4070 = vrcp.f32 %v7811_v30 }
 0x29c   : > { %v4065_v23 = vpop.eup %4064  ;;  %v2894_v21 = vor.u32 1.1754944e-38, %v2893_v20  ;;  %v2898_v31 = vmul.f32 %v4063_v40, %v7777_v58  ;;  %vm1015_vm5 = vcmp.gt.f32.partialorder %v7545_v1, 20.0  ;;  %vm2902_vm6 = vweird.f32 %v7777_v58 }
 0x29d   : > { %v3317_v11 = vsel %vm1013_vm13, %v7532_v2, %v2881_v16  ;;  %v2885_v19 = vmul.f32 %v4061_v17, %v2884_v60  ;;  %v2921_v50 = vand.u32 2147483647, %v7811_v30  ;;  %v2923_v0 = vand.u32 2147483648, %v7811_v30 }
 0x29e   : > { %3445 = vst [vmem:[%s4528_s17 + $0x348] sm:$0xff] %v3317_v11  ;;  %v7835_v2 = vadd.f32 2.0, %v889_v41  ;;  %v2899_v15 = vsub.f32 1.0, %v2898_v31  ;;  %vm2903_vm9 = vweird.f32 %v4063_v40  ;;  %v762_v4 = vadd.f32 2.0, %v4065_v23 }
 0x29f   : > { %v2886_v44 = vadd.f32 %v4061_v17, %v2885_v19  ;;  %v4067_v46 = vpop.eup %4066  ;;  %vm7837_vm8 = vcmp.eq.f32.partialorder %v2906_v5, 8.507059e+37  ;;  %v2909_v51 = vor.u32 1.1754944e-38, %v2908_v36  ;;  %v1144_v37 = vmul.f32 %v888_v47, %v7701_v34  ;;  %vm7849_vm11 = vmor %vm2902_vm6, %vm2903_vm9 }
 0x2a0   : > { %4072 = vrcp.f32 %v7835_v2  ;;  %v4069_v61 = vpop.eup %4068  ;;  %v2900_v39 = vmul.f32 %v4063_v40, %v2899_v15  ;;  %v890_v28 = vmul.f32 %v4065_v23, %v762_v4  ;;  %v763_v10 = vadd.f32 2.0, %v4067_v46 }
 0x2a1   : > { %v2890_v45 = vsel %vm7827_vm4, %v4061_v17, %v2886_v44  ;;  %v4071_v56 = vpop.eup %4070  ;;  %vm2917_vm12 = vweird.f32 %v7811_v30  ;;  %vm7854_vm13 = vcmp.eq.f32.partialorder %v2921_v50, 8.507059e+37  ;;  %v2924_v55 = vor.u32 1.1754944e-38, %v2923_v0 }
 0x2a2   : > { %v2895_v12 = vsel %vm7813_vm3, %v2894_v21, %v2890_v45  ;;  %v2901_v59 = vadd.f32 %v4063_v40, %v2900_v39  ;;  %v2913_v62 = vmul.f32 %v4071_v56, %v7811_v30  ;;  %v764_v22 = vadd.f32 2.0, %v4069_v61  ;;  %v7949_v45 = vld [vmem:[%s4344_s24 + $0x3a0] sm:$0xff] }
 0x2a3   : > { %v2896_v13 = vmul.f32 %v2895_v12, %v1142_v52  ;;  %vm1016_vm14 = vcmp.gt.f32.partialorder %v7701_v34, 20.0  ;;  %v7861_v58 = vmul.f32 %v889_v41, %v7730_v35  ;;  %v2936_v38 = vand.u32 2147483647, %v7835_v2 }
 0x2a4   : > { %v7864_v9 = vadd.f32 2.0, %v890_v28  ;;  %v891_v48 = vmul.f32 %v4067_v46, %v763_v10  ;;  %v2905_v52 = vsel %vm7849_vm11, %v4063_v40, %v2901_v59  ;;  %v2914_v47 = vsub.f32 1.0, %v2913_v62 }
 0x2a5   : > { %v3318_v57 = vsel %vm1014_vm2, %v7535_v26, %v2896_v13  ;;  %vm2918_vm15 = vweird.f32 %v4071_v56  ;;  %v2910_v17 = vsel %vm7837_vm8, %v2909_v51, %v2905_v52  ;;  %vm2932_vm0 = vweird.f32 %v7835_v2 }
 0x2a6   : > { %v4073_v6 = vpop.eup %4072  ;;  %3446 = vst [vmem:[%s4528_s17 + $0x350] sm:$0xff] %v3318_v57  ;;  %v2938_v27 = vand.u32 2147483648, %v7835_v2  ;;  %4074 = vrcp.f32 %v7864_v9  ;;  %v2911_v24 = vmul.f32 %v2910_v17, %v7806_v29  ;;  %v2915_v26 = vmul.f32 %v4071_v56, %v2914_v47  ;;  %vm7883_vm7 = vmor %vm2917_vm12, %vm2918_vm15 }
 0x2a7   : > { %v2928_v53 = vmul.f32 %v4073_v6, %v7835_v2  ;;  %v7879_v33 = vmul.f32 %v4069_v61, %v764_v22  ;;  %vm1017_vm1 = vcmp.gt.f32.partialorder %v7730_v35, 20.0  ;;  %vm7888_vm2 = vcmp.eq.f32.partialorder %v2936_v38, 8.507059e+37  ;;  %v7928_v2 = vld [vmem:[%s4344_s24 + $0x390] sm:$0xff]  ;;  %v7946_v61 = vld [vmem:[%s4344_s24 + $0x398] sm:$0xff] }
 0x2a8   : > { %v2951_v63 = vand.u32 2147483647, %v7864_v9  ;;  %v7893_v29 = vadd.f32 2.0, %v891_v48  ;;  %v622_v41 = vmul.f32 1.442695, %v381_v54  ;;  %v3319_v30 = vsel %vm1015_vm5, %v7545_v1, %v2911_v24 }
 0x2a9   : > { %v2916_v16 = vadd.f32 %v4071_v56, %v2915_v26  ;;  %v2929_v60 = vsub.f32 1.0, %v2928_v53  ;;  %vm2933_vm10 = vweird.f32 %v4073_v6  ;;  %3447 = vst [vmem:[%s4528_s17 + $0x358] sm:$0xff] %v3319_v30  ;;  %v2939_v40 = vor.u32 1.1754944e-38, %v2938_v27 }
 0x2aa   : > { %v7902_v14 = vmul.f32 %v890_v28, %v7744_v49  ;;  %v2953_v5 = vand.u32 2147483648, %v7864_v9  ;;  %4076 = vrcp.f32 %v7893_v29  ;;  %v2966_v23 = vand.u32 2147483647, %v7893_v29  ;;  %vm7916_vm3 = vmor %vm2932_vm0, %vm2933_vm10 }
 0x2ab   : > { %v2920_v54 = vsel %vm7883_vm7, %v4071_v56, %v2916_v16  ;;  %v2930_v36 = vmul.f32 %v4073_v6, %v2929_v60  ;;  %v7910_v1 = vadd.f32 2.0, %v7879_v33  ;;  %vm2947_vm4 = vweird.f32 %v7864_v9 }
 0x2ac   : > { %v4075_v11 = vpop.eup %4074  ;;  %v2925_v19 = vsel %vm7854_vm13, %v2924_v55, %v2920_v54  ;;  %v2968_v31 = vand.u32 2147483648, %v7893_v29  ;;  %4078 = vpow2.f32 %v622_v41  ;;  %vm7923_vm5 = vcmp.eq.f32.partialorder %v2951_v63, 8.507059e+37  ;;  %v7960_v55 = vld [vmem:[%s4344_s24 + $0x3a8] sm:$0xff]  ;;  %v7990_v63 = vld [vmem:[%s4344_s24 + $0x3b0] sm:$0xff] }
 0x2ad   : > { %v2926_v42 = vmul.f32 %v2925_v19, %v1144_v37  ;;  %v2931_v50 = vadd.f32 %v4073_v6, %v2930_v36  ;;  %v2943_v0 = vmul.f32 %v4075_v11, %v7864_v9  ;;  %vm1018_vm6 = vcmp.gt.f32.partialorder %v7744_v49, 20.0 }
 0x2ae   : > { %v2954_v15 = vor.u32 1.1754944e-38, %v2953_v5  ;;  %v7932_v4 = vmul.f32 %v891_v48, %v7760_v43  ;;  %vm2962_vm9 = vweird.f32 %v7893_v29  ;;  %4080 = vrcp.f32 %v7910_v1 }
 0x2af   : > { %v3320_v46 = vsel %vm1016_vm14, %v7701_v34, %v2926_v42  ;;  %v2935_v3 = vsel %vm7916_vm3, %v4073_v6, %v2931_v50  ;;  %v2944_v51 = vsub.f32 1.0, %v2943_v0  ;;  %vm2948_vm8 = vweird.f32 %v4075_v11 }
 0x2b0   : > { %vm7941_vm11 = vcmp.eq.f32.partialorder %v2966_v23, 8.507059e+37  ;;  %v4077_v39 = vpop.eup %4076  ;;  %3448 = vst [vmem:[%s4528_s17 + $0x360] sm:$0xff] %v3320_v46  ;;  %v2940_v28 = vsel %vm7888_vm2, %v2939_v40, %v2935_v3  ;;  %v2969_v34 = vor.u32 1.1754944e-38, %v2968_v31  ;;  %vm2977_vm12 = vweird.f32 %v7910_v1  ;;  %vm7965_vm13 = vmor %vm2947_vm4, %vm2948_vm8 }
 0x2b1   : > { %v382_v10 = vmin.f32 %v7928_v2, 20.0  ;;  %v2941_v56 = vmul.f32 %v2940_v28, %v7861_v58  ;;  %v2945_v12 = vmul.f32 %v4075_v11, %v2944_v51  ;;  %v2958_v18 = vmul.f32 %v4077_v39, %v7893_v29 }
 0x2b2   : > { %v2981_v32 = vand.u32 2147483647, %v7910_v1  ;;  %v4079_v13 = vpop.eup %4078  ;;  %vm2963_vm14 = vweird.f32 %v4077_v39  ;;  %v383_v22 = vmin.f32 %v7946_v61, 20.0  ;;  %v384_v58 = vmin.f32 %v7949_v45, 20.0 }
 0x2b3   : > { %v624_v62 = vmul.f32 1.442695, %v382_v10  ;;  %v3321_v38 = vsel %vm1017_vm1, %v7730_v35, %v2941_v56  ;;  %v2946_v48 = vadd.f32 %v4075_v11, %v2945_v12  ;;  %v2959_v57 = vsub.f32 1.0, %v2958_v18  ;;  %vm7985_vm15 = vmor %vm2962_vm9, %vm2963_vm14 }
 0x2b4   : > { %v765_v52 = vadd.f32 2.0, %v4079_v13  ;;  %v4081_v47 = vpop.eup %4080  ;;  %3449 = vst [vmem:[%s4528_s17 + $0x368] sm:$0xff] %v3321_v38  ;;  %v626_v9 = vmul.f32 1.442695, %v383_v22  ;;  %v628_v6 = vmul.f32 1.442695, %v384_v58 }
 0x2b5   : > { %4082 = vpow2.f32 %v624_v62  ;;  %v385_v17 = vmin.f32 %v7960_v55, 20.0  ;;  %v2950_v27 = vsel %vm7965_vm13, %v4075_v11, %v2946_v48  ;;  %v2960_v24 = vmul.f32 %v4077_v39, %v2959_v57 }
 0x2b6   : > { %v2973_v26 = vmul.f32 %v4081_v47, %v7910_v1  ;;  %v2983_v53 = vand.u32 2147483648, %v7910_v1  ;;  %v2955_v35 = vsel %vm7923_vm5, %v2954_v15, %v2950_v27  ;;  %vm2978_vm0 = vweird.f32 %v4081_v47 }
 0x2b7   : > { %v893_v20 = vmul.f32 %v4079_v13, %v765_v52  ;;  %4084 = vpow2.f32 %v626_v9  ;;  %v2956_v41 = vmul.f32 %v2955_v35, %v7902_v14  ;;  %v2961_v30 = vadd.f32 %v4077_v39, %v2960_v24  ;;  %vm8008_vm1 = vmor %vm2977_vm12, %vm2978_vm0 }
 0x2b8   : > { %v2974_v16 = vsub.f32 1.0, %v2973_v26  ;;  %4086 = vpow2.f32 %v628_v6  ;;  %vm1019_vm7 = vcmp.gt.f32.partialorder %v7760_v43, 20.0  ;;  %v630_v40 = vmul.f32 1.442695, %v385_v17 }
 0x2b9   : > { %v1277_v60 = vadd.f32 2.0, %v893_v20  ;;  %v3322_v29 = vsel %vm1018_vm6, %v7744_v49, %v2956_v41  ;;  %v2965_v5 = vsel %vm7985_vm15, %v4077_v39, %v2961_v30  ;;  %v386_v36 = vmin.f32 %v7990_v63, 20.0  ;;  %v8023_v39 = vld [vmem:[%s4344_s24 + $0x3b8] sm:$0xff] }
 0x2ba   : > { %v2975_v54 = vmul.f32 %v4081_v47, %v2974_v16  ;;  %3450 = vst [vmem:[%s4528_s17 + $0x370] sm:$0xff] %v3322_v29  ;;  %v2970_v14 = vsel %vm7941_vm11, %v2969_v34, %v2965_v5  ;;  %v1148_v11 = vmul.f32 %v7879_v33, %v7767_v8  ;;  %v2984_v19 = vor.u32 1.1754944e-38, %v2983_v53 }
 0x2bb   : > { %v4083_v23 = vpop.eup %4082  ;;  %4088 = vrcp.f32 %v1277_v60  ;;  %v2971_v21 = vmul.f32 %v2970_v14, %v7932_v4  ;;  %vm2982_vm2 = vcmp.eq.f32.partialorder %v2981_v32, 8.507059e+37  ;;  %v632_v0 = vmul.f32 1.442695, %v386_v36 }
 0x2bc   : > { %v2976_v31 = vadd.f32 %v4081_v47, %v2975_v54  ;;  %v766_v42 = vadd.f32 2.0, %v4083_v23  ;;  %4090 = vpow2.f32 %v630_v40  ;;  %vm1020_vm10 = vcmp.gt.f32.partialorder %v7767_v8, 20.0 }
 0x2bd   : > { %v4085_v50 = vpop.eup %4084  ;;  %v3323_v33 = vsel %vm1019_vm7, %v7760_v43, %v2971_v21  ;;  %v2996_v34 = vand.u32 2147483647, %v1277_v60  ;;  %4092 = vpow2.f32 %v632_v0  ;;  %v2998_v18 = vand.u32 2147483648, %v1277_v60 }
 0x2be   : > { %v4087_v44 = vpop.eup %4086  ;;  %v2980_v1 = vsel %vm8008_vm1, %v4081_v47, %v2976_v31  ;;  %v894_v15 = vmul.f32 %v4083_v23, %v766_v42  ;;  %3451 = vst [vmem:[%s4528_s17 + $0x378] sm:$0xff] %v3323_v33  ;;  %v767_v46 = vadd.f32 2.0, %v4085_v50  ;;  %vm1021_vm3 = vcmp.gt.f32.partialorder %v7775_v7, 20.0 }
 0x2bf   : > { %v2985_v4 = vsel %vm2982_vm2, %v2984_v19, %v2980_v1  ;;  %v768_v3 = vadd.f32 2.0, %v4087_v44  ;;  %v1149_v13 = vmul.f32 %v893_v20, %v7775_v7  ;;  %vm2992_vm4 = vweird.f32 %v1277_v60 }
 0x2c0   : > { %v2986_v51 = vmul.f32 %v2985_v4, %v1148_v11  ;;  %v8020_v37 = vadd.f32 2.0, %v894_v15  ;;  %v895_v10 = vmul.f32 %v4085_v50, %v767_v46  ;;  %v387_v59 = vmin.f32 %v8023_v39, 20.0 }
 0x2c1   : > { %v4089_v28 = vpop.eup %4088  ;;  %v896_v43 = vmul.f32 %v4087_v44, %v768_v3  ;;  %vm8038_vm6 = vcmp.eq.f32.partialorder %v2996_v34, 8.507059e+37  ;;  %v2999_v9 = vor.u32 1.1754944e-38, %v2998_v18  ;;  %v1150_v6 = vmul.f32 %v894_v15, %v7928_v2 }
 0x2c2   : > { %v3324_v56 = vsel %vm1020_vm10, %v7767_v8, %v2986_v51  ;;  %v2988_v12 = vmul.f32 %v4089_v28, %v1277_v60  ;;  %4094 = vrcp.f32 %v8020_v37  ;;  %v4091_v32 = vpop.eup %4090  ;;  %vm2993_vm5 = vweird.f32 %v4089_v28  ;;  %v8036_v8 = vld [vmem:[%s4344_s24 + $0x3c0] sm:$0xff] }
 0x2c3   : > { %3452 = vst [vmem:[%s4528_s17 + $0x380] sm:$0xff] %v3324_v56  ;;  %v8031_v22 = vadd.f32 2.0, %v895_v10  ;;  %v8033_v58 = vadd.f32 2.0, %v896_v43  ;;  %v3011_v48 = vand.u32 2147483647, %v8020_v37  ;;  %v3013_v57 = vand.u32 2147483648, %v8020_v37  ;;  %v4093_v17 = vpop.eup %4092  ;;  %vm8047_vm9 = vmor %vm2992_vm4, %vm2993_vm5 }
 0x2c4   : > { %v2989_v62 = vsub.f32 1.0, %v2988_v12  ;;  %v769_v52 = vadd.f32 2.0, %v4091_v32  ;;  %vm3007_vm8 = vweird.f32 %v8020_v37  ;;  %v634_v24 = vmul.f32 1.442695, %v387_v59 }
 0x2c5   : > { %4096 = vrcp.f32 %v8031_v22  ;;  %v388_v26 = vmin.f32 %v8036_v8, 20.0  ;;  %v8055_v25 = vmul.f32 %v895_v10, %v7946_v61  ;;  %v8058_v20 = vmul.f32 %v896_v43, %v7949_v45 }
 0x2c6   : > { %v2990_v47 = vmul.f32 %v4089_v28, %v2989_v62  ;;  %4098 = vrcp.f32 %v8033_v58  ;;  %v8060_v41 = vmul.f32 %v4091_v32, %v769_v52  ;;  %vm8063_vm11 = vcmp.eq.f32.partialorder %v3011_v48, 8.507059e+37 }
 0x2c7   : > { %v3014_v60 = vor.u32 1.1754944e-38, %v3013_v57  ;;  %v3026_v40 = vand.u32 2147483647, %v8031_v22  ;;  %vm1022_vm12 = vcmp.gt.f32.partialorder %v7928_v2, 20.0  ;;  %v3028_v5 = vand.u32 2147483648, %v8031_v22 }
 0x2c8   : > { %v4095_v53 = vpop.eup %4094  ;;  %v2991_v35 = vadd.f32 %v4089_v28, %v2990_v47  ;;  %v8073_v54 = vadd.f32 2.0, %v8060_v41  ;;  %v770_v14 = vadd.f32 2.0, %v4093_v17  ;;  %4100 = vpow2.f32 %v634_v24 }
 0x2c9   : > { %v3003_v30 = vmul.f32 %v4095_v53, %v8020_v37  ;;  %vm3008_vm13 = vweird.f32 %v4095_v53  ;;  %vm3022_vm14 = vweird.f32 %v8031_v22  ;;  %v3041_v19 = vand.u32 2147483647, %v8033_v58 }
 0x2ca   : > { %v2995_v29 = vsel %vm8047_vm9, %v4089_v28, %v2991_v35  ;;  %4102 = vrcp.f32 %v8073_v54  ;;  %vm3037_vm15 = vweird.f32 %v8033_v58  ;;  %v3043_v50 = vand.u32 2147483648, %v8033_v58  ;;  %vm8089_vm0 = vmor %vm3007_vm8, %vm3008_vm13 }
 0x2cb   : > { %v3000_v36 = vsel %vm8038_vm6, %v2999_v9, %v2995_v29  ;;  %v3004_v23 = vsub.f32 1.0, %v3003_v30  ;;  %v4097_v11 = vpop.eup %4096  ;;  %vm1023_vm7 = vcmp.gt.f32.partialorder %v7946_v61, 20.0  ;;  %vm8094_vm1 = vcmp.eq.f32.partialorder %v3026_v40, 8.507059e+37 }
 0x2cc   : > { %v3001_v49 = vmul.f32 %v3000_v36, %v1149_v13  ;;  %v4099_v21 = vpop.eup %4098  ;;  %v3018_v42 = vmul.f32 %v4097_v11, %v8031_v22  ;;  %v3029_v1 = vor.u32 1.1754944e-38, %v3028_v5  ;;  %vm3023_vm2 = vweird.f32 %v4097_v11 }
 0x2cd   : > { %v3005_v31 = vmul.f32 %v4095_v53, %v3004_v23  ;;  %v3033_v15 = vmul.f32 %v4099_v21, %v8033_v58  ;;  %vm3038_vm10 = vweird.f32 %v4099_v21  ;;  %v636_v37 = vmul.f32 1.442695, %v388_v26  ;;  %vm8115_vm4 = vmor %vm3022_vm14, %vm3023_vm2 }
 0x2ce   : > { %v3325_v0 = vsel %vm1021_vm3, %v7775_v7, %v3001_v49  ;;  %v3019_v46 = vsub.f32 1.0, %v3018_v42  ;;  %v8100_v7 = vmul.f32 %v4093_v17, %v770_v14  ;;  %vm8102_vm3 = vcmp.eq.f32.partialorder %v3041_v19, 8.507059e+37  ;;  %v4101_v28 = vpop.eup %4100  ;;  %vm8122_vm5 = vmor %vm3037_vm15, %vm3038_vm10  ;;  %v8137_v17 = vld [vmem:[%s4344_s24 + $0x3c8] sm:$0xff]  ;;  %v8170_v14 = vld [vmem:[%s4344_s24 + $0x3d0] sm:$0xff] }
 0x2cf   : > { %3453 = vst [vmem:[%s4528_s17 + $0x388] sm:$0xff] %v3325_v0  ;;  %v3006_v4 = vadd.f32 %v4095_v53, %v3005_v31  ;;  %v3034_v3 = vsub.f32 1.0, %v3033_v15  ;;  %v3044_v43 = vor.u32 1.1754944e-38, %v3043_v50  ;;  %v771_v59 = vadd.f32 2.0, %v4101_v28  ;;  %v8179_v19 = vld [vmem:[%s4344_s24 + $0x3d8] sm:$0xff]  ;;  %v8185_v50 = vld [vmem:[%s4344_s24 + $0x3e0] sm:$0xff] }
 0x2d0   : > { %v3020_v10 = vmul.f32 %v4097_v11, %v3019_v46  ;;  %v8109_v56 = vadd.f32 2.0, %v8100_v7  ;;  %v4103_v12 = vpop.eup %4102  ;;  %4104 = vpow2.f32 %v636_v37  ;;  %vm3052_vm6 = vweird.f32 %v8073_v54 }
 0x2d1   : > { %v3010_v34 = vsel %vm8089_vm0, %v4095_v53, %v3006_v4  ;;  %v3035_v13 = vmul.f32 %v4099_v21, %v3034_v3  ;;  %v3048_v22 = vmul.f32 %v4103_v12, %v8073_v54  ;;  %v3056_v52 = vand.u32 2147483647, %v8073_v54 }
 0x2d2   : > { %v3015_v18 = vsel %vm8063_vm11, %v3014_v60, %v3010_v34  ;;  %v3021_v38 = vadd.f32 %v4097_v11, %v3020_v10  ;;  %v3058_v47 = vand.u32 2147483648, %v8073_v54  ;;  %4106 = vrcp.f32 %v8109_v56 }
 0x2d3   : > { %v3016_v62 = vmul.f32 %v3015_v18, %v1150_v6  ;;  %v3036_v57 = vadd.f32 %v4099_v21, %v3035_v13  ;;  %v3049_v6 = vsub.f32 1.0, %v3048_v22  ;;  %vm3053_vm9 = vweird.f32 %v4103_v12 }
 0x2d4   : > { %v3025_v58 = vsel %vm8115_vm4, %v4097_v11, %v3021_v38  ;;  %vm1024_vm8 = vcmp.gt.f32.partialorder %v7949_v45, 20.0  ;;  %v899_v26 = vmul.f32 %v4101_v28, %v771_v59  ;;  %v1153_v35 = vmul.f32 %v8060_v41, %v7960_v55  ;;  %vm8153_vm11 = vmor %vm3052_vm6, %vm3053_vm9 }
 0x2d5   : > { %v3326_v9 = vsel %vm1022_vm12, %v7928_v2, %v3016_v62  ;;  %v3030_v27 = vsel %vm8094_vm1, %v3029_v1, %v3025_v58  ;;  %v3040_v24 = vsel %vm8122_vm5, %v4099_v21, %v3036_v57  ;;  %v3050_v30 = vmul.f32 %v4103_v12, %v3049_v6 }
 0x2d6   : > { %3454 = vst [vmem:[%s4528_s17 + $0x390] sm:$0xff] %v3326_v9  ;;  %v3031_v2 = vmul.f32 %v3030_v27, %v8055_v25  ;;  %v3045_v53 = vsel %vm8102_vm3, %v3044_v43, %v3040_v24  ;;  %v4105_v16 = vpop.eup %4104  ;;  %v3059_v29 = vor.u32 1.1754944e-38, %v3058_v47  ;;  %v8157_v25 = vadd.f32 2.0, %v899_v26 }
 0x2d7   : > { %v3046_v60 = vmul.f32 %v3045_v53, %v8058_v20  ;;  %v389_v5 = vmin.f32 %v8137_v17, 20.0  ;;  %v3051_v36 = vadd.f32 %v4103_v12, %v3050_v30  ;;  %vm3057_vm12 = vcmp.eq.f32.partialorder %v3056_v52, 8.507059e+37 }
 0x2d8   : > { %v3327_v41 = vsel %vm1023_vm7, %v7946_v61, %v3031_v2  ;;  %v772_v23 = vadd.f32 2.0, %v4105_v16  ;;  %v4107_v20 = vpop.eup %4106  ;;  %vm1025_vm13 = vcmp.gt.f32.partialorder %v7960_v55, 20.0  ;;  %4108 = vrcp.f32 %v8157_v25 }
 0x2d9   : > { %3455 = vst [vmem:[%s4528_s17 + $0x398] sm:$0xff] %v3327_v41  ;;  %v3328_v54 = vsel %vm1024_vm8, %v7949_v45, %v3046_v60  ;;  %v3055_v61 = vsel %vm8153_vm11, %v4103_v12, %v3051_v36  ;;  %v3063_v11 = vmul.f32 %v4107_v20, %v8109_v56  ;;  %vm3067_vm14 = vweird.f32 %v8109_v56 }
 0x2da   : > { %3456 = vst [vmem:[%s4528_s17 + $0x3a0] sm:$0xff] %v3328_v54  ;;  %v3071_v49 = vand.u32 2147483647, %v8109_v56  ;;  %v3060_v21 = vsel %vm3057_vm12, %v3059_v29, %v3055_v61  ;;  %v3073_v45 = vand.u32 2147483648, %v8109_v56  ;;  %v8182_v31 = vmul.f32 %v4105_v16, %v772_v23  ;;  %v8217_v56 = vld [vmem:[%s4344_s24 + $0x3f0] sm:$0xff] }
 0x2db   : > { %v638_v42 = vmul.f32 1.442695, %v389_v5  ;;  %v3061_v0 = vmul.f32 %v3060_v21, %v1153_v35  ;;  %v3064_v44 = vsub.f32 1.0, %v3063_v11  ;;  %vm3068_vm15 = vweird.f32 %v4107_v20  ;;  %v8254_v11 = vld [vmem:[%s4344_s24 + $0x3f8] sm:$0xff] }
 0x2dc   : > { %v390_v33 = vmin.f32 %v8170_v14, 20.0  ;;  %vm1026_vm0 = vcmp.gt.f32.partialorder %v7990_v63, 20.0  ;;  %v8190_v1 = vadd.f32 2.0, %v8182_v31  ;;  %v391_v15 = vmin.f32 %v8179_v19, 20.0  ;;  %vm8202_vm7 = vmor %vm3067_vm14, %vm3068_vm15 }
 0x2dd   : > { %4110 = vpow2.f32 %v638_v42  ;;  %v3329_v4 = vsel %vm1025_vm13, %v7960_v55, %v3061_v0  ;;  %v3065_v46 = vmul.f32 %v4107_v20, %v3064_v44  ;;  %v392_v51 = vmin.f32 %v8185_v50, 20.0 }
 0x2de   : > { %v640_v3 = vmul.f32 1.442695, %v390_v33  ;;  %v4109_v37 = vpop.eup %4108  ;;  %3457 = vst [vmem:[%s4528_s17 + $0x3a8] sm:$0xff] %v3329_v4  ;;  %v1154_v28 = vmul.f32 %v8100_v7, %v7990_v63  ;;  %vm8206_vm1 = vcmp.eq.f32.partialorder %v3071_v49, 8.507059e+37  ;;  %v3074_v55 = vor.u32 1.1754944e-38, %v3073_v45  ;;  %v8214_v7 = vld [vmem:[%s4344_s24 + $0x3e8] sm:$0xff] }
 0x2df   : > { %4112 = vrcp.f32 %v8190_v1  ;;  %v3066_v43 = vadd.f32 %v4107_v20, %v3065_v46  ;;  %v1155_v12 = vmul.f32 %v899_v26, %v8023_v39  ;;  %v3078_v18 = vmul.f32 %v4109_v37, %v8157_v25 }
 0x2e0   : > { %4114 = vpow2.f32 %v640_v3  ;;  %vm3082_vm2 = vweird.f32 %v8157_v25  ;;  %v3086_v32 = vand.u32 2147483647, %v8157_v25  ;;  %v3088_v13 = vand.u32 2147483648, %v8157_v25 }
 0x2e1   : > { %v642_v59 = vmul.f32 1.442695, %v391_v15  ;;  %v3070_v62 = vsel %vm8202_vm7, %v4107_v20, %v3066_v43  ;;  %v3079_v38 = vsub.f32 1.0, %v3078_v18  ;;  %vm3083_vm10 = vweird.f32 %v4109_v37 }
 0x2e2   : > { %v644_v48 = vmul.f32 1.442695, %v392_v51  ;;  %v3075_v57 = vsel %vm8206_vm1, %v3074_v55, %v3070_v62  ;;  %v393_v52 = vmin.f32 %v8214_v7, 20.0  ;;  %v394_v47 = vmin.f32 %v8217_v56, 20.0  ;;  %vm8230_vm3 = vmor %vm3082_vm2, %vm3083_vm10 }
 0x2e3   : > { %v4111_v22 = vpop.eup %4110  ;;  %4116 = vpow2.f32 %v642_v59  ;;  %v3076_v9 = vmul.f32 %v3075_v57, %v1154_v28  ;;  %v3080_v58 = vmul.f32 %v4109_v37, %v3079_v38  ;;  %vm8234_vm4 = vcmp.eq.f32.partialorder %v3086_v32, 8.507059e+37 }
 0x2e4   : > { %v773_v6 = vadd.f32 2.0, %v4111_v22  ;;  %4118 = vpow2.f32 %v644_v48  ;;  %v3089_v2 = vor.u32 1.1754944e-38, %v3088_v13  ;;  %v3101_v53 = vand.u32 2147483647, %v8190_v1 }
 0x2e5   : > { %v4113_v27 = vpop.eup %4112  ;;  %v646_v35 = vmul.f32 1.442695, %v393_v52  ;;  %v3330_v16 = vsel %vm1026_vm0, %v7990_v63, %v3076_v9  ;;  %v3081_v60 = vadd.f32 %v4109_v37, %v3080_v58  ;;  %v648_v29 = vmul.f32 1.442695, %v394_v47 }
 0x2e6   : > { %v4115_v30 = vpop.eup %4114  ;;  %v3093_v40 = vmul.f32 %v4113_v27, %v8190_v1  ;;  %3458 = vst [vmem:[%s4528_s17 + $0x3b0] sm:$0xff] %v3330_v16  ;;  %v3103_v25 = vand.u32 2147483648, %v8190_v1  ;;  %v901_v5 = vmul.f32 %v4111_v22, %v773_v6  ;;  %vm3097_vm5 = vweird.f32 %v8190_v1 }
 0x2e7   : > { %v774_v41 = vadd.f32 2.0, %v4115_v30  ;;  %4120 = vpow2.f32 %v646_v35  ;;  %v3085_v36 = vsel %vm8230_vm3, %v4109_v37, %v3081_v60  ;;  %vm3098_vm6 = vweird.f32 %v4113_v27 }
 0x2e8   : > { %v3094_v23 = vsub.f32 1.0, %v3093_v40  ;;  %vm1027_vm9 = vcmp.gt.f32.partialorder %v8023_v39, 20.0  ;;  %v3090_v63 = vsel %vm8234_vm4, %v3089_v2, %v3085_v36  ;;  %v8251_v54 = vadd.f32 2.0, %v901_v5  ;;  %vm8258_vm8 = vmor %vm3097_vm5, %vm3098_vm6 }
 0x2e9   : > { %v4117_v20 = vpop.eup %4116  ;;  %v902_v61 = vmul.f32 %v4115_v30, %v774_v41  ;;  %v3091_v21 = vmul.f32 %v3090_v63, %v1155_v12  ;;  %4122 = vpow2.f32 %v648_v29  ;;  %v1156_v0 = vmul.f32 %v8182_v31, %v8036_v8 }
 0x2ea   : > { %v4119_v49 = vpop.eup %4118  ;;  %v3095_v45 = vmul.f32 %v4113_v27, %v3094_v23  ;;  %v775_v42 = vadd.f32 2.0, %v4117_v20  ;;  %vm3102_vm11 = vcmp.eq.f32.partialorder %v3101_v53, 8.507059e+37  ;;  %v3104_v33 = vor.u32 1.1754944e-38, %v3103_v25 }
 0x2eb   : > { %4124 = vrcp.f32 %v8251_v54  ;;  %v3331_v1 = vsel %vm1027_vm9, %v8023_v39, %v3091_v21  ;;  %v8264_v4 = vadd.f32 2.0, %v902_v61  ;;  %v395_v46 = vmin.f32 %v8254_v11, 20.0 }
 0x2ec   : > { %v3096_v15 = vadd.f32 %v4113_v27, %v3095_v45  ;;  %3459 = vst [vmem:[%s4528_s17 + $0x3b8] sm:$0xff] %v3331_v1  ;;  %v903_v51 = vmul.f32 %v4117_v20, %v775_v42  ;;  %v776_v37 = vadd.f32 2.0, %v4119_v49  ;;  %vm1028_vm12 = vcmp.gt.f32.partialorder %v8036_v8, 20.0 }
 0x2ed   : > { %v4121_v3 = vpop.eup %4120  ;;  %4126 = vrcp.f32 %v8264_v4  ;;  %v3116_v34 = vand.u32 2147483647, %v8251_v54  ;;  %v3118_v39 = vand.u32 2147483648, %v8251_v54  ;;  %v650_v32 = vmul.f32 1.442695, %v395_v46 }
 0x2ee   : > { %v3100_v31 = vsel %vm8258_vm8, %v4113_v27, %v3096_v15  ;;  %v8274_v10 = vadd.f32 2.0, %v903_v51  ;;  %v904_v12 = vmul.f32 %v4119_v49, %v776_v37  ;;  %v777_v18 = vadd.f32 2.0, %v4121_v3 }
 0x2ef   : > { %v3105_v28 = vsel %vm3102_vm11, %v3104_v33, %v3100_v31  ;;  %v4123_v55 = vpop.eup %4122  ;;  %v1157_v59 = vmul.f32 %v901_v5, %v8137_v17  ;;  %vm3112_vm13 = vweird.f32 %v8251_v54  ;;  %v8279_v62 = vmul.f32 %v902_v61, %v8170_v14 }
 0x2f0   : > { %v3106_v43 = vmul.f32 %v3105_v28, %v1156_v0  ;;  %4128 = vrcp.f32 %v8274_v10  ;;  %v3131_v22 = vand.u32 2147483647, %v8264_v4  ;;  %v3133_v57 = vand.u32 2147483648, %v8264_v4 }
 0x2f1   : > { %v4125_v13 = vpop.eup %4124  ;;  %vm1029_vm14 = vcmp.gt.f32.partialorder %v8137_v17, 20.0  ;;  %vm8290_vm15 = vcmp.eq.f32.partialorder %v3116_v34, 8.507059e+37  ;;  %v3119_v47 = vor.u32 1.1754944e-38, %v3118_v39  ;;  %v8294_v9 = vadd.f32 2.0, %v904_v12 }
 0x2f2   : > { %v3332_v38 = vsel %vm1028_vm12, %v8036_v8, %v3106_v43  ;;  %v3108_v48 = vmul.f32 %v4125_v13, %v8251_v54  ;;  %v8296_v58 = vmul.f32 %v4121_v3, %v777_v18  ;;  %vm3113_vm0 = vweird.f32 %v4125_v13 }
 0x2f3   : > { %3460 = vst [vmem:[%s4528_s17 + $0x3c0] sm:$0xff] %v3332_v38  ;;  %v4127_v6 = vpop.eup %4126  ;;  %vm3127_vm7 = vweird.f32 %v8264_v4  ;;  %v778_v27 = vadd.f32 2.0, %v4123_v55  ;;  %v8301_v26 = vmul.f32 %v903_v51, %v8179_v19  ;;  %v3146_v2 = vand.u32 2147483647, %v8274_v10  ;;  %vm8313_vm10 = vmor %vm3112_vm13, %vm3113_vm0 }
 0x2f4   : > { %v3109_v8 = vsub.f32 1.0, %v3108_v48  ;;  %v3123_v24 = vmul.f32 %v4127_v6, %v8264_v4  ;;  %4130 = vrcp.f32 %v8294_v9  ;;  %vm1030_vm1 = vcmp.gt.f32.partialorder %v8170_v14, 20.0 }
 0x2f5   : > { %vm8306_vm2 = vcmp.eq.f32.partialorder %v3131_v22, 8.507059e+37  ;;  %v3134_v30 = vor.u32 1.1754944e-38, %v3133_v57  ;;  %v3148_v16 = vand.u32 2147483648, %v8274_v10  ;;  %vm3128_vm3 = vweird.f32 %v4127_v6 }
 0x2f6   : > { %v3110_v53 = vmul.f32 %v4125_v13, %v3109_v8  ;;  %v4129_v60 = vpop.eup %4128  ;;  %v3124_v29 = vsub.f32 1.0, %v3123_v24  ;;  %v8318_v25 = vadd.f32 2.0, %v8296_v58  ;;  %v8320_v5 = vmul.f32 %v4123_v55, %v778_v27  ;;  %vm8335_vm9 = vmor %vm3127_vm7, %vm3128_vm3 }
 0x2f7   : > { %v3138_v36 = vmul.f32 %v4129_v60, %v8274_v10  ;;  %vm3142_vm4 = vweird.f32 %v8274_v10  ;;  %4132 = vpow2.f32 %v650_v32  ;;  %vm1031_vm5 = vcmp.gt.f32.partialorder %v8179_v19, 20.0 }
 0x2f8   : > { %v3111_v41 = vadd.f32 %v4125_v13, %v3110_v53  ;;  %v3125_v23 = vmul.f32 %v4127_v6, %v3124_v29  ;;  %vm8325_vm6 = vcmp.eq.f32.partialorder %v3146_v2, 8.507059e+37  ;;  %v1160_v63 = vmul.f32 %v904_v12, %v8185_v50 }
 0x2f9   : > { %4134 = vrcp.f32 %v8318_v25  ;;  %v3139_v49 = vsub.f32 1.0, %v3138_v36  ;;  %vm3143_vm8 = vweird.f32 %v4129_v60  ;;  %v3149_v21 = vor.u32 1.1754944e-38, %v3148_v16 }
 0x2fa   : > { %v3115_v54 = vsel %vm8313_vm10, %v4125_v13, %v3111_v41  ;;  %v4131_v45 = vpop.eup %4130  ;;  %v3126_v0 = vadd.f32 %v4127_v6, %v3125_v23  ;;  %v3161_v44 = vand.u32 2147483647, %v8294_v9  ;;  %v8343_v33 = vadd.f32 2.0, %v8320_v5  ;;  %vm8351_vm11 = vmor %vm3142_vm4, %vm3143_vm8 }
 0x2fb   : > { %v3120_v42 = vsel %vm8290_vm15, %v3119_v47, %v3115_v54  ;;  %v3140_v15 = vmul.f32 %v4129_v60, %v3139_v49  ;;  %v3153_v4 = vmul.f32 %v4131_v45, %v8294_v9  ;;  %v3163_v46 = vand.u32 2147483648, %v8294_v9 }
 0x2fc   : > { %v3121_v1 = vmul.f32 %v3120_v42, %v1157_v59  ;;  %v3130_v3 = vsel %vm8335_vm9, %v4127_v6, %v3126_v0  ;;  %vm1032_vm12 = vcmp.gt.f32.partialorder %v8185_v50, 20.0  ;;  %vm3157_vm13 = vweird.f32 %v8294_v9 }
 0x2fd   : > { %vm3158_vm15 = vweird.f32 %v4131_v45  ;;  %4136 = vrcp.f32 %v8343_v33  ;;  %v4133_v37 = vpop.eup %4132  ;;  %v3135_v28 = vsel %vm8306_vm2, %v3134_v30, %v3130_v3  ;;  %v3141_v34 = vadd.f32 %v4129_v60, %v3140_v15 }
 0x2fe   : > { %v3333_v31 = vsel %vm1029_vm14, %v8137_v17, %v3121_v1  ;;  %v3154_v39 = vsub.f32 1.0, %v3153_v4  ;;  %v3136_v55 = vmul.f32 %v3135_v28, %v8279_v62  ;;  %vm8365_vm0 = vcmp.eq.f32.partialorder %v3161_v44, 8.507059e+37  ;;  %vm8382_vm14 = vmor %vm3157_vm13, %vm3158_vm15 }
 0x2ff   : > { %v4135_v10 = vpop.eup %4134  ;;  %3461 = vst [vmem:[%s4528_s17 + $0x3c8] sm:$0xff] %v3333_v31  ;;  %v3176_v12 = vand.u32 2147483647, %v8318_v25  ;;  %v3178_v18 = vand.u32 2147483648, %v8318_v25  ;;  %v3145_v17 = vsel %vm8351_vm11, %v4129_v60, %v3141_v34  ;;  %v3164_v13 = vor.u32 1.1754944e-38, %v3163_v46 }
 0x300   : > { %v3155_v32 = vmul.f32 %v4131_v45, %v3154_v39  ;;  %v3168_v59 = vmul.f32 %v4135_v10, %v8318_v25  ;;  %v3334_v38 = vsel %vm1030_vm1, %v8170_v14, %v3136_v55  ;;  %v3150_v62 = vsel %vm8325_vm6, %v3149_v21, %v3145_v17 }
 0x301   : > { %vm3172_vm7 = vweird.f32 %v8318_v25  ;;  %vm3173_vm2 = vweird.f32 %v4135_v10  ;;  %3462 = vst [vmem:[%s4528_s17 + $0x3d0] sm:$0xff] %v3334_v38  ;;  %v3151_v22 = vmul.f32 %v3150_v62, %v8301_v26  ;;  %v779_v14 = vadd.f32 2.0, %v4133_v37 }
 0x302   : > { %v3156_v57 = vadd.f32 %v4131_v45, %v3155_v32  ;;  %v3169_v52 = vsub.f32 1.0, %v3168_v59  ;;  %v1161_v6 = vmul.f32 %v8296_v58, %v8214_v7  ;;  %vm8391_vm1 = vcmp.eq.f32.partialorder %v3176_v12, 8.507059e+37  ;;  %vm3174_vm3 = vmor %vm3172_vm7, %vm3173_vm2 }
 0x303   : > { %v4137_v47 = vpop.eup %4136  ;;  %v3179_v8 = vor.u32 1.1754944e-38, %v3178_v18  ;;  %vm3187_vm10 = vweird.f32 %v8343_v33  ;;  %v3335_v27 = vsel %vm1031_vm5, %v8179_v19, %v3151_v22  ;;  %v3191_v53 = vand.u32 2147483647, %v8343_v33 }
 0x304   : > { %v3160_v24 = vsel %vm8382_vm14, %v4131_v45, %v3156_v57  ;;  %v3170_v26 = vmul.f32 %v4135_v10, %v3169_v52  ;;  %v3183_v2 = vmul.f32 %v4137_v47, %v8343_v33  ;;  %3463 = vst [vmem:[%s4528_s17 + $0x3d8] sm:$0xff] %v3335_v27  ;;  %v3193_v35 = vand.u32 2147483648, %v8343_v33 }
 0x305   : > { %v3165_v58 = vsel %vm8365_vm0, %v3164_v13, %v3160_v24  ;;  %v907_v19 = vmul.f32 %v4133_v37, %v779_v14  ;;  %vm3188_vm4 = vweird.f32 %v4137_v47  ;;  %vm1033_vm5 = vcmp.gt.f32.partialorder %v8214_v7, 20.0 }
 0x306   : > { %v3166_v30 = vmul.f32 %v3165_v58, %v1160_v63  ;;  %v3171_v16 = vadd.f32 %v4135_v10, %v3170_v26  ;;  %v3184_v60 = vsub.f32 1.0, %v3183_v2  ;;  %vm3189_vm6 = vmor %vm3187_vm10, %vm3188_vm4  ;;  %v3194_v23 = vor.u32 1.1754944e-38, %v3193_v35 }
 0x307   : > { %v1291_v40 = vadd.f32 2.0, %v907_v19  ;;  %v1162_v63 = vmul.f32 %v8320_v5, %v8217_v56  ;;  %vm3192_vm9 = vcmp.eq.f32.partialorder %v3191_v53, 8.507059e+37  ;;  %vm1034_vm8 = vcmp.gt.f32.partialorder %v8217_v56, 20.0 }
 0x308   : > { %v3336_v29 = vsel %vm1032_vm12, %v8185_v50, %v3166_v30  ;;  %v3175_v41 = vsel %vm3174_vm3, %v4135_v10, %v3171_v16  ;;  %v3185_v36 = vmul.f32 %v4137_v47, %v3184_v60  ;;  %vm1035_vm0 = vcmp.gt.f32.partialorder %v8254_v11, 20.0 }
 0x309   : > { %3464 = vst [vmem:[%s4528_s17 + $0x3e0] sm:$0xff] %v3336_v29  ;;  %v3180_v25 = vsel %vm8391_vm1, %v3179_v8, %v3175_v41  ;;  %4138 = vrcp.f32 %v1291_v40  ;;  %v3208_v44 = vand.u32 2147483648, %v1291_v40  ;;  %vm3202_vm11 = vweird.f32 %v1291_v40 }
 0x30a   : > { %v3181_v20 = vmul.f32 %v3180_v25, %v1161_v6  ;;  %v3186_v50 = vadd.f32 %v4137_v47, %v3185_v36  ;;  %v3206_v5 = vand.u32 2147483647, %v1291_v40 }
 0x30c   : > { %v3337_v54 = vsel %vm1033_vm5, %v8214_v7, %v3181_v20  ;;  %v3190_v61 = vsel %vm3189_vm6, %v4137_v47, %v3186_v50  ;;  %v3209_v7 = vor.u32 1.1754944e-38, %v3208_v44  ;;  %vm3207_vm15 = vcmp.eq.f32.partialorder %v3206_v5, 8.507059e+37 }
 0x30d   : > { %3465 = vst [vmem:[%s4528_s17 + $0x3e8] sm:$0xff] %v3337_v54  ;;  %v3195_v49 = vsel %vm3192_vm9, %v3194_v23, %v3190_v61 }
 0x30e   : > { %v3196_v21 = vmul.f32 %v3195_v49, %v1162_v63 }
 0x30f   : > { %v4139_v45 = vpop.eup %4138 }
 0x310   : > { %v3338_v42 = vsel %vm1034_vm8, %v8217_v56, %v3196_v21  ;;  %v3198_v0 = vmul.f32 %v4139_v45, %v1291_v40  ;;  %vm3203_vm12 = vweird.f32 %v4139_v45  ;;  %v1163_v56 = vmul.f32 %v907_v19, %v8254_v11 }
 0x311   : > { %3466 = vst [vmem:[%s4528_s17 + $0x3f0] sm:$0xff] %v3338_v42  ;;  %vm3204_vm13 = vmor %vm3202_vm11, %vm3203_vm12 }
 0x312   : > { %v3199_v33 = vsub.f32 1.0, %v3198_v0 }
 0x314   : > { %v3200_v1 = vmul.f32 %v4139_v45, %v3199_v33 }
 0x316   : > { %v3201_v15 = vadd.f32 %v4139_v45, %v3200_v1 }
 0x318   : > { %v3205_v4 = vsel %vm3204_vm13, %v4139_v45, %v3201_v15 }
 0x319   : > { %v3210_v46 = vsel %vm3207_vm15, %v3209_v7, %v3205_v4 }
 0x31a   : > { %v3211_v3 = vmul.f32 %v3210_v46, %v1163_v56 }
 0x31c   : > { %v3339_v51 = vsel %vm1035_vm0, %v8254_v11, %v3211_v3 }
 0x31d   : > { %3467 = vst [vmem:[%s4528_s17 + $0x3f8] sm:$0xff] %v3339_v51 }
 0x31e   : > { %4197 = shalt.err (!%p4194_p4)
}
 0x31f   : > { %s4240_s16 = smov 8192   ;;  %s4241_s20 = smov 512  }
 0x320   : > { %3580 = dma.vmem_to_hbm [thread:$0]  (%p4302_p11), %s3483_s29, 16384, %s3485_s10, %s3469_s30, %s4240_s16, %s4240_s16, %s4241_s20  }
 0x321 PF: > { %s3499_s21 = sand.u32 1, %s4224_s6   ;;  %p8924_p7 = scmp.ge.s32.totalorder %s4236_s9, 2 }
 0x322   : > { %s3500_s22 = scalar_lea.sflag [#allocation4], %s3499_s21 }
 0x323   : > { %p3587_p5 = pnand %p8924_p7, %p4306_p12 }
 0x325   : > { %p3588_p8 = pneg %p3587_p5 }
 0x327   : > { %4219 = dma.done.wait (%p3588_p8), %s3500_s22, 16384  }
 0x328   : > { %4221 = vsyncadd (%p3588_p8), %s3500_s22, 4294950912  ;;  %p14_p10 = scmp.ge.s32.totalorder %s4277_s12, 4   ;;  %s8925_s6 = smov %s4228_s7 }
 0x329   : > { %s8926_s7 = smov %s4232_s8  ;;  %s8927_s8 = smov %s4289_s15 }
 0x32a   : > { %s8928_s9 = smov %s4277_s12  ;;  %16 = sbr.rel (!%p14_p10) target bundleno = 5 (0x5), region = 69 }
 0x32f   :  { %3506 = vsyncpa [#allocation3], 1 }
 0x330   :  { %3508 = vsyncpa [#allocation3 + $0x1], 1 }
 0x331   :  { %3509 = vsyncpa [#allocation4], 1 }
 0x332   :  { %3511 = vsyncpa [#allocation4 + $0x1], 1 }

</bundles_post_ra>
